<compile_context>
chip_gen: v6e
topology: v6e:2x2x1
jax: 0.10.0
libtpu: 0.0.40
codegen_flags: <defaults>
</compile_context>

<pallas_src>
import jax
import jax.numpy as jnp
from jax.experimental import pallas as pl
from jax.experimental.pallas import tpu as pltpu


def _sigmoid(x):
    # 1 / (1 + exp(-x)); reciprocal on the EUP slot (approx LUT, ~2^-12 rel err).
    return pl.reciprocal(1.0 + jnp.exp(-x), approx=True)


def solvgnn_binary_kernel(a_ref, h_ref, scal_ref,
                          w1_ref, b1_ref, w2_ref, b2_ref,
                          wph_ref, wpx_ref, bp_ref,
                          we1_ref, be1_ref, expE_ref, expT_ref, we2p_ref, be2r_ref, bnn_ref,
                          wih_ref, whh_ref, bih_ref, bhh_ref,
                          wc1_ref, bc1_ref, wc2_ref, bc2_ref, wc3_ref, bc3_ref,
                          out_ref):
    TB = out_ref.shape[0]          # batch tile
    N = a_ref.shape[2]             # nodes per molecular graph
    Fi = h_ref.shape[3]            # input node-feature dim
    H = b1_ref.shape[1]            # hidden dim
    G = 2 * TB                     # both graph slots stacked along the batch axis
    f32 = jnp.float32

    # ---------------- GraphConv stack (shared weights) on g1 and g2 ----------------
    # relu(A @ (H @ W1) + b1) -> relu(A @ (. @ W2) + b2); weight matmuls flattened to one
    # big MXU dot (bf16 operands, f32 accumulation), adjacency contraction on the VPU.
    A = a_ref[...].reshape(G, N, N)                                       # f32

    # Hoisted adjacency column lane-broadcasts (reused by BOTH layers: halves XLU traffic).
    # NOTE: at very large batch tiles these N materialized (G,N,H) arrays dominate VMEM;
    # batch_tile default is sized accordingly in the wrapper.
    a_cols = [jnp.broadcast_to(A[:, :, j:j + 1], (G, N, H)) for j in range(N)]

    def adj_apply(X):
        # per-graph A @ X on the VPU; an (8x8) MXU tile would be <1% utilized.
        acc = a_cols[0] * X[:, 0:1, :]
        for j in range(1, N):
            acc = acc + a_cols[j] * X[:, j:j + 1, :]
        return acc

    h0 = h_ref[...].reshape(G * N, Fi).astype(jnp.bfloat16)
    hw1 = jnp.dot(h0, w1_ref[...], preferred_element_type=f32).reshape(G, N, H)
    h1 = jnp.maximum(adj_apply(hw1) + b1_ref[...], 0.0)                  # (G, N, H) f32

    hw2 = jnp.dot(h1.reshape(G * N, H).astype(jnp.bfloat16), w2_ref[...],
                  preferred_element_type=f32).reshape(G, N, H)
    h2 = jnp.maximum(adj_apply(hw2) + b2_ref[...], 0.0)

    # dgl.mean_nodes readout (fixed N nodes per graph)
    hg = jnp.sum(h2, axis=1) * (1.0 / N)                                  # (G, H)

    # ---------------- solvent-system scalars ----------------
    x1 = scal_ref[:, 0:1]                       # (TB, 1) mole fraction of solvent 1
    e_inter = scal_ref[:, 1:2]
    e_intra1 = scal_ref[:, 2:3]
    e_intra2 = scal_ref[:, 3:4]
    x_all = jnp.concatenate([x1, 1.0 - x1], axis=0)                       # (G, 1), matches hg rows

    # -------- MPNNconv.project_node_feats: relu([hg | x] @ Wp + bp), both branches at once ----
    p_all = jnp.maximum(jnp.dot(hg, wph_ref[...], preferred_element_type=f32)
                        + x_all * wpx_ref[...] + bp_ref[...], 0.0)        # (G, H)
    p1 = p_all[0:TB]
    p2 = p_all[TB:G]

    # ---------------- NNConv 'sum' on the 2-node solvent graph, fully on the MXU -------------
    # edge hidden: y = relu(e*We1 + be1) for the three edge scalars, stacked (3TB, EH)
    es = jnp.concatenate([e_inter, e_intra1, e_intra2], axis=0)           # (3TB, 1)
    y_all = jnp.maximum(es * we1_ref[...] + be1_ref[...], 0.0)            # (3TB, EH)

    # expansions (constant 0/1 matrices): yE[b, j*H+k] = y[b, j];  pT[b, j*H+k] = p[b, k]
    yE = jnp.dot(y_all, expE_ref[...], preferred_element_type=f32)        # (3TB, EH*H)
    pT = jnp.dot(p_all, expT_ref[...], preferred_element_type=f32)        # (G,   EH*H)
    yE_int, yE_ia, yE_ib = yE[0:TB], yE[TB:2 * TB], yE[2 * TB:3 * TB]
    pT1, pT2 = pT[0:TB], pT[TB:G]

    # outer products flattened in (j*H + k) order; contraction against permuted we2 on the MXU
    o = jnp.concatenate([yE_int * pT2 + yE_ia * pT1,                      # dest solvent 1
                         yE_int * pT1 + yE_ib * pT2], axis=0)             # dest solvent 2
    m_main = jnp.dot(o.astype(jnp.bfloat16), we2p_ref[...],
                     preferred_element_type=f32)                          # (G, H)
    bias = jnp.dot(p1 + p2, be2r_ref[...], preferred_element_type=f32) + bnn_ref[...]
    xg = jnp.maximum(m_main + jnp.concatenate([bias, bias], axis=0), 0.0)  # (G, H)

    # ---------------- single-step GRU (hidden state = projected node feats), stacked ----------
    gi = jnp.dot(xg, wih_ref[...], preferred_element_type=f32) + bih_ref[...]   # (G, 3H) r|z|n
    gh = jnp.dot(p_all, whh_ref[...], preferred_element_type=f32) + bhh_ref[...]
    r = _sigmoid(gi[:, 0:H] + gh[:, 0:H])
    z = _sigmoid(gi[:, H:2 * H] + gh[:, H:2 * H])
    n = jnp.tanh(gi[:, 2 * H:3 * H] + r * gh[:, 2 * H:3 * H])
    hn = (1.0 - z) * n + z * p_all                                        # (G, H)

    # ---------------- classification head (shared, stacked) + single concatenated store ------
    oo = jnp.maximum(jnp.dot(hn, wc1_ref[...], preferred_element_type=f32) + bc1_ref[...], 0.0)
    oo = jnp.maximum(jnp.dot(oo, wc2_ref[...], preferred_element_type=f32) + bc2_ref[...], 0.0)
    logits = jnp.dot(oo, wc3_ref[...], preferred_element_type=f32) + bc3_ref[...]   # (G, C)

    # torch: cat((out[:B], out[B:]), axis=1) -> [solvent1 logits | solvent2 logits]
    out_ref[...] = jnp.concatenate([logits[0:TB], logits[TB:G]], axis=1)


def _vmem_limit_bytes():
    """64 MiB on 128-MiB parts (v5e/v6e), ~3/4 of capacity on smaller parts (v7x: 48 MiB)."""
    cap = None
    try:
        cap = pltpu.get_tpu_info().vmem_capacity_bytes
    except Exception:
        cap = None
    if not cap:
        return 48 * 1024 * 1024
    return int(min(64 * 1024 * 1024, (cap * 3) // 4))


def solvgnn_binary_forward(a_norm, h_nodes, solv1x, inter_hb, intra_hb1, intra_hb2,
                           params, batch_tile=256):
    (w1, b1, w2, b2, wph, wpx, bp, we1, be1, we2, be2, bnn,
     wih, whh, bih, bhh, wc1, bc1, wc2, bc2, wc3, bc3) = params

    B, N = a_norm.shape[1], a_norm.shape[2]
    Fi = h_nodes.shape[3]
    H = w2.shape[0]
    EH = we1.shape[1]
    C = wc3.shape[1]

    if batch_tile >= B:
        TB = B
    else:
        TB = max(8, (batch_tile // 8) * 8)       # keep sublane-aligned partial tiles
    grid = (pl.cdiv(B, TB),)

    # pack the four per-sample scalars into one small (B, 4) array
    scalars = jnp.stack([solv1x, inter_hb, intra_hb1, intra_hb2], axis=1).astype(jnp.float32)

    # ---------------- wrapper-side weight preprocessing (pure glue) ----------------
    f32 = jnp.float32
    # bf16 MXU operands (f32 accumulation in-kernel) for the big matmuls
    w1b = w1.astype(jnp.bfloat16)
    w2b = w2.astype(jnp.bfloat16)
    # NNConv: permute we2 so aggregation is one (G, EH*H) @ (EH*H, H) MXU dot:
    #   we2p[j*H + k, n] = we2[j, k*H + n];  be2r[k, n] = be2[0, k*H + n]
    we2p = we2.reshape(EH, H, H).reshape(EH * H, H).astype(jnp.bfloat16)
    be2r = be2.reshape(H, H).astype(f32)
    # lane-expansion 0/1 matrices: element-repeat for y, vector-tile for p
    expE = jnp.repeat(jnp.eye(EH, dtype=f32), H, axis=1)          # (EH, EH*H), E[j, j*H+k] = 1
    expT = jnp.tile(jnp.eye(H, dtype=f32), (1, EH))               # (H,  EH*H), T[k, j*H+k] = 1

    kernel_weights = (
        w1b, b1.astype(f32), w2b, b2.astype(f32),
        wph.astype(f32), wpx.astype(f32), bp.astype(f32),
        we1.astype(f32), be1.astype(f32), expE, expT, we2p, be2r, bnn.astype(f32),
        wih.astype(f32), whh.astype(f32), bih.astype(f32), bhh.astype(f32),
        wc1.astype(f32), bc1.astype(f32), wc2.astype(f32), bc2.astype(f32),
        wc3.astype(f32), bc3.astype(f32))

    # TODO(synk): a_norm's N=8 lane dim pads 16x in VMEM; a packed (2, B, N*N) layout would cut
    # DMA/VMEM but needs an in-kernel relayout whose cost should be measured first.
    data_specs = [
        pl.BlockSpec((2, TB, N, N), lambda i: (0, i, 0, 0)),      # a_norm batch tile
        pl.BlockSpec((2, TB, N, Fi), lambda i: (0, i, 0, 0)),     # h_nodes batch tile
        pl.BlockSpec((TB, 4), lambda i: (i, 0)),                  # per-sample scalars
    ]
    # weights/biases: whole-array blocks, same block index every grid step -> resident in VMEM
    weight_specs = [pl.BlockSpec(w.shape, lambda i: (0, 0)) for w in kernel_weights]

    return pl.pallas_call(
        solvgnn_binary_kernel,
        out_shape=jax.ShapeDtypeStruct((B, 2 * C), jnp.float32),
        grid=grid,
        in_specs=data_specs + weight_specs,
        out_specs=pl.BlockSpec((TB, 2 * C), lambda i: (i, 0)),
        compiler_params=pltpu.CompilerParams(
            dimension_semantics=("parallel",),        # shard batch tiles across TensorCores
            vmem_limit_bytes=_vmem_limit_bytes()),
    )(a_norm.astype(jnp.float32), h_nodes.astype(jnp.float32), scalars, *kernel_weights)


def reference_forward(a_norm, h_nodes, solv1x, inter_hb, intra_hb1, intra_hb2, params):
    """Pure-JAX f32 transcription of solvgnn_binary.forward (ground truth)."""
    (w1, b1, w2, b2, wph, wpx, bp, we1, be1, we2, be2, bnn,
     wih, whh, bih, bhh, wc1, bc1, wc2, bc2, wc3, bc3) = params
    w1 = w1.astype(jnp.float32)
    w2 = w2.astype(jnp.float32)
    H = w2.shape[0]

    def gcn_readout(A, X):                   # GraphConv->ReLU x2, dgl.mean_nodes
        h1 = jax.nn.relu(jnp.einsum('bij,bjf->bif', A, X) @ w1 + b1)
        h2 = jax.nn.relu(jnp.einsum('bij,bjf->bif', A, h1) @ w2 + b2)
        return h2.mean(axis=1)

    hg1 = gcn_readout(a_norm[0], h_nodes[0])
    hg2 = gcn_readout(a_norm[1], h_nodes[1])

    x1 = solv1x[:, None]
    x2 = 1.0 - x1
    p1 = jax.nn.relu(hg1 @ wph + x1 * wpx + bp)
    p2 = jax.nn.relu(hg2 @ wph + x2 * wpx + bp)

    def edge_w(e):
        y = jax.nn.relu(e[:, None] * we1 + be1)
        return (y @ we2 + be2).reshape(-1, H, H)

    W_int, W_ia, W_ib = edge_w(inter_hb), edge_w(intra_hb1), edge_w(intra_hb2)
    m1 = jnp.einsum('bk,bkn->bn', p2, W_int) + jnp.einsum('bk,bkn->bn', p1, W_ia) + bnn
    m2 = jnp.einsum('bk,bkn->bn', p1, W_int) + jnp.einsum('bk,bkn->bn', p2, W_ib) + bnn
    xg1, xg2 = jax.nn.relu(m1), jax.nn.relu(m2)

    def gru(x, hprev):
        gi = x @ wih + bih
        gh = hprev @ whh + bhh
        r = jax.nn.sigmoid(gi[:, :H] + gh[:, :H])
        z = jax.nn.sigmoid(gi[:, H:2 * H] + gh[:, H:2 * H])
        n = jnp.tanh(gi[:, 2 * H:] + r * gh[:, 2 * H:])
        return (1.0 - z) * n + z * hprev

    hn1, hn2 = gru(xg1, p1), gru(xg2, p2)

    def head(hv):
        o = jax.nn.relu(hv @ wc1 + bc1)
        o = jax.nn.relu(o @ wc2 + bc2)
        return o @ wc3 + bc3

    return jnp.concatenate([head(hn1), head(hn2)], axis=1)


def build_inputs_and_params(key, B, N, in_dim, hidden, n_classes):
    ks = jax.random.split(key, 28)

    # --- molecular graphs: random symmetric adjacency + ring (degree >= 1), sym-normalized
    bern = jax.random.bernoulli(ks[0], 0.3, (2, B, N, N)).astype(jnp.float32)
    upper = jnp.triu(bern, 1)
    adj = upper + jnp.swapaxes(upper, -1, -2)
    ring = jnp.roll(jnp.eye(N, dtype=jnp.float32), 1, axis=1)
    ring = ring + ring.T
    adj = jnp.clip(adj + ring, 0.0, 1.0)
    deg = adj.sum(-1)
    dinv = 1.0 / jnp.sqrt(deg)
    a_norm = adj * dinv[..., :, None] * dinv[..., None, :]

    # --- node features, mole fraction, H-bond edge scalars of the solvent-system graph
    h_nodes = jax.random.normal(ks[1], (2, B, N, in_dim), jnp.float32)
    solv1x = jax.random.uniform(ks[2], (B,), jnp.float32, 0.1, 0.9)
    inter_hb = jax.random.uniform(ks[3], (B,), jnp.float32, 0.0, 2.0)
    intra_hb1 = jax.random.uniform(ks[4], (B,), jnp.float32, 0.0, 2.0)
    intra_hb2 = jax.random.uniform(ks[5], (B,), jnp.float32, 0.0, 2.0)

    # --- synthetic "trained" parameters (deterministic; not a checkpoint)
    s = 0.1

    def rnd(k, shape):
        return s * jax.random.normal(k, shape, jnp.float32)

    w1, b1 = rnd(ks[6], (in_dim, hidden)), rnd(ks[7], (1, hidden))
    w2, b2 = rnd(ks[8], (hidden, hidden)), rnd(ks[9], (1, hidden))

    # MPNN project_node_feats: Linear(hidden+1, hidden); split into hg block + mole-fraction row
    wp_full = rnd(ks[10], (hidden + 1, hidden))
    wph, wpx = wp_full[:hidden], wp_full[hidden:hidden + 1]
    bp = rnd(ks[11], (1, hidden))

    # NNConv edge network Linear(1,32) -> ReLU -> Linear(32, hidden*hidden), + NNConv bias
    we1, be1 = rnd(ks[12], (1, 32)), rnd(ks[13], (1, 32))
    we2, be2 = rnd(ks[14], (32, hidden * hidden)), rnd(ks[15], (1, hidden * hidden))
    bnn = rnd(ks[16], (1, hidden))

    # GRU (torch weight_ih_l0 / weight_hh_l0 transposed; gates packed r|z|n on the lane axis)
    wih, whh = rnd(ks[17], (hidden, 3 * hidden)), rnd(ks[18], (hidden, 3 * hidden))
    bih, bhh = rnd(ks[19], (1, 3 * hidden)), rnd(ks[20], (1, 3 * hidden))

    # classification head
    wc1, bc1 = rnd(ks[21], (hidden, hidden)), rnd(ks[22], (1, hidden))
    wc2, bc2 = rnd(ks[23], (hidden, hidden)), rnd(ks[24], (1, hidden))
    wc3, bc3 = rnd(ks[25], (hidden, n_classes)), rnd(ks[26], (1, n_classes))

    params = (w1, b1, w2, b2, wph, wpx, bp, we1, be1, we2, be2, bnn,
              wih, whh, bih, bhh, wc1, bc1, wc2, bc2, wc3, bc3)
    return a_norm, h_nodes, solv1x, inter_hb, intra_hb1, intra_hb2, params


if __name__ == "__main__":
    B, N, in_dim, hidden, n_classes = 4, 8, 16, 32, 2
    # TODO(synk): real DGL batched molecular graphs have variable node counts per graph;
    # this dense-adjacency layout fixes N nodes per graph (pad/mask externally if needed).
    key = jax.random.PRNGKey(0)
    (a_norm, h_nodes, solv1x, inter_hb,
     intra_hb1, intra_hb2, params) = build_inputs_and_params(key, B, N, in_dim, hidden, n_classes)

    out = solvgnn_binary_forward(a_norm, h_nodes, solv1x, inter_hb, intra_hb1, intra_hb2, params)
    out = jax.block_until_ready(out)

    ref = reference_forward(a_norm, h_nodes, solv1x, inter_hb, intra_hb1, intra_hb2, params)
    assert out.shape == (B, 2 * n_classes), out.shape
    # tolerance loosened vs pure-f32: GraphConv weights and the NNConv contraction use bf16
    # MXU operands (f32 accumulation), and the sigmoid uses the approximate EUP reciprocal.
    assert jnp.allclose(out, ref, atol=1e-2, rtol=2e-2), (out, ref)
    print("KERNEL_OK")
</pallas_src>

<mosaic_0001>
module attributes {stable_mosaic.version = 11 : i64} {
  func.func @solvgnn_binary_kernel(%arg0: i32, %arg1: memref<2x4x8x8xf32, #tpu.memory_space<vmem>>, %arg2: memref<2x4x8x16xf32, #tpu.memory_space<vmem>>, %arg3: memref<4x4xf32, #tpu.memory_space<vmem>>, %arg4: memref<16x32xbf16, #tpu.memory_space<vmem>>, %arg5: memref<1x32xf32, #tpu.memory_space<vmem>>, %arg6: memref<32x32xbf16, #tpu.memory_space<vmem>>, %arg7: memref<1x32xf32, #tpu.memory_space<vmem>>, %arg8: memref<32x32xf32, #tpu.memory_space<vmem>>, %arg9: memref<1x32xf32, #tpu.memory_space<vmem>>, %arg10: memref<1x32xf32, #tpu.memory_space<vmem>>, %arg11: memref<1x32xf32, #tpu.memory_space<vmem>>, %arg12: memref<1x32xf32, #tpu.memory_space<vmem>>, %arg13: memref<32x1024xf32, #tpu.memory_space<vmem>>, %arg14: memref<32x1024xf32, #tpu.memory_space<vmem>>, %arg15: memref<1024x32xbf16, #tpu.memory_space<vmem>>, %arg16: memref<32x32xf32, #tpu.memory_space<vmem>>, %arg17: memref<1x32xf32, #tpu.memory_space<vmem>>, %arg18: memref<32x96xf32, #tpu.memory_space<vmem>>, %arg19: memref<32x96xf32, #tpu.memory_space<vmem>>, %arg20: memref<1x96xf32, #tpu.memory_space<vmem>>, %arg21: memref<1x96xf32, #tpu.memory_space<vmem>>, %arg22: memref<32x32xf32, #tpu.memory_space<vmem>>, %arg23: memref<1x32xf32, #tpu.memory_space<vmem>>, %arg24: memref<32x32xf32, #tpu.memory_space<vmem>>, %arg25: memref<1x32xf32, #tpu.memory_space<vmem>>, %arg26: memref<32x2xf32, #tpu.memory_space<vmem>>, %arg27: memref<1x2xf32, #tpu.memory_space<vmem>>, %arg28: memref<4x4xf32, #tpu.memory_space<vmem>>) attributes {dimension_semantics = [#tpu.dimension_semantics<parallel>], iteration_bounds = array<i64: 1>, scalar_prefetch = 0 : i64, scratch_operands = 0 : i64, tpu.core_type = #tpu.core_type<tc>, window_params = [{transform_indices = @transform_0, window_bounds = array<i64: 2, 4, 8, 8>}, {transform_indices = @transform_1, window_bounds = array<i64: 2, 4, 8, 16>}, {transform_indices = @transform_2, window_bounds = array<i64: 4, 4>}, {pipeline_mode = #tpu.pipeline_mode<synchronous>, transform_indices = @transform_3, window_bounds = array<i64: 16, 32>}, {pipeline_mode = #tpu.pipeline_mode<synchronous>, transform_indices = @transform_4, window_bounds = array<i64: 1, 32>}, {pipeline_mode = #tpu.pipeline_mode<synchronous>, transform_indices = @transform_5, window_bounds = array<i64: 32, 32>}, {pipeline_mode = #tpu.pipeline_mode<synchronous>, transform_indices = @transform_6, window_bounds = array<i64: 1, 32>}, {pipeline_mode = #tpu.pipeline_mode<synchronous>, transform_indices = @transform_7, window_bounds = array<i64: 32, 32>}, {pipeline_mode = #tpu.pipeline_mode<synchronous>, transform_indices = @transform_8, window_bounds = array<i64: 1, 32>}, {pipeline_mode = #tpu.pipeline_mode<synchronous>, transform_indices = @transform_9, window_bounds = array<i64: 1, 32>}, {pipeline_mode = #tpu.pipeline_mode<synchronous>, transform_indices = @transform_10, window_bounds = array<i64: 1, 32>}, {pipeline_mode = #tpu.pipeline_mode<synchronous>, transform_indices = @transform_11, window_bounds = array<i64: 1, 32>}, {pipeline_mode = #tpu.pipeline_mode<synchronous>, transform_indices = @transform_12, window_bounds = array<i64: 32, 1024>}, {pipeline_mode = #tpu.pipeline_mode<synchronous>, transform_indices = @transform_13, window_bounds = array<i64: 32, 1024>}, {pipeline_mode = #tpu.pipeline_mode<synchronous>, transform_indices = @transform_14, window_bounds = array<i64: 1024, 32>}, {pipeline_mode = #tpu.pipeline_mode<synchronous>, transform_indices = @transform_15, window_bounds = array<i64: 32, 32>}, {pipeline_mode = #tpu.pipeline_mode<synchronous>, transform_indices = @transform_16, window_bounds = array<i64: 1, 32>}, {pipeline_mode = #tpu.pipeline_mode<synchronous>, transform_indices = @transform_17, window_bounds = array<i64: 32, 96>}, {pipeline_mode = #tpu.pipeline_mode<synchronous>, transform_indices = @transform_18, window_bounds = array<i64: 32, 96>}, {pipeline_mode = #tpu.pipeline_mode<synchronous>, transform_indices = @transform_19, window_bounds = array<i64: 1, 96>}, {pipeline_mode = #tpu.pipeline_mode<synchronous>, transform_indices = @transform_20, window_bounds = array<i64: 1, 96>}, {pipeline_mode = #tpu.pipeline_mode<synchronous>, transform_indices = @transform_21, window_bounds = array<i64: 32, 32>}, {pipeline_mode = #tpu.pipeline_mode<synchronous>, transform_indices = @transform_22, window_bounds = array<i64: 1, 32>}, {pipeline_mode = #tpu.pipeline_mode<synchronous>, transform_indices = @transform_23, window_bounds = array<i64: 32, 32>}, {pipeline_mode = #tpu.pipeline_mode<synchronous>, transform_indices = @transform_24, window_bounds = array<i64: 1, 32>}, {pipeline_mode = #tpu.pipeline_mode<synchronous>, transform_indices = @transform_25, window_bounds = array<i64: 32, 2>}, {pipeline_mode = #tpu.pipeline_mode<synchronous>, transform_indices = @transform_26, window_bounds = array<i64: 1, 2>}, {transform_indices = @transform_27, window_bounds = array<i64: 4, 4>}]} {
    %c0 = arith.constant 0 : index
    %c0_0 = arith.constant 0 : index
    %c0_1 = arith.constant 0 : index
    %c0_2 = arith.constant 0 : index
    %0 = vector.load %arg1[%c0, %c0_0, %c0_1, %c0_2] : memref<2x4x8x8xf32, #tpu.memory_space<vmem>>, vector<2x4x8x8xf32>
    %1 = vector.shape_cast %0 : vector<2x4x8x8xf32> to vector<8x8x8xf32>
    %2 = vector.extract_strided_slice %1 {offsets = [0, 0, 0], sizes = [8, 8, 1], strides = [1, 1, 1]} : vector<8x8x8xf32> to vector<8x8x1xf32>
    %3 = vector.shape_cast %2 : vector<8x8x1xf32> to vector<8x8x1xf32>
    %4 = vector.broadcast %3 : vector<8x8x1xf32> to vector<8x8x32xf32>
    %5 = vector.extract_strided_slice %1 {offsets = [0, 0, 1], sizes = [8, 8, 1], strides = [1, 1, 1]} : vector<8x8x8xf32> to vector<8x8x1xf32>
    %6 = vector.shape_cast %5 : vector<8x8x1xf32> to vector<8x8x1xf32>
    %7 = vector.broadcast %6 : vector<8x8x1xf32> to vector<8x8x32xf32>
    %8 = vector.extract_strided_slice %1 {offsets = [0, 0, 2], sizes = [8, 8, 1], strides = [1, 1, 1]} : vector<8x8x8xf32> to vector<8x8x1xf32>
    %9 = vector.shape_cast %8 : vector<8x8x1xf32> to vector<8x8x1xf32>
    %10 = vector.broadcast %9 : vector<8x8x1xf32> to vector<8x8x32xf32>
    %11 = vector.extract_strided_slice %1 {offsets = [0, 0, 3], sizes = [8, 8, 1], strides = [1, 1, 1]} : vector<8x8x8xf32> to vector<8x8x1xf32>
    %12 = vector.shape_cast %11 : vector<8x8x1xf32> to vector<8x8x1xf32>
    %13 = vector.broadcast %12 : vector<8x8x1xf32> to vector<8x8x32xf32>
    %14 = vector.extract_strided_slice %1 {offsets = [0, 0, 4], sizes = [8, 8, 1], strides = [1, 1, 1]} : vector<8x8x8xf32> to vector<8x8x1xf32>
    %15 = vector.shape_cast %14 : vector<8x8x1xf32> to vector<8x8x1xf32>
    %16 = vector.broadcast %15 : vector<8x8x1xf32> to vector<8x8x32xf32>
    %17 = vector.extract_strided_slice %1 {offsets = [0, 0, 5], sizes = [8, 8, 1], strides = [1, 1, 1]} : vector<8x8x8xf32> to vector<8x8x1xf32>
    %18 = vector.shape_cast %17 : vector<8x8x1xf32> to vector<8x8x1xf32>
    %19 = vector.broadcast %18 : vector<8x8x1xf32> to vector<8x8x32xf32>
    %20 = vector.extract_strided_slice %1 {offsets = [0, 0, 6], sizes = [8, 8, 1], strides = [1, 1, 1]} : vector<8x8x8xf32> to vector<8x8x1xf32>
    %21 = vector.shape_cast %20 : vector<8x8x1xf32> to vector<8x8x1xf32>
    %22 = vector.broadcast %21 : vector<8x8x1xf32> to vector<8x8x32xf32>
    %23 = vector.extract_strided_slice %1 {offsets = [0, 0, 7], sizes = [8, 8, 1], strides = [1, 1, 1]} : vector<8x8x8xf32> to vector<8x8x1xf32>
    %24 = vector.shape_cast %23 : vector<8x8x1xf32> to vector<8x8x1xf32>
    %25 = vector.broadcast %24 : vector<8x8x1xf32> to vector<8x8x32xf32>
    %c0_3 = arith.constant 0 : index
    %c0_4 = arith.constant 0 : index
    %c0_5 = arith.constant 0 : index
    %c0_6 = arith.constant 0 : index
    %26 = vector.load %arg2[%c0_3, %c0_4, %c0_5, %c0_6] : memref<2x4x8x16xf32, #tpu.memory_space<vmem>>, vector<2x4x8x16xf32>
    %27 = vector.shape_cast %26 : vector<2x4x8x16xf32> to vector<64x16xf32>
    %28 = arith.truncf %27 : vector<64x16xf32> to vector<64x16xbf16>
    %c0_7 = arith.constant 0 : index
    %c0_8 = arith.constant 0 : index
    %29 = vector.load %arg4[%c0_7, %c0_8] : memref<16x32xbf16, #tpu.memory_space<vmem>>, vector<16x32xbf16>
    %cst = arith.constant dense<0.000000e+00> : vector<64x32xf32>
    %30 = tpu.matmul %28, %29, %cst {dimension_numbers = #tpu.dot_dimension_numbers<[1], [0], [0], [1], [0, 0, 1, 1], [], []>} : vector<64x16xbf16>, vector<16x32xbf16>, vector<64x32xf32> -> vector<64x32xf32>
    %31 = vector.shape_cast %30 : vector<64x32xf32> to vector<8x8x32xf32>
    %32 = vector.extract_strided_slice %31 {offsets = [0, 0, 0], sizes = [8, 1, 32], strides = [1, 1, 1]} : vector<8x8x32xf32> to vector<8x1x32xf32>
    %33 = vector.broadcast %32 : vector<8x1x32xf32> to vector<8x8x32xf32>
    %34 = arith.mulf %4, %33 : vector<8x8x32xf32>
    %35 = vector.extract_strided_slice %31 {offsets = [0, 1, 0], sizes = [8, 1, 32], strides = [1, 1, 1]} : vector<8x8x32xf32> to vector<8x1x32xf32>
    %36 = vector.broadcast %35 : vector<8x1x32xf32> to vector<8x8x32xf32>
    %37 = arith.mulf %7, %36 : vector<8x8x32xf32>
    %38 = arith.addf %34, %37 : vector<8x8x32xf32>
    %39 = vector.extract_strided_slice %31 {offsets = [0, 2, 0], sizes = [8, 1, 32], strides = [1, 1, 1]} : vector<8x8x32xf32> to vector<8x1x32xf32>
    %40 = vector.broadcast %39 : vector<8x1x32xf32> to vector<8x8x32xf32>
    %41 = arith.mulf %10, %40 : vector<8x8x32xf32>
    %42 = arith.addf %38, %41 : vector<8x8x32xf32>
    %43 = vector.extract_strided_slice %31 {offsets = [0, 3, 0], sizes = [8, 1, 32], strides = [1, 1, 1]} : vector<8x8x32xf32> to vector<8x1x32xf32>
    %44 = vector.broadcast %43 : vector<8x1x32xf32> to vector<8x8x32xf32>
    %45 = arith.mulf %13, %44 : vector<8x8x32xf32>
    %46 = arith.addf %42, %45 : vector<8x8x32xf32>
    %47 = vector.extract_strided_slice %31 {offsets = [0, 4, 0], sizes = [8, 1, 32], strides = [1, 1, 1]} : vector<8x8x32xf32> to vector<8x1x32xf32>
    %48 = vector.broadcast %47 : vector<8x1x32xf32> to vector<8x8x32xf32>
    %49 = arith.mulf %16, %48 : vector<8x8x32xf32>
    %50 = arith.addf %46, %49 : vector<8x8x32xf32>
    %51 = vector.extract_strided_slice %31 {offsets = [0, 5, 0], sizes = [8, 1, 32], strides = [1, 1, 1]} : vector<8x8x32xf32> to vector<8x1x32xf32>
    %52 = vector.broadcast %51 : vector<8x1x32xf32> to vector<8x8x32xf32>
    %53 = arith.mulf %19, %52 : vector<8x8x32xf32>
    %54 = arith.addf %50, %53 : vector<8x8x32xf32>
    %55 = vector.extract_strided_slice %31 {offsets = [0, 6, 0], sizes = [8, 1, 32], strides = [1, 1, 1]} : vector<8x8x32xf32> to vector<8x1x32xf32>
    %56 = vector.broadcast %55 : vector<8x1x32xf32> to vector<8x8x32xf32>
    %57 = arith.mulf %22, %56 : vector<8x8x32xf32>
    %58 = arith.addf %54, %57 : vector<8x8x32xf32>
    %59 = vector.extract_strided_slice %31 {offsets = [0, 7, 0], sizes = [8, 1, 32], strides = [1, 1, 1]} : vector<8x8x32xf32> to vector<8x1x32xf32>
    %60 = vector.broadcast %59 : vector<8x1x32xf32> to vector<8x8x32xf32>
    %61 = arith.mulf %25, %60 : vector<8x8x32xf32>
    %62 = arith.addf %58, %61 : vector<8x8x32xf32>
    %c0_9 = arith.constant 0 : index
    %c0_10 = arith.constant 0 : index
    %63 = vector.load %arg5[%c0_9, %c0_10] : memref<1x32xf32, #tpu.memory_space<vmem>>, vector<1x32xf32>
    %64 = vector.shape_cast %63 : vector<1x32xf32> to vector<1x1x32xf32>
    %65 = vector.broadcast %64 : vector<1x1x32xf32> to vector<8x8x32xf32>
    %66 = arith.addf %62, %65 : vector<8x8x32xf32>
    %cst_11 = arith.constant 0.000000e+00 : f32
    %67 = vector.broadcast %cst_11 : f32 to vector<8x8x32xf32>
    %68 = arith.maximumf %66, %67 : vector<8x8x32xf32>
    %69 = vector.shape_cast %68 : vector<8x8x32xf32> to vector<64x32xf32>
    %70 = arith.truncf %69 : vector<64x32xf32> to vector<64x32xbf16>
    %c0_12 = arith.constant 0 : index
    %c0_13 = arith.constant 0 : index
    %71 = vector.load %arg6[%c0_12, %c0_13] : memref<32x32xbf16, #tpu.memory_space<vmem>>, vector<32x32xbf16>
    %cst_14 = arith.constant dense<0.000000e+00> : vector<64x32xf32>
    %72 = tpu.matmul %70, %71, %cst_14 {dimension_numbers = #tpu.dot_dimension_numbers<[1], [0], [0], [1], [0, 0, 1, 1], [], []>} : vector<64x32xbf16>, vector<32x32xbf16>, vector<64x32xf32> -> vector<64x32xf32>
    %73 = vector.shape_cast %72 : vector<64x32xf32> to vector<8x8x32xf32>
    %74 = vector.extract_strided_slice %73 {offsets = [0, 0, 0], sizes = [8, 1, 32], strides = [1, 1, 1]} : vector<8x8x32xf32> to vector<8x1x32xf32>
    %75 = vector.broadcast %74 : vector<8x1x32xf32> to vector<8x8x32xf32>
    %76 = arith.mulf %4, %75 : vector<8x8x32xf32>
    %77 = vector.extract_strided_slice %73 {offsets = [0, 1, 0], sizes = [8, 1, 32], strides = [1, 1, 1]} : vector<8x8x32xf32> to vector<8x1x32xf32>
    %78 = vector.broadcast %77 : vector<8x1x32xf32> to vector<8x8x32xf32>
    %79 = arith.mulf %7, %78 : vector<8x8x32xf32>
    %80 = arith.addf %76, %79 : vector<8x8x32xf32>
    %81 = vector.extract_strided_slice %73 {offsets = [0, 2, 0], sizes = [8, 1, 32], strides = [1, 1, 1]} : vector<8x8x32xf32> to vector<8x1x32xf32>
    %82 = vector.broadcast %81 : vector<8x1x32xf32> to vector<8x8x32xf32>
    %83 = arith.mulf %10, %82 : vector<8x8x32xf32>
    %84 = arith.addf %80, %83 : vector<8x8x32xf32>
    %85 = vector.extract_strided_slice %73 {offsets = [0, 3, 0], sizes = [8, 1, 32], strides = [1, 1, 1]} : vector<8x8x32xf32> to vector<8x1x32xf32>
    %86 = vector.broadcast %85 : vector<8x1x32xf32> to vector<8x8x32xf32>
    %87 = arith.mulf %13, %86 : vector<8x8x32xf32>
    %88 = arith.addf %84, %87 : vector<8x8x32xf32>
    %89 = vector.extract_strided_slice %73 {offsets = [0, 4, 0], sizes = [8, 1, 32], strides = [1, 1, 1]} : vector<8x8x32xf32> to vector<8x1x32xf32>
    %90 = vector.broadcast %89 : vector<8x1x32xf32> to vector<8x8x32xf32>
    %91 = arith.mulf %16, %90 : vector<8x8x32xf32>
    %92 = arith.addf %88, %91 : vector<8x8x32xf32>
    %93 = vector.extract_strided_slice %73 {offsets = [0, 5, 0], sizes = [8, 1, 32], strides = [1, 1, 1]} : vector<8x8x32xf32> to vector<8x1x32xf32>
    %94 = vector.broadcast %93 : vector<8x1x32xf32> to vector<8x8x32xf32>
    %95 = arith.mulf %19, %94 : vector<8x8x32xf32>
    %96 = arith.addf %92, %95 : vector<8x8x32xf32>
    %97 = vector.extract_strided_slice %73 {offsets = [0, 6, 0], sizes = [8, 1, 32], strides = [1, 1, 1]} : vector<8x8x32xf32> to vector<8x1x32xf32>
    %98 = vector.broadcast %97 : vector<8x1x32xf32> to vector<8x8x32xf32>
    %99 = arith.mulf %22, %98 : vector<8x8x32xf32>
    %100 = arith.addf %96, %99 : vector<8x8x32xf32>
    %101 = vector.extract_strided_slice %73 {offsets = [0, 7, 0], sizes = [8, 1, 32], strides = [1, 1, 1]} : vector<8x8x32xf32> to vector<8x1x32xf32>
    %102 = vector.broadcast %101 : vector<8x1x32xf32> to vector<8x8x32xf32>
    %103 = arith.mulf %25, %102 : vector<8x8x32xf32>
    %104 = arith.addf %100, %103 : vector<8x8x32xf32>
    %c0_15 = arith.constant 0 : index
    %c0_16 = arith.constant 0 : index
    %105 = vector.load %arg7[%c0_15, %c0_16] : memref<1x32xf32, #tpu.memory_space<vmem>>, vector<1x32xf32>
    %106 = vector.shape_cast %105 : vector<1x32xf32> to vector<1x1x32xf32>
    %107 = vector.broadcast %106 : vector<1x1x32xf32> to vector<8x8x32xf32>
    %108 = arith.addf %104, %107 : vector<8x8x32xf32>
    %cst_17 = arith.constant 0.000000e+00 : f32
    %109 = vector.broadcast %cst_17 : f32 to vector<8x8x32xf32>
    %110 = arith.maximumf %108, %109 : vector<8x8x32xf32>
    %cst_18 = arith.constant dense<0.000000e+00> : vector<8x32xf32>
    %111 = vector.multi_reduction <add>, %110, %cst_18 [1] : vector<8x8x32xf32> to vector<8x32xf32>
    %cst_19 = arith.constant 1.250000e-01 : f32
    %112 = vector.broadcast %cst_19 : f32 to vector<8x32xf32>
    %113 = arith.mulf %111, %112 : vector<8x32xf32>
    %c0_20 = arith.constant 0 : index
    %c0_21 = arith.constant 0 : index
    %114 = vector.load %arg3[%c0_20, %c0_21] : memref<4x4xf32, #tpu.memory_space<vmem>>, vector<4x1xf32>
    %c0_22 = arith.constant 0 : index
    %c1 = arith.constant 1 : index
    %115 = vector.load %arg3[%c0_22, %c1] : memref<4x4xf32, #tpu.memory_space<vmem>>, vector<4x1xf32>
    %c0_23 = arith.constant 0 : index
    %c2 = arith.constant 2 : index
    %116 = vector.load %arg3[%c0_23, %c2] : memref<4x4xf32, #tpu.memory_space<vmem>>, vector<4x1xf32>
    %c0_24 = arith.constant 0 : index
    %c3 = arith.constant 3 : index
    %117 = vector.load %arg3[%c0_24, %c3] : memref<4x4xf32, #tpu.memory_space<vmem>>, vector<4x1xf32>
    %cst_25 = arith.constant 1.000000e+00 : f32
    %118 = vector.broadcast %cst_25 : f32 to vector<4x1xf32>
    %119 = arith.subf %118, %114 : vector<4x1xf32>
    %120 = tpu.concatenate %114, %119 in 0 : vector<4x1xf32>, vector<4x1xf32> -> vector<8x1xf32>
    %c0_26 = arith.constant 0 : index
    %c0_27 = arith.constant 0 : index
    %121 = vector.load %arg8[%c0_26, %c0_27] : memref<32x32xf32, #tpu.memory_space<vmem>>, vector<32x32xf32>
    %cst_28 = arith.constant dense<0.000000e+00> : vector<8x32xf32>
    %122 = tpu.matmul %113, %121, %cst_28 {dimension_numbers = #tpu.dot_dimension_numbers<[1], [0], [0], [1], [0, 0, 1, 1], [], []>} : vector<8x32xf32>, vector<32x32xf32>, vector<8x32xf32> -> vector<8x32xf32>
    %c0_29 = arith.constant 0 : index
    %c0_30 = arith.constant 0 : index
    %123 = vector.load %arg9[%c0_29, %c0_30] : memref<1x32xf32, #tpu.memory_space<vmem>>, vector<1x32xf32>
    %124 = vector.broadcast %120 : vector<8x1xf32> to vector<8x32xf32>
    %125 = vector.broadcast %123 : vector<1x32xf32> to vector<8x32xf32>
    %126 = arith.mulf %124, %125 : vector<8x32xf32>
    %127 = arith.addf %122, %126 : vector<8x32xf32>
    %c0_31 = arith.constant 0 : index
    %c0_32 = arith.constant 0 : index
    %128 = vector.load %arg10[%c0_31, %c0_32] : memref<1x32xf32, #tpu.memory_space<vmem>>, vector<1x32xf32>
    %129 = vector.broadcast %128 : vector<1x32xf32> to vector<8x32xf32>
    %130 = arith.addf %127, %129 : vector<8x32xf32>
    %cst_33 = arith.constant 0.000000e+00 : f32
    %131 = vector.broadcast %cst_33 : f32 to vector<8x32xf32>
    %132 = arith.maximumf %130, %131 : vector<8x32xf32>
    %133 = vector.extract_strided_slice %132 {offsets = [0, 0], sizes = [4, 32], strides = [1, 1]} : vector<8x32xf32> to vector<4x32xf32>
    %134 = vector.extract_strided_slice %132 {offsets = [4, 0], sizes = [4, 32], strides = [1, 1]} : vector<8x32xf32> to vector<4x32xf32>
    %135 = tpu.concatenate %115, %116, %117 in 0 : vector<4x1xf32>, vector<4x1xf32>, vector<4x1xf32> -> vector<12x1xf32>
    %c0_34 = arith.constant 0 : index
    %c0_35 = arith.constant 0 : index
    %136 = vector.load %arg11[%c0_34, %c0_35] : memref<1x32xf32, #tpu.memory_space<vmem>>, vector<1x32xf32>
    %137 = vector.broadcast %135 : vector<12x1xf32> to vector<12x32xf32>
    %138 = vector.broadcast %136 : vector<1x32xf32> to vector<12x32xf32>
    %139 = arith.mulf %137, %138 : vector<12x32xf32>
    %c0_36 = arith.constant 0 : index
    %c0_37 = arith.constant 0 : index
    %140 = vector.load %arg12[%c0_36, %c0_37] : memref<1x32xf32, #tpu.memory_space<vmem>>, vector<1x32xf32>
    %141 = vector.broadcast %140 : vector<1x32xf32> to vector<12x32xf32>
    %142 = arith.addf %139, %141 : vector<12x32xf32>
    %cst_38 = arith.constant 0.000000e+00 : f32
    %143 = vector.broadcast %cst_38 : f32 to vector<12x32xf32>
    %144 = arith.maximumf %142, %143 : vector<12x32xf32>
    %c0_39 = arith.constant 0 : index
    %c0_40 = arith.constant 0 : index
    %145 = vector.load %arg13[%c0_39, %c0_40] : memref<32x1024xf32, #tpu.memory_space<vmem>>, vector<32x1024xf32>
    %cst_41 = arith.constant dense<0.000000e+00> : vector<12x1024xf32>
    %146 = tpu.matmul %144, %145, %cst_41 {dimension_numbers = #tpu.dot_dimension_numbers<[1], [0], [0], [1], [0, 0, 1, 1], [], []>} : vector<12x32xf32>, vector<32x1024xf32>, vector<12x1024xf32> -> vector<12x1024xf32>
    %c0_42 = arith.constant 0 : index
    %c0_43 = arith.constant 0 : index
    %147 = vector.load %arg14[%c0_42, %c0_43] : memref<32x1024xf32, #tpu.memory_space<vmem>>, vector<32x1024xf32>
    %cst_44 = arith.constant dense<0.000000e+00> : vector<8x1024xf32>
    %148 = tpu.matmul %132, %147, %cst_44 {dimension_numbers = #tpu.dot_dimension_numbers<[1], [0], [0], [1], [0, 0, 1, 1], [], []>} : vector<8x32xf32>, vector<32x1024xf32>, vector<8x1024xf32> -> vector<8x1024xf32>
    %149 = vector.extract_strided_slice %146 {offsets = [0, 0], sizes = [4, 1024], strides = [1, 1]} : vector<12x1024xf32> to vector<4x1024xf32>
    %150 = vector.extract_strided_slice %146 {offsets = [4, 0], sizes = [4, 1024], strides = [1, 1]} : vector<12x1024xf32> to vector<4x1024xf32>
    %151 = vector.extract_strided_slice %146 {offsets = [8, 0], sizes = [4, 1024], strides = [1, 1]} : vector<12x1024xf32> to vector<4x1024xf32>
    %152 = vector.extract_strided_slice %148 {offsets = [0, 0], sizes = [4, 1024], strides = [1, 1]} : vector<8x1024xf32> to vector<4x1024xf32>
    %153 = vector.extract_strided_slice %148 {offsets = [4, 0], sizes = [4, 1024], strides = [1, 1]} : vector<8x1024xf32> to vector<4x1024xf32>
    %154 = arith.mulf %149, %153 : vector<4x1024xf32>
    %155 = arith.mulf %150, %152 : vector<4x1024xf32>
    %156 = arith.addf %154, %155 : vector<4x1024xf32>
    %157 = arith.mulf %149, %152 : vector<4x1024xf32>
    %158 = arith.mulf %151, %153 : vector<4x1024xf32>
    %159 = arith.addf %157, %158 : vector<4x1024xf32>
    %160 = tpu.concatenate %156, %159 in 0 : vector<4x1024xf32>, vector<4x1024xf32> -> vector<8x1024xf32>
    %161 = arith.truncf %160 : vector<8x1024xf32> to vector<8x1024xbf16>
    %c0_45 = arith.constant 0 : index
    %c0_46 = arith.constant 0 : index
    %162 = vector.load %arg15[%c0_45, %c0_46] : memref<1024x32xbf16, #tpu.memory_space<vmem>>, vector<1024x32xbf16>
    %cst_47 = arith.constant dense<0.000000e+00> : vector<8x32xf32>
    %163 = tpu.matmul %161, %162, %cst_47 {dimension_numbers = #tpu.dot_dimension_numbers<[1], [0], [0], [1], [0, 0, 1, 1], [], []>} : vector<8x1024xbf16>, vector<1024x32xbf16>, vector<8x32xf32> -> vector<8x32xf32>
    %164 = arith.addf %133, %134 : vector<4x32xf32>
    %c0_48 = arith.constant 0 : index
    %c0_49 = arith.constant 0 : index
    %165 = vector.load %arg16[%c0_48, %c0_49] : memref<32x32xf32, #tpu.memory_space<vmem>>, vector<32x32xf32>
    %cst_50 = arith.constant dense<0.000000e+00> : vector<4x32xf32>
    %166 = tpu.matmul %164, %165, %cst_50 {dimension_numbers = #tpu.dot_dimension_numbers<[1], [0], [0], [1], [0, 0, 1, 1], [], []>} : vector<4x32xf32>, vector<32x32xf32>, vector<4x32xf32> -> vector<4x32xf32>
    %c0_51 = arith.constant 0 : index
    %c0_52 = arith.constant 0 : index
    %167 = vector.load %arg17[%c0_51, %c0_52] : memref<1x32xf32, #tpu.memory_space<vmem>>, vector<1x32xf32>
    %168 = vector.broadcast %167 : vector<1x32xf32> to vector<4x32xf32>
    %169 = arith.addf %166, %168 : vector<4x32xf32>
    %170 = tpu.concatenate %169, %169 in 0 : vector<4x32xf32>, vector<4x32xf32> -> vector<8x32xf32>
    %171 = arith.addf %163, %170 : vector<8x32xf32>
    %cst_53 = arith.constant 0.000000e+00 : f32
    %172 = vector.broadcast %cst_53 : f32 to vector<8x32xf32>
    %173 = arith.maximumf %171, %172 : vector<8x32xf32>
    %c0_54 = arith.constant 0 : index
    %c0_55 = arith.constant 0 : index
    %174 = vector.load %arg18[%c0_54, %c0_55] : memref<32x96xf32, #tpu.memory_space<vmem>>, vector<32x96xf32>
    %cst_56 = arith.constant dense<0.000000e+00> : vector<8x96xf32>
    %175 = tpu.matmul %173, %174, %cst_56 {dimension_numbers = #tpu.dot_dimension_numbers<[1], [0], [0], [1], [0, 0, 1, 1], [], []>} : vector<8x32xf32>, vector<32x96xf32>, vector<8x96xf32> -> vector<8x96xf32>
    %c0_57 = arith.constant 0 : index
    %c0_58 = arith.constant 0 : index
    %176 = vector.load %arg20[%c0_57, %c0_58] : memref<1x96xf32, #tpu.memory_space<vmem>>, vector<1x96xf32>
    %177 = vector.broadcast %176 : vector<1x96xf32> to vector<8x96xf32>
    %178 = arith.addf %175, %177 : vector<8x96xf32>
    %c0_59 = arith.constant 0 : index
    %c0_60 = arith.constant 0 : index
    %179 = vector.load %arg19[%c0_59, %c0_60] : memref<32x96xf32, #tpu.memory_space<vmem>>, vector<32x96xf32>
    %cst_61 = arith.constant dense<0.000000e+00> : vector<8x96xf32>
    %180 = tpu.matmul %132, %179, %cst_61 {dimension_numbers = #tpu.dot_dimension_numbers<[1], [0], [0], [1], [0, 0, 1, 1], [], []>} : vector<8x32xf32>, vector<32x96xf32>, vector<8x96xf32> -> vector<8x96xf32>
    %c0_62 = arith.constant 0 : index
    %c0_63 = arith.constant 0 : index
    %181 = vector.load %arg21[%c0_62, %c0_63] : memref<1x96xf32, #tpu.memory_space<vmem>>, vector<1x96xf32>
    %182 = vector.broadcast %181 : vector<1x96xf32> to vector<8x96xf32>
    %183 = arith.addf %180, %182 : vector<8x96xf32>
    %184 = vector.extract_strided_slice %178 {offsets = [0, 0], sizes = [8, 32], strides = [1, 1]} : vector<8x96xf32> to vector<8x32xf32>
    %185 = vector.extract_strided_slice %183 {offsets = [0, 0], sizes = [8, 32], strides = [1, 1]} : vector<8x96xf32> to vector<8x32xf32>
    %186 = arith.addf %184, %185 : vector<8x32xf32>
    %cst_64 = arith.constant 0.000000e+00 : f32
    %187 = vector.broadcast %cst_64 : f32 to vector<8x32xf32>
    %188 = arith.subf %187, %186 : vector<8x32xf32>
    %189 = math.exp %188 : vector<8x32xf32>
    %cst_65 = arith.constant 1.000000e+00 : f32
    %190 = vector.broadcast %cst_65 : f32 to vector<8x32xf32>
    %191 = arith.addf %190, %189 : vector<8x32xf32>
    %192 = tpu.reciprocal %191 {approx = true} : vector<8x32xf32> -> vector<8x32xf32>
    %193 = vector.extract_strided_slice %178 {offsets = [0, 32], sizes = [8, 32], strides = [1, 1]} : vector<8x96xf32> to vector<8x32xf32>
    %194 = vector.extract_strided_slice %183 {offsets = [0, 32], sizes = [8, 32], strides = [1, 1]} : vector<8x96xf32> to vector<8x32xf32>
    %195 = arith.addf %193, %194 : vector<8x32xf32>
    %cst_66 = arith.constant 0.000000e+00 : f32
    %196 = vector.broadcast %cst_66 : f32 to vector<8x32xf32>
    %197 = arith.subf %196, %195 : vector<8x32xf32>
    %198 = math.exp %197 : vector<8x32xf32>
    %cst_67 = arith.constant 1.000000e+00 : f32
    %199 = vector.broadcast %cst_67 : f32 to vector<8x32xf32>
    %200 = arith.addf %199, %198 : vector<8x32xf32>
    %201 = tpu.reciprocal %200 {approx = true} : vector<8x32xf32> -> vector<8x32xf32>
    %202 = vector.extract_strided_slice %178 {offsets = [0, 64], sizes = [8, 32], strides = [1, 1]} : vector<8x96xf32> to vector<8x32xf32>
    %203 = vector.extract_strided_slice %183 {offsets = [0, 64], sizes = [8, 32], strides = [1, 1]} : vector<8x96xf32> to vector<8x32xf32>
    %204 = arith.mulf %192, %203 : vector<8x32xf32>
    %205 = arith.addf %202, %204 : vector<8x32xf32>
    %206 = math.tanh %205 : vector<8x32xf32>
    %cst_68 = arith.constant 1.000000e+00 : f32
    %207 = vector.broadcast %cst_68 : f32 to vector<8x32xf32>
    %208 = arith.subf %207, %201 : vector<8x32xf32>
    %209 = arith.mulf %208, %206 : vector<8x32xf32>
    %210 = arith.mulf %201, %132 : vector<8x32xf32>
    %211 = arith.addf %209, %210 : vector<8x32xf32>
    %c0_69 = arith.constant 0 : index
    %c0_70 = arith.constant 0 : index
    %212 = vector.load %arg22[%c0_69, %c0_70] : memref<32x32xf32, #tpu.memory_space<vmem>>, vector<32x32xf32>
    %cst_71 = arith.constant dense<0.000000e+00> : vector<8x32xf32>
    %213 = tpu.matmul %211, %212, %cst_71 {dimension_numbers = #tpu.dot_dimension_numbers<[1], [0], [0], [1], [0, 0, 1, 1], [], []>} : vector<8x32xf32>, vector<32x32xf32>, vector<8x32xf32> -> vector<8x32xf32>
    %c0_72 = arith.constant 0 : index
    %c0_73 = arith.constant 0 : index
    %214 = vector.load %arg23[%c0_72, %c0_73] : memref<1x32xf32, #tpu.memory_space<vmem>>, vector<1x32xf32>
    %215 = vector.broadcast %214 : vector<1x32xf32> to vector<8x32xf32>
    %216 = arith.addf %213, %215 : vector<8x32xf32>
    %cst_74 = arith.constant 0.000000e+00 : f32
    %217 = vector.broadcast %cst_74 : f32 to vector<8x32xf32>
    %218 = arith.maximumf %216, %217 : vector<8x32xf32>
    %c0_75 = arith.constant 0 : index
    %c0_76 = arith.constant 0 : index
    %219 = vector.load %arg24[%c0_75, %c0_76] : memref<32x32xf32, #tpu.memory_space<vmem>>, vector<32x32xf32>
    %cst_77 = arith.constant dense<0.000000e+00> : vector<8x32xf32>
    %220 = tpu.matmul %218, %219, %cst_77 {dimension_numbers = #tpu.dot_dimension_numbers<[1], [0], [0], [1], [0, 0, 1, 1], [], []>} : vector<8x32xf32>, vector<32x32xf32>, vector<8x32xf32> -> vector<8x32xf32>
    %c0_78 = arith.constant 0 : index
    %c0_79 = arith.constant 0 : index
    %221 = vector.load %arg25[%c0_78, %c0_79] : memref<1x32xf32, #tpu.memory_space<vmem>>, vector<1x32xf32>
    %222 = vector.broadcast %221 : vector<1x32xf32> to vector<8x32xf32>
    %223 = arith.addf %220, %222 : vector<8x32xf32>
    %cst_80 = arith.constant 0.000000e+00 : f32
    %224 = vector.broadcast %cst_80 : f32 to vector<8x32xf32>
    %225 = arith.maximumf %223, %224 : vector<8x32xf32>
    %c0_81 = arith.constant 0 : index
    %c0_82 = arith.constant 0 : index
    %226 = vector.load %arg26[%c0_81, %c0_82] : memref<32x2xf32, #tpu.memory_space<vmem>>, vector<32x2xf32>
    %cst_83 = arith.constant dense<0.000000e+00> : vector<8x2xf32>
    %227 = tpu.matmul %225, %226, %cst_83 {dimension_numbers = #tpu.dot_dimension_numbers<[1], [0], [0], [1], [0, 0, 1, 1], [], []>} : vector<8x32xf32>, vector<32x2xf32>, vector<8x2xf32> -> vector<8x2xf32>
    %c0_84 = arith.constant 0 : index
    %c0_85 = arith.constant 0 : index
    %228 = vector.load %arg27[%c0_84, %c0_85] : memref<1x2xf32, #tpu.memory_space<vmem>>, vector<1x2xf32>
    %229 = vector.broadcast %228 : vector<1x2xf32> to vector<8x2xf32>
    %230 = arith.addf %227, %229 : vector<8x2xf32>
    %231 = vector.extract_strided_slice %230 {offsets = [0, 0], sizes = [4, 2], strides = [1, 1]} : vector<8x2xf32> to vector<4x2xf32>
    %232 = vector.extract_strided_slice %230 {offsets = [4, 0], sizes = [4, 2], strides = [1, 1]} : vector<8x2xf32> to vector<4x2xf32>
    %233 = tpu.concatenate %231, %232 in 1 : vector<4x2xf32>, vector<4x2xf32> -> vector<4x4xf32>
    %c0_86 = arith.constant 0 : index
    %c0_87 = arith.constant 0 : index
    %234 = vector.load %arg28[%c0_86, %c0_87] : memref<4x4xf32, #tpu.memory_space<vmem>>, vector<4x4xf32>
    tpu.vector_store %arg28[%c0_86, %c0_87], %233 {strides = array<i32>} : memref<4x4xf32, #tpu.memory_space<vmem>>, vector<4x4xf32>,
    return
  }
  func.func @transform_0(%arg0: i32) -> (i32, i32, i32, i32) {
    %c0_i32 = arith.constant 0 : i32
    %c0_i32_0 = arith.constant 0 : i32
    %c0_i32_1 = arith.constant 0 : i32
    %c0_i32_2 = arith.constant 0 : i32
    return %c0_i32, %arg0, %c0_i32_0, %c0_i32_1 : i32, i32, i32, i32
  }
  func.func @transform_1(%arg0: i32) -> (i32, i32, i32, i32) {
    %c0_i32 = arith.constant 0 : i32
    %c0_i32_0 = arith.constant 0 : i32
    %c0_i32_1 = arith.constant 0 : i32
    %c0_i32_2 = arith.constant 0 : i32
    return %c0_i32, %arg0, %c0_i32_0, %c0_i32_1 : i32, i32, i32, i32
  }
  func.func @transform_2(%arg0: i32) -> (i32, i32) {
    %c0_i32 = arith.constant 0 : i32
    %c0_i32_0 = arith.constant 0 : i32
    return %arg0, %c0_i32 : i32, i32
  }
  func.func @transform_3(%arg0: i32) -> (i32, i32) {
    %c0_i32 = arith.constant 0 : i32
    %c0_i32_0 = arith.constant 0 : i32
    %c0_i32_1 = arith.constant 0 : i32
    return %c0_i32, %c0_i32_0 : i32, i32
  }
  func.func @transform_4(%arg0: i32) -> (i32, i32) {
    %c0_i32 = arith.constant 0 : i32
    %c0_i32_0 = arith.constant 0 : i32
    %c0_i32_1 = arith.constant 0 : i32
    return %c0_i32, %c0_i32_0 : i32, i32
  }
  func.func @transform_5(%arg0: i32) -> (i32, i32) {
    %c0_i32 = arith.constant 0 : i32
    %c0_i32_0 = arith.constant 0 : i32
    %c0_i32_1 = arith.constant 0 : i32
    return %c0_i32, %c0_i32_0 : i32, i32
  }
  func.func @transform_6(%arg0: i32) -> (i32, i32) {
    %c0_i32 = arith.constant 0 : i32
    %c0_i32_0 = arith.constant 0 : i32
    %c0_i32_1 = arith.constant 0 : i32
    return %c0_i32, %c0_i32_0 : i32, i32
  }
  func.func @transform_7(%arg0: i32) -> (i32, i32) {
    %c0_i32 = arith.constant 0 : i32
    %c0_i32_0 = arith.constant 0 : i32
    %c0_i32_1 = arith.constant 0 : i32
    return %c0_i32, %c0_i32_0 : i32, i32
  }
  func.func @transform_8(%arg0: i32) -> (i32, i32) {
    %c0_i32 = arith.constant 0 : i32
    %c0_i32_0 = arith.constant 0 : i32
    %c0_i32_1 = arith.constant 0 : i32
    return %c0_i32, %c0_i32_0 : i32, i32
  }
  func.func @transform_9(%arg0: i32) -> (i32, i32) {
    %c0_i32 = arith.constant 0 : i32
    %c0_i32_0 = arith.constant 0 : i32
    %c0_i32_1 = arith.constant 0 : i32
    return %c0_i32, %c0_i32_0 : i32, i32
  }
  func.func @transform_10(%arg0: i32) -> (i32, i32) {
    %c0_i32 = arith.constant 0 : i32
    %c0_i32_0 = arith.constant 0 : i32
    %c0_i32_1 = arith.constant 0 : i32
    return %c0_i32, %c0_i32_0 : i32, i32
  }
  func.func @transform_11(%arg0: i32) -> (i32, i32) {
    %c0_i32 = arith.constant 0 : i32
    %c0_i32_0 = arith.constant 0 : i32
    %c0_i32_1 = arith.constant 0 : i32
    return %c0_i32, %c0_i32_0 : i32, i32
  }
  func.func @transform_12(%arg0: i32) -> (i32, i32) {
    %c0_i32 = arith.constant 0 : i32
    %c0_i32_0 = arith.constant 0 : i32
    %c0_i32_1 = arith.constant 0 : i32
    return %c0_i32, %c0_i32_0 : i32, i32
  }
  func.func @transform_13(%arg0: i32) -> (i32, i32) {
    %c0_i32 = arith.constant 0 : i32
    %c0_i32_0 = arith.constant 0 : i32
    %c0_i32_1 = arith.constant 0 : i32
    return %c0_i32, %c0_i32_0 : i32, i32
  }
  func.func @transform_14(%arg0: i32) -> (i32, i32) {
    %c0_i32 = arith.constant 0 : i32
    %c0_i32_0 = arith.constant 0 : i32
    %c0_i32_1 = arith.constant 0 : i32
    return %c0_i32, %c0_i32_0 : i32, i32
  }
  func.func @transform_15(%arg0: i32) -> (i32, i32) {
    %c0_i32 = arith.constant 0 : i32
    %c0_i32_0 = arith.constant 0 : i32
    %c0_i32_1 = arith.constant 0 : i32
    return %c0_i32, %c0_i32_0 : i32, i32
  }
  func.func @transform_16(%arg0: i32) -> (i32, i32) {
    %c0_i32 = arith.constant 0 : i32
    %c0_i32_0 = arith.constant 0 : i32
    %c0_i32_1 = arith.constant 0 : i32
    return %c0_i32, %c0_i32_0 : i32, i32
  }
  func.func @transform_17(%arg0: i32) -> (i32, i32) {
    %c0_i32 = arith.constant 0 : i32
    %c0_i32_0 = arith.constant 0 : i32
    %c0_i32_1 = arith.constant 0 : i32
    return %c0_i32, %c0_i32_0 : i32, i32
  }
  func.func @transform_18(%arg0: i32) -> (i32, i32) {
    %c0_i32 = arith.constant 0 : i32
    %c0_i32_0 = arith.constant 0 : i32
    %c0_i32_1 = arith.constant 0 : i32
    return %c0_i32, %c0_i32_0 : i32, i32
  }
  func.func @transform_19(%arg0: i32) -> (i32, i32) {
    %c0_i32 = arith.constant 0 : i32
    %c0_i32_0 = arith.constant 0 : i32
    %c0_i32_1 = arith.constant 0 : i32
    return %c0_i32, %c0_i32_0 : i32, i32
  }
  func.func @transform_20(%arg0: i32) -> (i32, i32) {
    %c0_i32 = arith.constant 0 : i32
    %c0_i32_0 = arith.constant 0 : i32
    %c0_i32_1 = arith.constant 0 : i32
    return %c0_i32, %c0_i32_0 : i32, i32
  }
  func.func @transform_21(%arg0: i32) -> (i32, i32) {
    %c0_i32 = arith.constant 0 : i32
    %c0_i32_0 = arith.constant 0 : i32
    %c0_i32_1 = arith.constant 0 : i32
    return %c0_i32, %c0_i32_0 : i32, i32
  }
  func.func @transform_22(%arg0: i32) -> (i32, i32) {
    %c0_i32 = arith.constant 0 : i32
    %c0_i32_0 = arith.constant 0 : i32
    %c0_i32_1 = arith.constant 0 : i32
    return %c0_i32, %c0_i32_0 : i32, i32
  }
  func.func @transform_23(%arg0: i32) -> (i32, i32) {
    %c0_i32 = arith.constant 0 : i32
    %c0_i32_0 = arith.constant 0 : i32
    %c0_i32_1 = arith.constant 0 : i32
    return %c0_i32, %c0_i32_0 : i32, i32
  }
  func.func @transform_24(%arg0: i32) -> (i32, i32) {
    %c0_i32 = arith.constant 0 : i32
    %c0_i32_0 = arith.constant 0 : i32
    %c0_i32_1 = arith.constant 0 : i32
    return %c0_i32, %c0_i32_0 : i32, i32
  }
  func.func @transform_25(%arg0: i32) -> (i32, i32) {
    %c0_i32 = arith.constant 0 : i32
    %c0_i32_0 = arith.constant 0 : i32
    %c0_i32_1 = arith.constant 0 : i32
    return %c0_i32, %c0_i32_0 : i32, i32
  }
  func.func @transform_26(%arg0: i32) -> (i32, i32) {
    %c0_i32 = arith.constant 0 : i32
    %c0_i32_0 = arith.constant 0 : i32
    %c0_i32_1 = arith.constant 0 : i32
    return %c0_i32, %c0_i32_0 : i32, i32
  }
  func.func @transform_27(%arg0: i32) -> (i32, i32) {
    %c0_i32 = arith.constant 0 : i32
    %c0_i32_0 = arith.constant 0 : i32
    return %arg0, %c0_i32 : i32, i32
  }
}

</mosaic_0001>

<bundles_post_ra>
// kernel: tpu_custom_call.1
= control target key start
LH: loop header
LB: loop body
LE: loop exit
PB: predicated region body
PF: predicated region fallthrough
CT: control target
= control target key end

     0   :  { %s6118_s0 = inlined_call_operand.vmem [shape: f32[2,4,8,8], index: 0, kind: input, shape index: {}]   ;;  %s6119_s1 = inlined_call_operand.vmem [shape: f32[2,4,8,16], index: 1, kind: input, shape index: {}]   ;;  %s6120_s2 = inlined_call_operand.hbm [shape: f32[4,4], index: 2, kind: input, shape index: {}]   ;;  %s6121_s3 = inlined_call_operand.hbm [shape: bf16[16,32], index: 3, kind: input, shape index: {}]   ;;  %s6122_s4 = inlined_call_operand.vmem [shape: f32[1,32], index: 4, kind: input, shape index: {}]   ;;  %s6123_s5 = inlined_call_operand.hbm [shape: bf16[32,32], index: 5, kind: input, shape index: {}]   ;;  %s6124_s6 = inlined_call_operand.vmem [shape: f32[1,32], index: 6, kind: input, shape index: {}]   ;;  %s6125_s7 = inlined_call_operand.vmem [shape: f32[32,32], index: 7, kind: input, shape index: {}]   ;;  %s6126_s8 = inlined_call_operand.vmem [shape: f32[1,32], index: 8, kind: input, shape index: {}]   ;;  %s6127_s9 = inlined_call_operand.vmem [shape: f32[1,32], index: 9, kind: input, shape index: {}]   ;;  %s6128_s10 = inlined_call_operand.hbm [shape: f32[1,32], index: 10, kind: input, shape index: {}]   ;;  %s6129_s11 = inlined_call_operand.hbm [shape: f32[1,32], index: 11, kind: input, shape index: {}]   ;;  %s6130_s12 = inlined_call_operand.vmem [shape: f32[32,1024], index: 12, kind: input, shape index: {}]   ;;  %s6131_s13 = inlined_call_operand.vmem [shape: f32[32,1024], index: 13, kind: input, shape index: {}]   ;;  %s6132_s14 = inlined_call_operand.vmem [shape: bf16[1024,32], index: 14, kind: input, shape index: {}]   ;;  %s6133_s15 = inlined_call_operand.hbm [shape: f32[32,32], index: 15, kind: input, shape index: {}]   ;;  %s6134_s16 = inlined_call_operand.hbm [shape: f32[1,32], index: 16, kind: input, shape index: {}]   ;;  %s6135_s17 = inlined_call_operand.hbm [shape: f32[32,96], index: 17, kind: input, shape index: {}]   ;;  %s6136_s18 = inlined_call_operand.hbm [shape: f32[32,96], index: 18, kind: input, shape index: {}]   ;;  %s6137_s19 = inlined_call_operand.hbm [shape: f32[1,96], index: 19, kind: input, shape index: {}]   ;;  %s6138_s20 = inlined_call_operand.hbm [shape: f32[1,96], index: 20, kind: input, shape index: {}]   ;;  %s6139_s21 = inlined_call_operand.vmem [shape: f32[32,32], index: 21, kind: input, shape index: {}]   ;;  %s6140_s22 = inlined_call_operand.hbm [shape: f32[1,32], index: 22, kind: input, shape index: {}]   ;;  %s6141_s23 = inlined_call_operand.hbm [shape: f32[32,32], index: 23, kind: input, shape index: {}]   ;;  %s6142_s24 = inlined_call_operand.vmem [shape: f32[1,32], index: 24, kind: input, shape index: {}]   ;;  %s6143_s25 = inlined_call_operand.vmem [shape: f32[32,2], index: 25, kind: input, shape index: {}]   ;;  %s6144_s26 = inlined_call_operand.vmem [shape: f32[1,2], index: 26, kind: input, shape index: {}]   ;;  %s6145_s27 = inlined_call_operand.hbm [shape: f32[4,4], index: 27, kind: output, shape index: {}]  }
   0x1   :  { %6186 = sst [smem:[#allocation68_spill]] %s6118_s0 }
   0x2   :  { %6187 = sst [smem:[#allocation69_spill]] %s6119_s1 }
   0x3   :  { %6188 = sst [smem:[#allocation70_spill]] %s6120_s2 }
   0x4   :  { %6189 = sst [smem:[#allocation71_spill]] %s6121_s3 }
   0x5   :  { %6190 = sst [smem:[#allocation72_spill]] %s6122_s4 }
   0x6   :  { %6191 = sst [smem:[#allocation73_spill]] %s6123_s5 }
   0x7   :  { %6192 = sst [smem:[#allocation74_spill]] %s6124_s6 }
   0x8   :  { %6193 = sst [smem:[#allocation75_spill]] %s6125_s7 }
   0x9   :  { %6194 = sst [smem:[#allocation76_spill]] %s6126_s8 }
   0xa   :  { %6195 = sst [smem:[#allocation77_spill]] %s6127_s9 }
   0xb   :  { %6196 = sst [smem:[#allocation78_spill]] %s6128_s10 }
   0xc   :  { %6197 = sst [smem:[#allocation79_spill]] %s6129_s11 }
   0xd   :  { %32 = vsyncpa [#allocation3], 0 }
   0xe   :  { %33 = vsyncpa [#allocation6], 0 }
   0xf   :  { %34 = vsyncpa [#allocation9], 0 }
  0x10   :  { %35 = vsyncpa [#allocation12], 0 }
  0x11   :  { %36 = vsyncpa [#allocation15], 0 }
  0x12   :  { %37 = vsyncpa [#allocation18], 0 }
  0x13   :  { %38 = vsyncpa [#allocation21], 0 }
  0x14   :  { %39 = vsyncpa [#allocation4], 0  ;;  %s4557_s7 = smov [#allocation5]  }
  0x15   :  { %s59_s4 = sshll.u32 %s4557_s7, 4  ;;  %s60_s4 = int_to_ptr.vmem [resolvable:$true] %s59_s4 }
  0x16   :  { %s4269_s8 = scalar_lea.vmem %s60_s4, 128  ;;  %p4274_p1 = scmp.lt.s32.totalorder %s60_s4, %s60_s4 }
  0x17   :  { %p4270_p0 = scmp.ne.s32.totalorder %s60_s4, %s4269_s8  ;;  %p4275_p2 = scmp.lt.s32.totalorder %s4269_s8, %s4269_s8 }
  0x19   :  { %p4276_p3 = por %p4275_p2, %p4274_p1 }
  0x1b   :  { %p4277_p4 = pnand %p4276_p3, %p4270_p0 }
  0x1d   :  { %4280 = shalt.err (!%p4277_p4)
}
  0x1e   :  { %s4558_s30 = smov 64   ;;  %s4559_s9 = smov 4  }
  0x1f   :  { %s6198_s0 = sld [smem:[#allocation71_spill]]  ;;  %s4560_s10 = smov [#allocation8]  }
  0x20   :  { %s94_s29 = sshll.u32 %s4560_s10, 4  ;;  %s4561_s1 = smov [#allocation11]   ;;  %s95_s29 = int_to_ptr.vmem [resolvable:$true] %s94_s29 }
  0x21   :  { %s119_s6 = sshll.u32 %s4561_s1, 4  ;;  %s4289_s11 = scalar_lea.vmem %s95_s29, 16  ;;  %s120_s6 = int_to_ptr.vmem [resolvable:$true] %s119_s6 }
  0x22   :  { %p4290_p5 = scmp.ne.s32.totalorder %s95_s29, %s4289_s11  ;;  %s4293_s2 = scalar_lea.vmem %s95_s29, 32 }
  0x23   :  { %p4294_p6 = scmp.lt.s32.totalorder %s95_s29, %s95_s29  ;;  %p4295_p7 = scmp.lt.s32.totalorder %s4293_s2, %s4289_s11 }
  0x25   :  { %65 = dma.hbm_to_vmem [thread:$0]  %s6198_s0, 128, %s60_s4, [#allocation6], %s4558_s30, %s4558_s30, %s4559_s9  }
  0x26   :  { %p4296_p8 = por %p4295_p7, %p4294_p6 }
  0x28   :  { %p4297_p9 = pnand %p4296_p8, %p4290_p5 }
  0x2a   :  { %4300 = shalt.err (!%p4297_p9)
}
  0x2b   :  { %s6199_s8 = sld [smem:[#allocation78_spill]]  ;;  %s4309_s5 = scalar_lea.vmem %s120_s6, 512 }
  0x2c   :  { %p4310_p10 = scmp.ne.s32.totalorder %s120_s6, %s4309_s5  ;;  %p4314_p11 = scmp.lt.s32.totalorder %s120_s6, %s120_s6 }
  0x2d   :  { %p4315_p12 = scmp.lt.s32.totalorder %s4309_s5, %s4309_s5 }
  0x2f   :  { %p4316_p13 = por %p4315_p12, %p4314_p11 }
  0x31   :  { %97 = dma.hbm_to_vmem [thread:$0]  %s6199_s8, 16, %s95_s29, [#allocation9]  }
  0x32   :  { %p4317_p0 = pnand %p4316_p13, %p4310_p10 }
  0x34   :  { %4320 = shalt.err (!%p4317_p0)
}
  0x35   :  { %s4562_s4 = smov 128   ;;  %s4563_s28 = smov 8  }
  0x36   :  { %125 = dma.hbm_to_vmem [thread:$0]  %s6133_s15, 512, %s120_s6, [#allocation12], %s4562_s4, %s4562_s4, %s4563_s28  }
  0x37   :  { %s4564_s1 = smov [#allocation14]   ;;  %s4565_s29 = smov [#allocation17]  }
  0x38   :  { %s141_s11 = sshll.u32 %s4564_s1, 4  ;;  %s166_s2 = sshll.u32 %s4565_s29, 4  ;;  %s142_s11 = int_to_ptr.vmem [resolvable:$true] %s141_s11  ;;  %s167_s2 = int_to_ptr.vmem [resolvable:$true] %s166_s2 }
  0x39   :  { %s4329_s3 = scalar_lea.vmem %s142_s11, 512  ;;  %p4334_p2 = scmp.lt.s32.totalorder %s142_s11, %s142_s11 }
  0x3a   :  { %p4330_p1 = scmp.ne.s32.totalorder %s142_s11, %s4329_s3  ;;  %p4335_p3 = scmp.lt.s32.totalorder %s4329_s3, %s4329_s3 }
  0x3c   :  { %p4336_p4 = por %p4335_p3, %p4334_p2 }
  0x3e   :  { %p4337_p5 = pnand %p4336_p4, %p4330_p1 }
  0x40   :  { %4340 = shalt.err (!%p4337_p5)
}
  0x41   :  { %147 = dma.hbm_to_vmem [thread:$0]  %s6135_s17, 512, %s142_s11, [#allocation15], %s4562_s4, %s4562_s4, %s4563_s28  }
  0x42   :  { %s4349_s15 = scalar_lea.vmem %s167_s2, 16  ;;  %s4353_s6 = scalar_lea.vmem %s167_s2, 32 }
  0x43   :  { %p4350_p6 = scmp.ne.s32.totalorder %s167_s2, %s4349_s15  ;;  %p4354_p7 = scmp.lt.s32.totalorder %s167_s2, %s167_s2 }
  0x44   :  { %p4355_p8 = scmp.lt.s32.totalorder %s4353_s6, %s4349_s15 }
  0x46   :  { %p4356_p9 = por %p4355_p8, %p4354_p7 }
  0x48   :  { %p4357_p10 = pnand %p4356_p9, %p4350_p6 }
  0x4a   :  { %4360 = shalt.err (!%p4357_p10)
}
  0x4b   :  { %169 = dma.hbm_to_vmem [thread:$0]  %s6137_s19, 16, %s167_s2, [#allocation18]  }
  0x4c   :  { %s4566_s10 = smov [#allocation20]   ;;  %s4567_s29 = smov [#allocation2]  }
  0x4d   :  { %s188_s1 = sshll.u32 %s4566_s10, 4  ;;  %s50_s3 = sshll.u32 %s4567_s29, 4  ;;  %s189_s1 = int_to_ptr.vmem [resolvable:$true] %s188_s1  ;;  %s51_s3 = int_to_ptr.vmem [resolvable:$true] %s50_s3 }
  0x4e   :  { %s4369_s7 = scalar_lea.vmem %s189_s1, 16  ;;  %s4373_s17 = scalar_lea.vmem %s189_s1, 32 }
  0x4f   :  { %p4370_p11 = scmp.ne.s32.totalorder %s189_s1, %s4369_s7  ;;  %p4374_p12 = scmp.lt.s32.totalorder %s189_s1, %s189_s1 }
  0x50   :  { %p4375_p13 = scmp.lt.s32.totalorder %s4373_s17, %s4369_s7 }
  0x52   :  { %p4376_p0 = por %p4375_p13, %p4374_p12 }
  0x54   :  { %p4377_p1 = pnand %p4376_p0, %p4370_p11 }
  0x56   :  { %4380 = shalt.err (!%p4377_p1)
}
  0x57   :  { %191 = dma.hbm_to_vmem [thread:$0]  %s6140_s22, 16, %s189_s1, [#allocation21]  }
  0x58   :  { %s4389_s15 = scalar_lea.vmem %s51_s3, 64  ;;  %p4394_p3 = scmp.lt.s32.totalorder %s51_s3, %s51_s3 }
  0x59   :  { %p4390_p2 = scmp.ne.s32.totalorder %s51_s3, %s4389_s15  ;;  %p4395_p4 = scmp.lt.s32.totalorder %s4389_s15, %s4389_s15 }
  0x5b   :  { %p4396_p5 = por %p4395_p4, %p4394_p3 }
  0x5d   :  { %p4397_p6 = pnand %p4396_p5, %p4390_p2 }
  0x5f   :  { %4400 = shalt.err (!%p4397_p6)
}
  0x60   :  { %s6200_s6 = sld [smem:[#allocation70_spill]]  ;;  %s4568_s5 = smov [#allocation7]  }
  0x61   :  { %s73_s0 = sshll.u32 %s4568_s5, 4  ;;  %s4569_s10 = smov [#allocation10]   ;;  %s74_s0 = int_to_ptr.vmem [resolvable:$true] %s73_s0 }
  0x62   :  { %s104_s29 = sshll.u32 %s4569_s10, 4  ;;  %s4409_s7 = scalar_lea.vmem %s74_s0, 256  ;;  %s105_s29 = int_to_ptr.vmem [resolvable:$true] %s104_s29 }
  0x63   :  { %p4410_p7 = scmp.ne.s32.totalorder %s74_s0, %s4409_s7  ;;  %p4414_p8 = scmp.lt.s32.totalorder %s74_s0, %s74_s0 }
  0x64   :  { %p4415_p9 = scmp.lt.s32.totalorder %s4409_s7, %s4409_s7 }
  0x66   :  { %53 = dma.hbm_to_vmem [thread:$0]  %s6200_s6, 64, %s51_s3, [#allocation3]  }
  0x67   :  { %p4416_p10 = por %p4415_p9, %p4414_p8 }
  0x69   :  { %p4417_p11 = pnand %p4416_p10, %p4410_p7 }
  0x6b   :  { %4420 = shalt.err (!%p4417_p11)
}
  0x6c   :  { %s6201_s17 = sld [smem:[#allocation73_spill]]  ;;  %s4429_s3 = scalar_lea.vmem %s105_s29, 16 }
  0x6d   :  { %p4430_p12 = scmp.ne.s32.totalorder %s105_s29, %s4429_s3  ;;  %s4433_s11 = scalar_lea.vmem %s105_s29, 32 }
  0x6e   :  { %p4434_p13 = scmp.lt.s32.totalorder %s105_s29, %s105_s29  ;;  %p4435_p0 = scmp.lt.s32.totalorder %s4433_s11, %s4429_s3 }
  0x70   :  { %p4436_p1 = por %p4435_p0, %p4434_p13 }
  0x72   :  { %79 = dma.hbm_to_vmem [thread:$0]  %s6201_s17, 256, %s74_s0, [#allocation6], %s4558_s30, %s4558_s30, %s4559_s9  }
  0x73   :  { %p4437_p2 = pnand %p4436_p1, %p4430_p12 }
  0x75   :  { %4440 = shalt.err (!%p4437_p2)
}
  0x76   :  { %s6202_s19 = sld [smem:[#allocation79_spill]]  ;;  %s4570_s2 = smov [#allocation13]  }
  0x77   :  { %s132_s6 = sshll.u32 %s4570_s2, 4  ;;  %s4571_s5 = smov [#allocation16]   ;;  %s133_s6 = int_to_ptr.vmem [resolvable:$true] %s132_s6 }
  0x78   :  { %s153_s10 = sshll.u32 %s4571_s5, 4  ;;  %s4449_s7 = scalar_lea.vmem %s133_s6, 16  ;;  %s154_s10 = int_to_ptr.vmem [resolvable:$true] %s153_s10 }
  0x79   :  { %p4450_p3 = scmp.ne.s32.totalorder %s133_s6, %s4449_s7  ;;  %s4453_s9 = scalar_lea.vmem %s133_s6, 32 }
  0x7a   :  { %p4454_p4 = scmp.lt.s32.totalorder %s133_s6, %s133_s6  ;;  %p4455_p5 = scmp.lt.s32.totalorder %s4453_s9, %s4449_s7 }
  0x7c   :  { %107 = dma.hbm_to_vmem [thread:$0]  %s6202_s19, 16, %s105_s29, [#allocation9]  }
  0x7d   :  { %p4456_p6 = por %p4455_p5, %p4454_p4 }
  0x7f   :  { %p4457_p7 = pnand %p4456_p6, %p4450_p3 }
  0x81   :  { %4460 = shalt.err (!%p4457_p7)
}
  0x82   :  { %135 = dma.hbm_to_vmem [thread:$0]  %s6134_s16, 16, %s133_s6, [#allocation12]  }
  0x83   :  { %s4469_s1 = scalar_lea.vmem %s154_s10, 512  ;;  %p4474_p9 = scmp.lt.s32.totalorder %s154_s10, %s154_s10 }
  0x84   :  { %p4470_p8 = scmp.ne.s32.totalorder %s154_s10, %s4469_s1  ;;  %p4475_p10 = scmp.lt.s32.totalorder %s4469_s1, %s4469_s1 }
  0x86   :  { %p4476_p11 = por %p4475_p10, %p4474_p9 }
  0x88   :  { %p4477_p12 = pnand %p4476_p11, %p4470_p8 }
  0x8a   :  { %4480 = shalt.err (!%p4477_p12)
}
  0x8b   :  { %159 = dma.hbm_to_vmem [thread:$0]  %s6136_s18, 512, %s154_s10, [#allocation15], %s4562_s4, %s4562_s4, %s4563_s28  }
  0x8c   :  { %s4572_s3 = smov [#allocation19]   ;;  %s4573_s8 = smov [#allocation22]  }
  0x8d   :  { %s176_s11 = sshll.u32 %s4572_s3, 4  ;;  %s197_s16 = sshll.u32 %s4573_s8, 4  ;;  %s177_s11 = int_to_ptr.vmem [resolvable:$true] %s176_s11  ;;  %s198_s16 = int_to_ptr.vmem [resolvable:$true] %s197_s16 }
  0x8e   :  { %s4489_s15 = scalar_lea.vmem %s177_s11, 16  ;;  %s4493_s19 = scalar_lea.vmem %s177_s11, 32 }
  0x8f   :  { %p4490_p13 = scmp.ne.s32.totalorder %s177_s11, %s4489_s15  ;;  %p4494_p0 = scmp.lt.s32.totalorder %s177_s11, %s177_s11 }
  0x90   :  { %p4495_p1 = scmp.lt.s32.totalorder %s4493_s19, %s4489_s15 }
  0x92   :  { %p4496_p2 = por %p4495_p1, %p4494_p0 }
  0x94   :  { %p4497_p3 = pnand %p4496_p2, %p4490_p13 }
  0x96   :  { %4500 = shalt.err (!%p4497_p3)
}
  0x97   :  { %179 = dma.hbm_to_vmem [thread:$0]  %s6138_s20, 16, %s177_s11, [#allocation18]  }
  0x98   :  { %s4509_s5 = scalar_lea.vmem %s198_s16, 512  ;;  %p4514_p5 = scmp.lt.s32.totalorder %s198_s16, %s198_s16 }
  0x99   :  { %p4510_p4 = scmp.ne.s32.totalorder %s198_s16, %s4509_s5  ;;  %p4515_p6 = scmp.lt.s32.totalorder %s4509_s5, %s4509_s5 }
  0x9b   :  { %p4516_p7 = por %p4515_p6, %p4514_p5 }
  0x9d   :  { %p4517_p8 = pnand %p4516_p7, %p4510_p4 }
  0x9f   :  { %4520 = shalt.err (!%p4517_p8)
}
  0xa0   :  { %203 = dma.hbm_to_vmem [thread:$0]  %s6141_s23, 512, %s198_s16, [#allocation21], %s4562_s4, %s4562_s4, %s4563_s28  }
  0xa1   :  { %4541 = dma.done.wait [#allocation3], 64  }
  0xa2   :  { %4542 = vsyncadd [#allocation3], 4294967232 }
  0xa3   :  { %4543 = dma.done.wait [#allocation6], 384  }
  0xa4   :  { %4544 = vsyncadd [#allocation6], 4294966912 }
  0xa5   :  { %4545 = dma.done.wait [#allocation9], 32  }
  0xa6   :  { %4546 = vsyncadd [#allocation9], 4294967264 }
  0xa7   :  { %4547 = dma.done.wait [#allocation12], 528  }
  0xa8   :  { %4548 = vsyncadd [#allocation12], 4294966768 }
  0xa9   :  { %4549 = dma.done.wait [#allocation15], 1024  }
  0xaa   :  { %4550 = vsyncadd [#allocation15], 4294966272 }
  0xab   :  { %4551 = dma.done.wait [#allocation18], 32  }
  0xac   :  { %4552 = vsyncadd [#allocation18], 4294967264 }
  0xad   :  { %4553 = dma.done.wait [#allocation21], 528  }
  0xae   :  { %4554 = vsyncadd [#allocation21], 4294966768  ;;  %v4574_v0 = vmov 1   ;;  %v6149_v1 = vmov 0   ;;  %s6203_s4 = sld [smem:[#allocation68_spill]]  ;;  %v4188_v3 = vld [vmem:[#allocation5] sm:$0xff]  }
  0xaf   :  { %4153 = vset.pattern.permute.xlu1 %v4574_v0  ;;  %4152 = vset.pattern.permute.xlu0 %v6149_v1  ;;  %s6204_s22 = sld [smem:[#allocation69_spill]]  ;;  %vm542_vm0 = vcmask 130048   ;;  %v4576_v21 = vmov 2   ;;  %v4577_v24 = vmov 3   ;;  %v4578_v25 = vmov 4   ;;  %v4189_v36 = vld [vmem:[#allocation7 + $0x8] sm:$0xff]  }
  0xb0   :  { %4020 = vmatprep.subr.bf16.mxu0 %v4188_v3  ;;  %v4579_v26 = vmov 7   ;;  %v4580_v27 = vmov 5   ;;  %v4581_v28 = vmov 6   ;;  %v4190_v38 = vld [vmem:[#allocation7] sm:$0xff]   ;;  %4030 = vmatprep.subr.bf16.mxu1 %v4189_v36  ;;  %s6237_s16 = sld [smem:[#allocation72_spill]]  ;;  %vm1039_vm1 = vcmask 261120  }
  0xb1   :  { %4021 = vmatpush3.bf16.msra.mxu0 %v4188_v3  ;;  %4031 = vmatpush3.bf16.msra.mxu1 %v4189_v36  ;;  %v620_v3 = vlaneseq  ;;  %s4582_s15 = smov 127   ;;  %s4583_s19 = smov 126   ;;  %vm4585_vm2 = vmmov 0   ;;  %vm1585_vm3 = vcmask 1043456   ;;  %vm1612_vm4 = vcmask 1041409  }
  0xb2   :  { %4032 = vmatprep.subr.bf16.mxu1 %v4190_v38  ;;  %s6243_s5 = sld [smem:[#allocation75_spill]]  ;;  %vm1614_vm5 = vcmask 1042434   ;;  %vm1616_vm6 = vcmask 1043459   ;;  %vm1618_vm7 = vcmask 1044484   ;;  %vm1620_vm8 = vcmask 1045509  }
  0xb3   :  { %s6259_s6 = sld [smem:[#allocation74_spill]]  ;;  %vm1622_vm9 = vcmask 1046534   ;;  %vm1624_vm10 = vcmask 1047559   ;;  %vm3755_vm11 = vcmask 15360   ;;  %vm3757_vm12 = vcmask 27648  }
  0xb4   :  { %v4792_v2 = vld [vmem:[%s6203_s4] sm:$0xff]  ;;  %v4799_v4 = vld [vmem:[%s6203_s4 + $0x8] sm:$0xff]  ;;  %v4824_v13 = vld [vmem:[%s6203_s4 + $0x10] sm:$0xff]  ;;  %s6282_s20 = sld [smem:[#allocation77_spill]] }
  0xb5   :  { %299 = vperm.xlu1 %4153, %v4792_v2   ;;  %260 = vperm.xlu0 %4152, %v4792_v2   ;;  %v522_v5 = vld [vmem:[%s6204_s22] sm:$0xff]  ;;  %v523_v6 = vld [vmem:[%s6204_s22 + $0x8] sm:$0xff]  ;;  %v524_v7 = vld [vmem:[%s6204_s22 + $0x10] sm:$0xff] }
  0xb6   :  { %v525_v8 = vld [vmem:[%s6204_s22 + $0x18] sm:$0xff]  ;;  %v530_v9 = vpack.c.bf16 %v523_v6, %v522_v5  ;;  %v526_v11 = vld [vmem:[%s6204_s22 + $0x20] sm:$0xff]  ;;  %v527_v12 = vld [vmem:[%s6204_s22 + $0x28] sm:$0xff]  ;;  %4033 = vmatpush3.bf16.msra.mxu1 %v4190_v38  ;;  %v621_v5 = vshrl.u32 %v620_v3, 7 }
  0xb7   :  { %v531_v10 = vpack.c.bf16 %v525_v8, %v524_v7  ;;  %v4829_v14 = vld [vmem:[%s6203_s4 + $0x18] sm:$0xff]  ;;  %v532_v15 = vpack.c.bf16 %v527_v12, %v526_v11  ;;  %v528_v16 = vld [vmem:[%s6204_s22 + $0x30] sm:$0xff]  ;;  %v4842_v18 = vld [vmem:[%s6203_s4 + $0x20] sm:$0xff] }
  0xb8   :  { %4022 = vmatprep.mubr.msk.bf16.mxu0 %vm542_vm0, %v530_v9  ;;  %v529_v17 = vld [vmem:[%s6204_s22 + $0x38] sm:$0xff]  ;;  %v4851_v20 = vld [vmem:[%s6203_s4 + $0x30] sm:$0xff]  ;;  %v4864_v22 = vld [vmem:[%s6203_s4 + $0x28] sm:$0xff]  ;;  %v5026_v8 = vsub.s32 0, %v621_v5  ;;  %v5028_v9 = vsub.s32 1, %v621_v5 }
  0xb9   :  { %303 = vperm.xlu1 %4153, %v4799_v4   ;;  %265 = vperm.xlu0 %4152, %v4799_v4   ;;  %v533_v19 = vpack.c.bf16 %v529_v17, %v528_v16  ;;  %v4871_v23 = vld [vmem:[%s6203_s4 + $0x38] sm:$0xff] }
  0xba   :  { %4023 = vmatmul.mubr.msk.bf16.vlgmr.msra.gmra.mxu0 %vm542_vm0, %v531_v10 }
  0xbb   :  { %4026 = vmatprep.mubr.msk.bf16.mxu0 %vm542_vm0, %v532_v15 }
  0xbd   :  { %4154 = vset.pattern.permute.xlu1 %v6149_v1  ;;  %270 = vperm.xlu0 %4152, %v4824_v13  }
  0xbe   :  { %275 = vperm.xlu1 %4154, %v4829_v14  }
  0xc1   :  { %280 = vperm.xlu0 %4152, %v4842_v18  }
  0xc2   :  { %4155 = vset.pattern.permute.xlu1 %v4574_v0  ;;  %4027 = vmatmul.mubr.msk.bf16.gmra.mxu0 %vm542_vm0, %v533_v19 }
  0xc3   :  { %311 = vperm.xlu1 %4155, %v4829_v14  }
  0xc5   :  { %290 = vperm.xlu0 %4152, %v4851_v20  }
  0xc7   :  { %4156 = vset.pattern.permute.xlu1 %v4576_v21 }
  0xc8   :  { %331 = vperm.xlu1 %4156, %v4792_v2  }
  0xc9   :  { %4162 = vset.pattern.permute.xlu0 %v4574_v0 }
  0xca   :  { %307 = vperm.xlu0 %4162, %v4824_v13  }
  0xcc   :  { %339 = vperm.xlu1 %4156, %v4824_v13  }
  0xce   :  { %319 = vperm.xlu0 %4162, %v4864_v22  }
  0xd0   :  { %343 = vperm.xlu1 %4156, %v4829_v14  }
  0xd2   :  { %327 = vperm.xlu0 %4162, %v4871_v23  }
  0xd4   :  { %4157 = vset.pattern.permute.xlu1 %v4577_v24 }
  0xd5   :  { %367 = vperm.xlu1 %4157, %v4799_v4  }
  0xd6   :  { %4165 = vset.pattern.permute.xlu0 %v4576_v21 }
  0xd7   :  { %335 = vperm.xlu0 %4165, %v4799_v4  }
  0xd9   :  { %371 = vperm.xlu1 %4157, %v4824_v13  }
  0xdb   :  { %347 = vperm.xlu0 %4165, %v4842_v18  }
  0xdd   :  { %4158 = vset.pattern.permute.xlu1 %v4578_v25 }
  0xde   :  { %395 = vperm.xlu1 %4158, %v4792_v2  }
  0xdf   :  { %4167 = vset.pattern.permute.xlu0 %v4577_v24 }
  0xe0   :  { %363 = vperm.xlu0 %4167, %v4792_v2  }
  0xe2   :  { %403 = vperm.xlu1 %4158, %v4824_v13  }
  0xe4   :  { %375 = vperm.xlu0 %4167, %v4829_v14  }
  0xe6   :  { %407 = vperm.xlu1 %4158, %v4829_v14  }
  0xe8   :  { %379 = vperm.xlu0 %4167, %v4842_v18  }
  0xea   :  { %4159 = vset.pattern.permute.xlu1 %v6149_v1 }
  0xeb   :  { %285 = vperm.xlu1 %4159, %v4864_v22  }
  0xec   :  { %4174 = vset.pattern.permute.xlu0 %v4579_v26 }
  0xed   :  { %495 = vperm.xlu0 %4174, %v4799_v4  }
  0xef   :  { %4160 = vset.pattern.permute.xlu1 %v4574_v0 }
  0xf0   :  { %315 = vperm.xlu1 %4160, %v4842_v18  }
  0xf1   :  { %499 = vperm.xlu0 %4174, %v4824_v13  }
  0xf4   :  { %4161 = vset.pattern.permute.xlu1 %v4580_v27 }
  0xf5   :  { %427 = vperm.xlu1 %4161, %v4792_v2   ;;  %4176 = vset.pattern.permute.xlu0 %v4578_v25 }
  0xf6   :  { %399 = vperm.xlu0 %4176, %v4799_v4  }
  0xf9   :  { %431 = vperm.xlu1 %4161, %v4799_v4  }
  0xfa   :  { %411 = vperm.xlu0 %4176, %v4842_v18  }
  0xfd   :  { %4163 = vset.pattern.permute.xlu1 %v6149_v1 }
  0xfe   :  { %295 = vperm.xlu1 %4163, %v4871_v23   ;;  %423 = vperm.xlu0 %4176, %v4871_v23  }
 0x102   :  { %4164 = vset.pattern.permute.xlu1 %v4574_v0  ;;  %4180 = vset.pattern.permute.xlu0 %v4580_v27 }
 0x103   :  { %323 = vperm.xlu1 %4164, %v4851_v20   ;;  %447 = vperm.xlu0 %4180, %v4864_v22  }
 0x107   :  { %4166 = vset.pattern.permute.xlu1 %v4580_v27  ;;  %4181 = vset.pattern.permute.xlu0 %v4581_v28 }
 0x108   :  { %435 = vperm.xlu1 %4166, %v4824_v13   ;;  %463 = vperm.xlu0 %4181, %v4799_v4  }
 0x10c   :  { %439 = vperm.xlu1 %4166, %v4829_v14   ;;  %467 = vperm.xlu0 %4181, %v4824_v13  }
 0x110   :  { %4168 = vset.pattern.permute.xlu1 %v4576_v21  ;;  %475 = vperm.xlu0 %4181, %v4842_v18  }
 0x111   :  { %351 = vperm.xlu1 %4168, %v4864_v22  }
 0x114   :  { %487 = vperm.xlu0 %4181, %v4871_v23  }
 0x115   :  { %4169 = vset.pattern.permute.xlu1 %v4581_v28 }
 0x116   :  { %459 = vperm.xlu1 %4169, %v4792_v2  }
 0x118   :  { %4184 = vset.pattern.permute.xlu0 %v4579_v26 }
 0x119   :  { %511 = vperm.xlu0 %4184, %v4864_v22  }
 0x11a   :  { %4170 = vset.pattern.permute.xlu1 %v4576_v21 }
 0x11b   :  { %355 = vperm.xlu1 %4170, %v4851_v20  }
 0x11d   :  { %4185 = vset.pattern.permute.xlu0 %v4574_v0 }
 0x11f   :  { %359 = vperm.xlu1 %4170, %v4871_v23  }
 0x123   :  { %4171 = vset.pattern.permute.xlu1 %v4581_v28 }
 0x124   :  { %471 = vperm.xlu1 %4171, %v4829_v14  }
 0x128   :  { %4172 = vset.pattern.permute.xlu1 %v4577_v24 }
 0x129   :  { %383 = vperm.xlu1 %4172, %v4864_v22  }
 0x12d   :  { %4173 = vset.pattern.permute.xlu1 %v4579_v26 }
 0x12e   :  { %491 = vperm.xlu1 %4173, %v4792_v2  }
 0x130   :  { %v4931_v29 = vpop.permute.xlu1 %299  ;;  %v4933_v30 = vpop.permute.xlu0 %260 }
 0x131   :  { %6205 = vst [vmem:[#allocation32_spill] sm:$0xff] %v4931_v29  ;;  %6206 = vst [vmem:[#allocation33_spill] sm:$0xff] %v4933_v30 }
 0x132   :  { %4175 = vset.pattern.permute.xlu1 %v4577_v24 }
 0x133   :  { %387 = vperm.xlu1 %4175, %v4851_v20  }
 0x134   :  { %v4937_v31 = vpop.permute.xlu1 %303  ;;  %v4939_v32 = vpop.permute.xlu0 %265 }
 0x135   :  { %6207 = vst [vmem:[#allocation34_spill] sm:$0xff] %v4937_v31  ;;  %6208 = vst [vmem:[#allocation35_spill] sm:$0xff] %v4939_v32 }
 0x137   :  { %391 = vperm.xlu1 %4175, %v4871_v23  }
 0x138   :  { %v4944_v34 = vpop.permute.xlu0 %270 }
 0x139   :  { %v4942_v33 = vpop.permute.xlu1 %275  ;;  %6209 = vst [vmem:[#allocation36_spill] sm:$0xff] %v4944_v34 }
 0x13b   :  { %4177 = vset.pattern.permute.xlu1 %v4579_v26 }
 0x13c   :  { %503 = vperm.xlu1 %4177, %v4829_v14   ;;  %v4950_v37 = vpop.permute.xlu0 %280  ;;  %v5038_v14 = vsub.s32 2, %v621_v5 }
 0x13d   :  { %6210 = vst [vmem:[#allocation37_spill] sm:$0xff] %v4950_v37 }
 0x13e   :  { %v4948_v35 = vpop.permute.xlu1 %311 }
 0x140   :  { %4178 = vset.pattern.permute.xlu1 %v4578_v25  ;;  %v4957_v40 = vpop.permute.xlu0 %290 }
 0x141   :  { %415 = vperm.xlu1 %4178, %v4864_v22  }
 0x143   :  { %v4954_v39 = vpop.permute.xlu1 %331 }
 0x144   :  { %6211 = vst [vmem:[#allocation38_spill] sm:$0xff] %v4954_v39 }
 0x145   :  { %419 = vperm.xlu1 %4178, %v4851_v20   ;;  %v4965_v43 = vpop.permute.xlu0 %307 }
 0x146   :  { %6213 = vst [vmem:[#allocation40_spill] sm:$0xff] %v4965_v43 }
 0x147   :  { %v4959_v41 = vpop.permute.xlu1 %339 }
 0x148   :  { %6212 = vst [vmem:[#allocation39_spill] sm:$0xff] %v4959_v41 }
 0x149   :  { %4179 = vset.pattern.permute.xlu1 %v4580_v27  ;;  %v4970_v45 = vpop.permute.xlu0 %319 }
 0x14a   :  { %443 = vperm.xlu1 %4179, %v4842_v18   ;;  %6215 = vst [vmem:[#allocation42_spill] sm:$0xff] %v4970_v45 }
 0x14b   :  { %v4963_v42 = vpop.permute.xlu1 %343 }
 0x14d   :  { %v4975_v47 = vpop.permute.xlu0 %327 }
 0x14e   :  { %451 = vperm.xlu1 %4179, %v4851_v20   ;;  %6216 = vst [vmem:[#allocation43_spill] sm:$0xff] %v4975_v47 }
 0x150   :  { %v4968_v44 = vpop.permute.xlu1 %367 }
 0x151   :  { %6214 = vst [vmem:[#allocation41_spill] sm:$0xff] %v4968_v44 }
 0x152   :  { %455 = vperm.xlu1 %4179, %v4871_v23   ;;  %v4981_v49 = vpop.permute.xlu0 %335 }
 0x153   :  { %6217 = vst [vmem:[#allocation44_spill] sm:$0xff] %v4981_v49 }
 0x154   :  { %v4973_v46 = vpop.permute.xlu1 %371 }
 0x156   :  { %4182 = vset.pattern.permute.xlu1 %v4581_v28  ;;  %v4989_v52 = vpop.permute.xlu0 %347 }
 0x157   :  { %479 = vperm.xlu1 %4182, %v4864_v22   ;;  %6218 = vst [vmem:[#allocation45_spill] sm:$0xff] %v4989_v52 }
 0x159   :  { %v4978_v48 = vpop.permute.xlu1 %395 }
 0x15b   :  { %483 = vperm.xlu1 %4182, %v4851_v20   ;;  %v4995_v54 = vpop.permute.xlu0 %363 }
 0x15c   :  { %6220 = vst [vmem:[#allocation47_spill] sm:$0xff] %v4995_v54 }
 0x15d   :  { %v4983_v50 = vpop.permute.xlu1 %403 }
 0x15f   :  { %4183 = vset.pattern.permute.xlu1 %v4579_v26  ;;  %v5000_v56 = vpop.permute.xlu0 %375  ;;  %v5057_v26 = vsub.s32 4, %v621_v5 }
 0x160   :  { %507 = vperm.xlu1 %4183, %v4842_v18  }
 0x161   :  { %v4987_v51 = vpop.permute.xlu1 %407 }
 0x163   :  { %v5006_v59 = vpop.permute.xlu0 %379 }
 0x164   :  { %515 = vperm.xlu1 %4183, %v4851_v20   ;;  %6223 = vst [vmem:[#allocation50_spill] sm:$0xff] %v5006_v59  ;;  %v5048_v20 = vsub.s32 3, %v621_v5 }
 0x166   :  { %v4992_v53 = vpop.permute.xlu1 %285 }
 0x167   :  { %6219 = vst [vmem:[#allocation46_spill] sm:$0xff] %v4992_v53 }
 0x168   :  { %519 = vperm.xlu1 %4183, %v4871_v23   ;;  %v5010_v61 = vpop.permute.xlu0 %495 }
 0x169   :  { %6225 = vst [vmem:[#allocation52_spill] sm:$0xff] %v5010_v61 }
 0x16b   :  { %v4997_v55 = vpop.permute.xlu1 %315 }
 0x16c   :  { %6221 = vst [vmem:[#allocation48_spill] sm:$0xff] %v4997_v55  ;;  %4186 = vset.pattern.permute.xlu1 %v4574_v0  ;;  %v5018_v0 = vpop.permute.xlu0 %499 }
 0x170   :  { %v5002_v57 = vpop.permute.xlu1 %427 }
 0x171   :  { %v5030_v10 = vpop.permute.xlu0 %399 }
 0x172   :  { %6226 = vst [vmem:[#allocation53_spill] sm:$0xff] %v5030_v10 }
 0x174   :  { %v5004_v58 = vpop.permute.xlu1 %431 }
 0x175   :  { %6222 = vst [vmem:[#allocation49_spill] sm:$0xff] %v5004_v58  ;;  %v5046_v19 = vpop.permute.xlu0 %411 }
 0x176   :  { %6229 = vst [vmem:[#allocation56_spill] sm:$0xff] %v5046_v19 }
 0x179   :  { %v5008_v60 = vpop.permute.xlu1 %295  ;;  %v5061_v28 = vpop.permute.xlu0 %423 }
 0x17a   :  { %6224 = vst [vmem:[#allocation51_spill] sm:$0xff] %v5008_v60  ;;  %v5012_v62 = vpop.f32.mrf.mxu0  ;;  %6230 = vst [vmem:[#allocation57_spill] sm:$0xff] %v5061_v28 }
 0x17c   :  { %v5014_v63 = vpop.f32.mrf.mxu0 }
 0x17d   :  { %v623_v23 = vrot.slane %v5014_v63, %v5026_v8  ;;  %v663_v24 = vrot.slane %v5014_v63, %v5028_v9 }
 0x17e   :  { %v5016_v2 = vpop.permute.xlu1 %323  ;;  %v5020_v4 = vpop.f32.mrf.mxu0 }
 0x17f   :  { %v692_v3 = vmul.f32 %v663_v24, %v4931_v29  ;;  %v5087_v29 = vsub.s32 6, %v621_v5 }
 0x180   :  { %v5024_v7 = vpop.f32.mrf.mxu0 }
 0x181   :  { %v627_v12 = vrot.slane %v5024_v7, %v5026_v8  ;;  %v667_v13 = vrot.slane %v5024_v7, %v5028_v9  ;;  %v715_v17 = vrot.slane %v5024_v7, %v5038_v14  ;;  %v763_v27 = vrot.slane %v5024_v7, %v5048_v20 }
 0x182   :  { %v811_v38 = vrot.slane %v5024_v7, %v5057_v26  ;;  %v903_v28 = vrot.slane %v5014_v63, %v5087_v29 }
 0x183   :  { %v5022_v6 = vpop.permute.xlu1 %435  ;;  %v653_v15 = vmul.f32 %v627_v12, %v4939_v32  ;;  %v693_v16 = vmul.f32 %v667_v13, %v4937_v31  ;;  %v741_v22 = vmul.f32 %v715_v17, %v4981_v49  ;;  %v652_v12 = vmul.f32 %v623_v23, %v4933_v30  ;;  %v5081_v31 = vpop.permute.xlu0 %447 }
 0x184   :  { %v631_v13 = vrot.slane %v5012_v62, %v5026_v8  ;;  %v711_v17 = vrot.slane %v5014_v63, %v5038_v14  ;;  %v837_v24 = vmul.f32 %v811_v38, %v5030_v10  ;;  %v759_v23 = vrot.slane %v5014_v63, %v5048_v20  ;;  %6232 = vst [vmem:[#allocation59_spill] sm:$0xff] %v5081_v31 }
 0x185   :  { %v701_v21 = vadd.f32 %v693_v16, %v653_v15  ;;  %v671_v15 = vrot.slane %v5012_v62, %v5028_v9  ;;  %v789_v16 = vmul.f32 %v763_v27, %v4968_v44  ;;  %v700_v49 = vadd.f32 %v692_v3, %v652_v12 }
 0x186   :  { %v654_v32 = vmul.f32 %v631_v13, %v4944_v34  ;;  %v740_v30 = vmul.f32 %v711_v17, %v4954_v39  ;;  %v719_v38 = vrot.slane %v5012_v62, %v5038_v14  ;;  %v907_v3 = vrot.slane %v5024_v7, %v5087_v29 }
 0x187   :  { %v5032_v11 = vpop.permute.xlu1 %439  ;;  %v749_v36 = vadd.f32 %v741_v22, %v701_v21  ;;  %v5076_v21 = vsub.s32 5, %v621_v5  ;;  %v694_v27 = vmul.f32 %v671_v15, %v4965_v43  ;;  %v788_v13 = vmul.f32 %v759_v23, %v4995_v54 }
 0x188   :  { %6227 = vst [vmem:[#allocation54_spill] sm:$0xff] %v5032_v11  ;;  %v748_v12 = vadd.f32 %v740_v30, %v700_v49  ;;  %v635_v10 = vrot.slane %v5020_v4, %v5026_v8  ;;  %v5100_v34 = vsub.s32 7, %v621_v5  ;;  %v675_v17 = vrot.slane %v5020_v4, %v5028_v9  ;;  %v5109_v49 = vpop.permute.xlu0 %463 }
 0x189   :  { %v797_v22 = vadd.f32 %v789_v16, %v749_v36  ;;  %v859_v44 = vrot.slane %v5024_v7, %v5076_v21  ;;  %v702_v15 = vadd.f32 %v694_v27, %v654_v32  ;;  %v767_v30 = vrot.slane %v5012_v62, %v5048_v20  ;;  %6234 = vst [vmem:[#allocation61_spill] sm:$0xff] %v5109_v49 }
 0x18a   :  { %v933_v5 = vmul.f32 %v907_v3, %v5109_v49  ;;  %v796_v27 = vadd.f32 %v788_v13, %v748_v12  ;;  %v655_v54 = vmul.f32 %v635_v10, %v4942_v33  ;;  %v695_v39 = vmul.f32 %v675_v17, %v4948_v35 }
 0x18b   :  { %v845_v16 = vadd.f32 %v837_v24, %v797_v22  ;;  %v885_v43 = vmul.f32 %v859_v44, %v5004_v58  ;;  %v807_v22 = vrot.slane %v5014_v63, %v5057_v26  ;;  %v742_v24 = vmul.f32 %v719_v38, %v4959_v41 }
 0x18c   :  { %v5044_v18 = vpop.permute.xlu1 %351  ;;  %v955_v44 = vrot.slane %v5024_v7, %v5100_v34  ;;  %v855_v41 = vrot.slane %v5014_v63, %v5076_v21  ;;  %v815_v7 = vrot.slane %v5012_v62, %v5057_v26  ;;  %v723_v10 = vrot.slane %v5020_v4, %v5038_v14 }
 0x18d   :  { %6228 = vst [vmem:[#allocation55_spill] sm:$0xff] %v5044_v18  ;;  %v893_v23 = vadd.f32 %v885_v43, %v845_v16  ;;  %v750_v58 = vadd.f32 %v742_v24, %v702_v15  ;;  %v836_v38 = vmul.f32 %v807_v22, %v4978_v48  ;;  %v790_v43 = vmul.f32 %v767_v30, %v4973_v46 }
 0x18e   :  { %v981_v16 = vmul.f32 %v955_v44, %v5010_v61  ;;  %v863_v15 = vrot.slane %v5012_v62, %v5076_v21  ;;  %v771_v22 = vrot.slane %v5020_v4, %v5048_v20  ;;  %v703_v24 = vadd.f32 %v695_v39, %v655_v54 }
 0x18f   :  { %v941_v3 = vadd.f32 %v933_v5, %v893_v23  ;;  %v844_v12 = vadd.f32 %v836_v38, %v796_v27  ;;  %v798_v17 = vadd.f32 %v790_v43, %v750_v58  ;;  %v884_v30 = vmul.f32 %v855_v41, %v5002_v57 }
 0x190   :  { %v951_v23 = vrot.slane %v5014_v63, %v5100_v34  ;;  %v838_v44 = vmul.f32 %v815_v7, %v4983_v50  ;;  %v743_v27 = vmul.f32 %v723_v10, %v4963_v42  ;;  %v886_v58 = vmul.f32 %v863_v15, %v5022_v6  ;;  %v5151_v7 = vld [vmem:[%s6237_s16] ss:$0 sm:$0xff] }
 0x191   :  { %v5055_v25 = vpop.permute.xlu1 %459  ;;  %v989_v5 = vadd.f32 %v981_v16, %v941_v3  ;;  %v892_v38 = vadd.f32 %v884_v30, %v844_v12  ;;  %v911_v43 = vrot.slane %v5012_v62, %v5087_v29  ;;  %v791_v54 = vmul.f32 %v771_v22, %v5000_v56  ;;  %v5153_v16 = vpop.permute.xlu0 %467 }
 0x192   :  { %v932_v49 = vmul.f32 %v903_v28, %v5055_v25  ;;  %v846_v61 = vadd.f32 %v838_v44, %v798_v17  ;;  %v751_v41 = vadd.f32 %v743_v27, %v703_v24  ;;  %v819_v3 = vrot.slane %v5020_v4, %v5057_v26 }
 0x193   :  { %v1004_v12 = vadd.f32 %v5151_v7, %v989_v5  ;;  %v867_v15 = vrot.slane %v5020_v4, %v5076_v21  ;;  %v934_v24 = vmul.f32 %v911_v43, %v5153_v16  ;;  %v915_v27 = vrot.slane %v5020_v4, %v5087_v29 }
 0x194   :  { %v940_v28 = vadd.f32 %v932_v49, %v892_v38  ;;  %v959_v49 = vrot.slane %v5012_v62, %v5100_v34  ;;  %v894_v17 = vadd.f32 %v886_v58, %v846_v61  ;;  %v799_v22 = vadd.f32 %v791_v54, %v751_v41 }
 0x195   :  { %v839_v44 = vmul.f32 %v819_v3, %v4987_v51  ;;  %v1012_v38 = vmax.f32 %v1004_v12, 0.0  ;;  %v887_v62 = vmul.f32 %v867_v15, %v5032_v11  ;;  %v963_v3 = vrot.slane %v5020_v4, %v5100_v34 }
 0x196   :  { %v5074_v1 = vpop.permute.xlu1 %355  ;;  %v942_v58 = vadd.f32 %v934_v24, %v894_v17 }
 0x197   :  { %6231 = vst [vmem:[#allocation58_spill] sm:$0xff] %v5074_v1  ;;  %v847_v61 = vadd.f32 %v839_v44, %v799_v22 }
 0x199   :  { %v895_v12 = vadd.f32 %v887_v62, %v847_v61 }
 0x19a   :  { %v5090_v36 = vpop.permute.xlu1 %359 }
 0x19b   :  { %6233 = vst [vmem:[#allocation60_spill] sm:$0xff] %v5090_v36 }
 0x19f   :  { %v5111_v32 = vpop.permute.xlu1 %471 }
 0x1a0   :  { %6235 = vst [vmem:[#allocation62_spill] sm:$0xff] %v5111_v32  ;;  %v935_v54 = vmul.f32 %v915_v27, %v5111_v32 }
 0x1a2   :  { %v943_v22 = vadd.f32 %v935_v54, %v895_v12 }
 0x1a4   :  { %v5129_v13 = vpop.permute.xlu1 %383 }
 0x1a5   :  { %6236 = vst [vmem:[#allocation63_spill] sm:$0xff] %v5129_v13 }
 0x1a9   :  { %v5144_v39 = vpop.permute.xlu1 %491 }
 0x1aa   :  { %v980_v63 = vmul.f32 %v951_v23, %v5144_v39 }
 0x1ac   :  { %v988_v10 = vadd.f32 %v980_v63, %v940_v28  ;;  %v5169_v28 = vpop.f32.mrf.mxu0  ;;  %v982_v63 = vmul.f32 %v959_v49, %v5018_v0 }
 0x1ae   :  { %v5163_v30 = vpop.permute.xlu1 %387  ;;  %v1003_v23 = vadd.f32 %v5151_v7, %v988_v10  ;;  %v5179_v10 = vpop.f32.mrf.mxu0 }
 0x1af   :  { %v639_v54 = vrot.slane %v5179_v10, %v5026_v8 }
 0x1b0   :  { %v1011_v5 = vmax.f32 %v1003_v23, 0.0  ;;  %v990_v23 = vadd.f32 %v982_v63, %v942_v58  ;;  %v5184_v17 = vpop.f32.mrf.mxu0 }
 0x1b2   :  { %v5173_v43 = vpop.permute.xlu1 %391  ;;  %v1019_v41 = vpack.c.bf16 %v1012_v38, %v1011_v5  ;;  %v1005_v24 = vadd.f32 %v5151_v7, %v990_v23  ;;  %v5190_v38 = vpop.f32.mrf.mxu0 }
 0x1b3   :  { %v643_v63 = vrot.slane %v5190_v38, %v5026_v8  ;;  %v683_v61 = vrot.slane %v5190_v38, %v5028_v9  ;;  %v731_v23 = vrot.slane %v5190_v38, %v5038_v14 }
 0x1b4   :  { %4034 = vmatprep.mubr.msk.bf16.mxu1 %vm1039_vm1, %v1019_v41  ;;  %v1013_v4 = vmax.f32 %v1005_v24, 0.0  ;;  %v779_v24 = vrot.slane %v5190_v38, %v5048_v20 }
 0x1b5   :  { %v657_v12 = vmul.f32 %v643_v63, %v4992_v53  ;;  %v745_v63 = vmul.f32 %v731_v23, %v5044_v18  ;;  %v5218_v53 = vpop.permute.xlu0 %475  ;;  %v687_v23 = vrot.slane %v5169_v28, %v5028_v9  ;;  %v875_v18 = vrot.slane %v5190_v38, %v5076_v21 }
 0x1b7   :  { %v5181_v49 = vpop.permute.xlu1 %503  ;;  %v698_v32 = vmul.f32 %v687_v23, %v5016_v2 }
 0x1b8   :  { %6238 = vst [vmem:[#allocation64_spill] sm:$0xff] %v5181_v49  ;;  %v983_v15 = vmul.f32 %v963_v3, %v5181_v49  ;;  %v679_v3 = vrot.slane %v5179_v10, %v5028_v9 }
 0x1ba   :  { %v991_v44 = vadd.f32 %v983_v15, %v943_v22  ;;  %v697_v22 = vmul.f32 %v683_v61, %v4970_v45  ;;  %v793_v45 = vmul.f32 %v779_v24, %v5129_v13  ;;  %v651_v24 = vrot.slane %v5184_v17, %v5026_v8 }
 0x1bc   :  { %v1006_v27 = vadd.f32 %v5151_v7, %v991_v44  ;;  %v5188_v5 = vpop.permute.xlu1 %415  ;;  %v696_v44 = vmul.f32 %v679_v3, %v4997_v55  ;;  %v775_v3 = vrot.slane %v5179_v10, %v5048_v20 }
 0x1bd   :  { %6239 = vst [vmem:[#allocation65_spill] sm:$0xff] %v5188_v5 }
 0x1be   :  { %v1014_v41 = vmax.f32 %v1006_v27, 0.0  ;;  %v727_v27 = vrot.slane %v5179_v10, %v5038_v14  ;;  %v792_v13 = vmul.f32 %v775_v3, %v5006_v59  ;;  %v787_v59 = vrot.slane %v5184_v17, %v5048_v20 }
 0x1c0   :  { %v5196_v62 = vpop.permute.xlu1 %419  ;;  %v1020_v58 = vpack.c.bf16 %v1014_v41, %v1013_v4  ;;  %v656_v4 = vmul.f32 %v639_v54, %v4950_v37  ;;  %v705_v41 = vadd.f32 %v697_v22, %v657_v12  ;;  %v744_v49 = vmul.f32 %v727_v27, %v4989_v52  ;;  %v5247_v37 = vpop.permute.xlu0 %487 }
 0x1c1   :  { %v647_v54 = vrot.slane %v5169_v28, %v5026_v8  ;;  %v739_v52 = vrot.slane %v5184_v17, %v5038_v14 }
 0x1c2   :  { %4035 = vmatmul.mubr.msk.bf16.vlgmr.msra.gmra.mxu1 %vm1039_vm1, %v1020_v58  ;;  %v827_v58 = vrot.slane %v5190_v38, %v5057_v26  ;;  %v704_v55 = vadd.f32 %v696_v44, %v656_v4  ;;  %v753_v12 = vadd.f32 %v745_v63, %v705_v41  ;;  %v691_v44 = vrot.slane %v5184_v17, %v5028_v9 }
 0x1c3   :  { %v823_v41 = vrot.slane %v5179_v10, %v5057_v26 }
 0x1c4   :  { %v841_v22 = vmul.f32 %v827_v58, %v5188_v5  ;;  %v801_v27 = vadd.f32 %v793_v45, %v753_v12  ;;  %v752_v63 = vadd.f32 %v744_v49, %v704_v55  ;;  %v735_v58 = vrot.slane %v5169_v28, %v5038_v14 }
 0x1c5   :  { %v5207_v15 = vpop.permute.xlu1 %443  ;;  %v658_v5 = vmul.f32 %v647_v54, %v4957_v40  ;;  %v871_v45 = vrot.slane %v5179_v10, %v5076_v21  ;;  %v889_v55 = vmul.f32 %v875_v18, %v5081_v31  ;;  %v659_v49 = vmul.f32 %v651_v24, %v5008_v60 }
 0x1c6   :  { %6240 = vst [vmem:[#allocation66_spill] sm:$0xff] %v5207_v15  ;;  %v849_v11 = vadd.f32 %v841_v22, %v801_v27  ;;  %v699_v3 = vmul.f32 %v691_v44, %v4975_v47  ;;  %v783_v54 = vrot.slane %v5169_v28, %v5048_v20  ;;  %v923_v12 = vrot.slane %v5190_v38, %v5087_v29 }
 0x1c7   :  { %v800_v23 = vadd.f32 %v792_v13, %v752_v63  ;;  %v840_v22 = vmul.f32 %v823_v41, %v5046_v19  ;;  %v746_v18 = vmul.f32 %v735_v58, %v5074_v1  ;;  %v747_v24 = vmul.f32 %v739_v52, %v5090_v36  ;;  %v5277_v36 = vpop.permute.xlu0 %511 }
 0x1c8   :  { %v831_v44 = vrot.slane %v5169_v28, %v5057_v26  ;;  %v888_v47 = vmul.f32 %v871_v45, %v5207_v15  ;;  %v919_v60 = vrot.slane %v5179_v10, %v5087_v29  ;;  %v971_v13 = vrot.slane %v5190_v38, %v5100_v34 }
 0x1c9   :  { %v5220_v61 = vpop.permute.xlu1 %451  ;;  %v897_v41 = vadd.f32 %v889_v55, %v849_v11  ;;  %v706_v63 = vadd.f32 %v698_v32, %v658_v5  ;;  %v707_v19 = vadd.f32 %v699_v3, %v659_v49  ;;  %v794_v58 = vmul.f32 %v783_v54, %v5163_v30  ;;  %v6242_v54 = vld [vmem:[#allocation57_spill] sm:$0xff] }
 0x1ca   :  { %v835_v52 = vrot.slane %v5184_v17, %v5057_v26  ;;  %v879_v45 = vrot.slane %v5169_v28, %v5076_v21  ;;  %v842_v32 = vmul.f32 %v831_v44, %v5196_v62  ;;  %v936_v55 = vmul.f32 %v919_v60, %v5218_v53 }
 0x1cb   :  { %v754_v38 = vadd.f32 %v746_v18, %v706_v63  ;;  %v755_v11 = vadd.f32 %v747_v24, %v707_v19  ;;  %v883_v49 = vrot.slane %v5184_v17, %v5076_v21  ;;  %v985_v3 = vmul.f32 %v971_v13, %v5277_v36 }
 0x1cc   :  { %v890_v18 = vmul.f32 %v879_v45, %v5220_v61  ;;  %v931_v60 = vrot.slane %v5184_v17, %v5087_v29 }
 0x1cd   :  { %v5237_v4 = vpop.permute.xlu1 %455 }
 0x1ce   :  { %v891_v13 = vmul.f32 %v883_v49, %v5237_v4  ;;  %v939_v45 = vmul.f32 %v931_v60, %v5247_v37 }
 0x1d2   :  { %v5262_v27 = vpop.permute.xlu1 %479 }
 0x1d3   :  { %6241 = vst [vmem:[#allocation67_spill] sm:$0xff] %v5262_v27  ;;  %v937_v31 = vmul.f32 %v923_v12, %v5262_v27  ;;  %v795_v12 = vmul.f32 %v787_v59, %v5173_v43  ;;  %v848_v27 = vadd.f32 %v840_v22, %v800_v23  ;;  %v802_v59 = vadd.f32 %v794_v58, %v754_v38 }
 0x1d4   :  { %v843_v23 = vmul.f32 %v835_v52, %v6242_v54  ;;  %v975_v58 = vrot.slane %v5169_v28, %v5100_v34 }
 0x1d5   :  { %v945_v15 = vadd.f32 %v937_v31, %v897_v41  ;;  %v896_v5 = vadd.f32 %v888_v47, %v848_v27  ;;  %v927_v31 = vrot.slane %v5169_v28, %v5087_v29  ;;  %v803_v22 = vadd.f32 %v795_v12, %v755_v11 }
 0x1d6   :  { %v5282_v1 = vpop.permute.xlu1 %483  ;;  %v967_v47 = vrot.slane %v5179_v10, %v5100_v34  ;;  %v850_v27 = vadd.f32 %v842_v32, %v802_v59  ;;  %v979_v28 = vrot.slane %v5184_v17, %v5100_v34 }
 0x1d7   :  { %v993_v19 = vadd.f32 %v985_v3, %v945_v15  ;;  %v944_v44 = vadd.f32 %v936_v55, %v896_v5  ;;  %v938_v41 = vmul.f32 %v927_v31, %v5282_v1  ;;  %v851_v52 = vadd.f32 %v843_v23, %v803_v22 }
 0x1d8   :  { %v898_v15 = vadd.f32 %v890_v18, %v850_v27 }
 0x1d9   :  { %v1008_v10 = vadd.f32 %v5151_v7, %v993_v19  ;;  %v899_v11 = vadd.f32 %v891_v13, %v851_v52  ;;  %v1587_v52 = vld [vmem:[%s6243_s5] sm:$0xff] }
 0x1da   :  { %v946_v32 = vadd.f32 %v938_v41, %v898_v15  ;;  %v5319_v41 = vld [vmem:[#allocation2] sm:$0xf]  ;;  %v1588_v15 = vld [vmem:[%s6243_s5 + $0x8] sm:$0xff] }
 0x1db   :  { %v5297_v24 = vpop.permute.xlu1 %507  ;;  %v1016_v49 = vmax.f32 %v1008_v10, 0.0  ;;  %v947_v31 = vadd.f32 %v939_v45, %v899_v11  ;;  %v1708_v17 = vrot.slane %v5319_v41, 4  ;;  %1712 = vrot.lane.b32.xlu1 %v5319_v41, %s4583_s19  ;;  %v1769_v10 = vld [vmem:[%s6130_s12 + $0xc8] sm:$0xff]  ;;  %v1768_v45 = vld [vmem:[%s6130_s12 + $0xc0] sm:$0xff] }
 0x1dc   :  { %v984_v63 = vmul.f32 %v967_v47, %v5297_v24  ;;  %1806 = vmatprep.subr.mxu1 %v1769_v10 }
 0x1dd   :  { %1709 = vrot.lane.b32.xlu0 %v1708_v17, %s4582_s15  ;;  %1807 = vmatpush1.msra.mxu1 %v1768_v45 }
 0x1de   :  { %v992_v12 = vadd.f32 %v984_v63, %v944_v44  ;;  %v1590_v63 = vld [vmem:[%s6243_s5 + $0x18] sm:$0xff] }
 0x1df   :  { %v5306_v38 = vpop.permute.xlu1 %515 }
 0x1e0   :  { %v1007_v5 = vadd.f32 %v5151_v7, %v992_v12  ;;  %v986_v55 = vmul.f32 %v975_v58, %v5306_v38  ;;  %v4584_v58 = vmov 0.0   ;;  %v1771_v12 = vld [vmem:[%s6130_s12 + $0xd8] sm:$0xff] }
 0x1e1   :  { %4042 = vmatprep.subr.mxu0 %v4584_v58  ;;  %4050 = vmatprep.mubr.msk.f32.mxu0 %vm4585_vm2, %v4584_v58 }
 0x1e2   :  { %v1015_v3 = vmax.f32 %v1007_v5, 0.0  ;;  %v994_v59 = vadd.f32 %v986_v55, %v946_v32  ;;  %4043 = vmatpush3.msra.mxu0 %v1590_v63  ;;  %v6247_v63 = vld [vmem:[#allocation33_spill] sm:$0xff] }
 0x1e3   :  { %v5312_v23 = vpop.permute.xlu1 %519  ;;  %4044 = vmatprep.subr.mxu0 %v4584_v58 }
 0x1e4   :  { %v987_v22 = vmul.f32 %v979_v28, %v5312_v23  ;;  %v1021_v18 = vpack.c.bf16 %v1016_v49, %v1015_v3  ;;  %v1009_v19 = vadd.f32 %v5151_v7, %v994_v59  ;;  %v6244_v3 = vld [vmem:[#allocation36_spill] sm:$0xff] }
 0x1e5   :  { %v6245_v28 = vld [vmem:[#allocation40_spill] sm:$0xff] }
 0x1e6   :  { %v995_v47 = vadd.f32 %v987_v22, %v947_v31  ;;  %4038 = vmatprep.mubr.msk.bf16.mxu1 %vm1039_vm1, %v1021_v18  ;;  %v1017_v60 = vmax.f32 %v1009_v19, 0.0  ;;  %v6246_v22 = vld [vmem:[#allocation39_spill] sm:$0xff] }
 0x1e8   :  { %v1010_v27 = vadd.f32 %v5151_v7, %v995_v47  ;;  %v1589_v7 = vld [vmem:[%s6243_s5 + $0x10] sm:$0xff]  ;;  %s6281_s5 = sld [smem:[#allocation76_spill]] }
 0x1e9   :  { %4045 = vmatpush3.msra.mxu0 %v1589_v7 }
 0x1ea   :  { %v1018_v44 = vmax.f32 %v1010_v27, 0.0  ;;  %4046 = vmatprep.subr.mxu0 %v4584_v58 }
 0x1eb   :  { %4047 = vmatpush3.msra.mxu0 %v1588_v15  ;;  %v6248_v15 = vld [vmem:[#allocation32_spill] sm:$0xff] }
 0x1ec   :  { %v1022_v13 = vpack.c.bf16 %v1018_v44, %v1017_v60  ;;  %4048 = vmatprep.subr.mxu0 %v4584_v58 }
 0x1ed   :  { %4049 = vmatpush3.msra.mxu0 %v1587_v52 }
 0x1ee   :  { %4039 = vmatmul.mubr.msk.bf16.gmra.mxu1 %vm1039_vm1, %v1022_v13  ;;  %1883 = vmatprep.subr.mxu0 %v1771_v12 }
 0x1ef   :  { %1846 = vmatprep.mubr.f32.mxu1 %v4584_v58 }
 0x282   :  { %v5351_v11 = vpop.f32.mrf.mxu1 }
 0x283   :  { %v1128_v32 = vrot.slane %v5351_v11, %v5026_v8  ;;  %v1168_v5 = vrot.slane %v5351_v11, %v5028_v9  ;;  %v1216_v55 = vrot.slane %v5351_v11, %v5038_v14  ;;  %v1264_v19 = vrot.slane %v5351_v11, %v5048_v20 }
 0x284   :  { %v5359_v49 = vpop.f32.mrf.mxu1  ;;  %v1312_v45 = vrot.slane %v5351_v11, %v5057_v26 }
 0x285   :  { %v1151_v59 = vmul.f32 %v1128_v32, %v6244_v3  ;;  %v1191_v31 = vmul.f32 %v1168_v5, %v6245_v28  ;;  %v1239_v18 = vmul.f32 %v1216_v55, %v6246_v22  ;;  %v1120_v27 = vrot.slane %v5359_v49, %v5026_v8  ;;  %v6249_v5 = vld [vmem:[#allocation38_spill] sm:$0xff] }
 0x286   :  { %v1160_v60 = vrot.slane %v5359_v49, %v5028_v9  ;;  %v1208_v44 = vrot.slane %v5359_v49, %v5038_v14  ;;  %v5372_v13 = vpop.f32.mrf.mxu1  ;;  %v1256_v10 = vrot.slane %v5359_v49, %v5048_v20  ;;  %v1287_v12 = vmul.f32 %v1264_v19, %v4973_v46 }
 0x287   :  { %v1199_v47 = vadd.f32 %v1191_v31, %v1151_v59  ;;  %v1149_v7 = vmul.f32 %v1120_v27, %v6247_v63  ;;  %v1304_v3 = vrot.slane %v5359_v49, %v5057_v26  ;;  %v1132_v59 = vrot.slane %v5372_v13, %v5026_v8 }
 0x288   :  { %v1189_v52 = vmul.f32 %v1160_v60, %v6248_v15  ;;  %v1237_v55 = vmul.f32 %v1208_v44, %v6249_v5  ;;  %v1172_v28 = vrot.slane %v5372_v13, %v5028_v9  ;;  %v1220_v31 = vrot.slane %v5372_v13, %v5038_v14  ;;  %v5392_v27 = vpop.f32.mrf.mxu1  ;;  %v6251_v5 = vld [vmem:[#allocation35_spill] sm:$0xff] }
 0x289   :  { %v1247_v17 = vadd.f32 %v1239_v18, %v1199_v47  ;;  %v6250_v18 = vld [vmem:[#allocation47_spill] sm:$0xff]  ;;  %v1152_v47 = vmul.f32 %v1132_v59, %v4942_v33  ;;  %v1335_v60 = vmul.f32 %v1312_v45, %v4983_v50  ;;  %v1360_v44 = vrot.slane %v5351_v11, %v5076_v21 }
 0x28a   :  { %v1197_v32 = vadd.f32 %v1189_v52, %v1149_v7  ;;  %v1285_v19 = vmul.f32 %v1256_v10, %v6250_v18  ;;  %v1192_v63 = vmul.f32 %v1172_v28, %v4948_v35  ;;  %v1333_v15 = vmul.f32 %v1304_v3, %v4978_v48  ;;  %v6252_v3 = vld [vmem:[#allocation34_spill] sm:$0xff] }
 0x28b   :  { %v1295_v22 = vadd.f32 %v1287_v12, %v1247_v17  ;;  %v1352_v17 = vrot.slane %v5359_v49, %v5076_v21  ;;  %v1268_v52 = vrot.slane %v5372_v13, %v5048_v20  ;;  %v1240_v33 = vmul.f32 %v1220_v31, %v4963_v42 }
 0x28c   :  { %v1245_v46 = vadd.f32 %v1237_v55, %v1197_v32  ;;  %v1200_v10 = vadd.f32 %v1192_v63, %v1152_v47  ;;  %v1124_v50 = vrot.slane %v5392_v27, %v5026_v8  ;;  %v1164_v12 = vrot.slane %v5392_v27, %v5028_v9  ;;  %v6253_v63 = vld [vmem:[#allocation44_spill] sm:$0xff] }
 0x28d   :  { %v1343_v45 = vadd.f32 %v1335_v60, %v1295_v22  ;;  %v1408_v35 = vrot.slane %v5351_v11, %v5087_v29  ;;  %v1383_v28 = vmul.f32 %v1360_v44, %v5022_v6  ;;  %v1400_v42 = vrot.slane %v5359_v49, %v5087_v29 }
 0x28e   :  { %v1293_v7 = vadd.f32 %v1285_v19, %v1245_v46  ;;  %v1248_v32 = vadd.f32 %v1240_v33, %v1200_v10  ;;  %v1150_v55 = vmul.f32 %v1124_v50, %v6251_v5  ;;  %v1190_v59 = vmul.f32 %v1164_v12, %v6252_v3  ;;  %v1710_v3 = vpop.permute.xlu0 %1709 }
 0x28f   :  { %v1212_v31 = vrot.slane %v5392_v27, %v5038_v14  ;;  %v1260_v22 = vrot.slane %v5392_v27, %v5048_v20  ;;  %v1381_v46 = vmul.f32 %v1352_v17, %v5002_v57  ;;  %v1288_v18 = vmul.f32 %v1268_v52, %v5000_v56  ;;  %v6254_v52 = vld [vmem:[#allocation41_spill] sm:$0xff] }
 0x290   :  { %v1341_v48 = vadd.f32 %v1333_v15, %v1293_v7  ;;  %v1316_v19 = vrot.slane %v5372_v13, %v5057_v26  ;;  %v1198_v47 = vadd.f32 %v1190_v59, %v1150_v55  ;;  %v1391_v60 = vadd.f32 %v1383_v28, %v1343_v45  ;;  %v6255_v55 = vld [vmem:[#allocation53_spill] sm:$0xff] }
 0x291   :  { %v1238_v6 = vmul.f32 %v1212_v31, %v6253_v63  ;;  %v1308_v44 = vrot.slane %v5392_v27, %v5057_v26  ;;  %v1456_v7 = vrot.slane %v5351_v11, %v5100_v34  ;;  %v1296_v10 = vadd.f32 %v1288_v18, %v1248_v32  ;;  %v1760_v18 = vld [vmem:[%s6130_s12 + $0x80] sm:$0xff] }
 0x292   :  { %v1389_v15 = vadd.f32 %v1381_v46, %v1341_v48  ;;  %v1581_v57 = vsub.f32 1.0, %v5319_v41  ;;  %v1431_v56 = vmul.f32 %v1408_v35, %v5153_v16  ;;  %v1286_v33 = vmul.f32 %v1260_v22, %v6254_v52  ;;  %v1761_v46 = vld [vmem:[%s6130_s12 + $0x88] sm:$0xff] }
 0x293   :  { %v1246_v17 = vadd.f32 %v1238_v6, %v1198_v47  ;;  %v1356_v50 = vrot.slane %v5392_v27, %v5076_v21  ;;  %v1429_v12 = vmul.f32 %v1400_v42, %v5055_v25  ;;  %v1448_v45 = vrot.slane %v5359_v49, %v5100_v34  ;;  %v6257_v47 = vld [vmem:[#allocation54_spill] sm:$0xff]  ;;  %1808 = vmatprep.subr.mxu1 %v1761_v46  ;;  %v1745_v52 = vld [vmem:[%s6130_s12 + $0x8] sm:$0xff] }
 0x294   :  { %v1336_v5 = vmul.f32 %v1316_v19, %v4987_v51  ;;  %v1364_v11 = vrot.slane %v5372_v13, %v5076_v21  ;;  %v1439_v48 = vadd.f32 %v1431_v56, %v1391_v60  ;;  %v1334_v16 = vmul.f32 %v1308_v44, %v6255_v55  ;;  %v6256_v51 = vld [vmem:[#allocation49_spill] sm:$0xff]  ;;  %1809 = vmatpush1.msra.mxu1 %v1760_v18  ;;  %v1773_v55 = vld [vmem:[%s6130_s12 + $0xe8] sm:$0xff] }
 0x295   :  { %v1294_v32 = vadd.f32 %v1286_v33, %v1246_v17  ;;  %v1404_v35 = vrot.slane %v5392_v27, %v5087_v29  ;;  %v1437_v59 = vadd.f32 %v1429_v12, %v1389_v15  ;;  %v1714_v25 = vsel %vm1585_vm3, %v5319_v41, %v1710_v3 }
 0x296   :  { %v1344_v28 = vadd.f32 %v1336_v5, %v1296_v10  ;;  %v1479_v49 = vmul.f32 %v1456_v7, %v5018_v0  ;;  %v1382_v31 = vmul.f32 %v1356_v50, %v6256_v51  ;;  %v1452_v22 = vrot.slane %v5392_v27, %v5100_v34  ;;  %1718 = vperm.xlu0 %4185, %v1714_v25   ;;  %v1753_v27 = vld [vmem:[%s6130_s12 + $0x48] sm:$0xff]  ;;  %v6258_v7 = vld [vmem:[#allocation61_spill] sm:$0xff]  ;;  %v1713_v10 = vpop.permute.xlu1 %1712  ;;  %v6261_v5 = vld [vmem:[#allocation62_spill] sm:$0xff] }
 0x297   :  { %v1342_v42 = vadd.f32 %v1334_v16, %v1294_v32  ;;  %v1477_v19 = vmul.f32 %v1448_v45, %v5144_v39  ;;  %v1384_v60 = vmul.f32 %v1364_v11, %v6257_v47  ;;  %v1412_v0 = vrot.slane %v5372_v13, %v5087_v29  ;;  %v5465_v39 = vld [vmem:[%s6259_s6] ss:$0 sm:$0xff]  ;;  %1722 = vperm.xlu1 %4186, %v1713_v10   ;;  %v6260_v50 = vld [vmem:[#allocation52_spill] sm:$0xff] }
 0x298   :  { %v1583_v63 = vrot.slane %v1581_v57, 4  ;;  %v1487_v6 = vadd.f32 %v1479_v49, %v1439_v48  ;;  %v1430_v15 = vmul.f32 %v1404_v35, %v6258_v7  ;;  %1810 = vmatprep.subr.mxu1 %v1753_v27  ;;  %v1752_v57 = vld [vmem:[%s6130_s12 + $0x40] sm:$0xff]  ;;  %v1478_v12 = vmul.f32 %v1452_v22, %v6260_v50  ;;  %v6263_v25 = vld [vmem:[#allocation64_spill] sm:$0xff] }
 0x299   :  { %v1390_v44 = vadd.f32 %v1382_v31, %v1342_v42  ;;  %v1485_v56 = vadd.f32 %v1477_v19, %v1437_v59  ;;  %v1392_v17 = vadd.f32 %v1384_v60, %v1344_v28  ;;  %1811 = vmatpush1.msra.mxu1 %v1752_v57  ;;  %v1744_v45 = vld [vmem:[%s6130_s12] sm:$0xff]  ;;  %v1432_v11 = vmul.f32 %v1412_v0, %v6261_v5 }
 0x29a   :  { %v1460_v48 = vrot.slane %v5372_v13, %v5100_v34  ;;  %v1586_v32 = vsel %vm1585_vm3, %v5319_v41, %v1583_v63  ;;  %1812 = vmatprep.subr.mxu1 %v1745_v52  ;;  %v1502_v16 = vadd.f32 %v5465_v39, %v1487_v6  ;;  %v6262_v28 = vmov 0  }
 0x29b   :  { %v1438_v33 = vadd.f32 %v1430_v15, %v1390_v44  ;;  %1813 = vmatpush1.msra.mxu1 %v1744_v45  ;;  %v1500_v3 = vadd.f32 %v5465_v39, %v1485_v56  ;;  %v1440_v59 = vadd.f32 %v1432_v11, %v1392_v17  ;;  %4187 = vset.pattern.permute.xlu1 %v6262_v28 }
 0x29c   :  { %1960 = vmatprep.subr.mxu1 %v1773_v55  ;;  %1594 = vperm.xlu1 %4187, %v1586_v32   ;;  %v1480_v41 = vmul.f32 %v1460_v48, %v6263_v25  ;;  %v1510_v49 = vmax.f32 %v1502_v16, 0.0  ;;  %v6265_v25 = vld [vmem:[#allocation37_spill] sm:$0xff] }
 0x29d   :  { %v1486_v35 = vadd.f32 %v1478_v12, %v1438_v33  ;;  %v1508_v42 = vmax.f32 %v1500_v3, 0.0  ;;  %v6264_v12 = vld [vmem:[#allocation58_spill] sm:$0xff] }
 0x29e   :  { %v1488_v51 = vadd.f32 %v1480_v41, %v1440_v59  ;;  %v1530_v22 = vsel %vm1039_vm1, %v1510_v49, 0.0  ;;  %v6266_v49 = vld [vmem:[#allocation48_spill] sm:$0xff] }
 0x29f   :  { %v1501_v13 = vadd.f32 %v5465_v39, %v1486_v35  ;;  %v1516_v46 = vsel %vm1039_vm1, %v1508_v42, 0.0  ;;  %v1531_v47 = vrot.slane %v1530_v22, 4 }
 0x2a0   :  { %v1503_v18 = vadd.f32 %v5465_v39, %v1488_v51  ;;  %v1517_v60 = vrot.slane %v1516_v46, 4 }
 0x2a1   :  { %v1509_v31 = vmax.f32 %v1501_v13, 0.0  ;;  %v5500_v56 = vadd.f32 %v1531_v47, %v1530_v22 }
 0x2a2   :  { %v1511_v0 = vmax.f32 %v1503_v18, 0.0  ;;  %v5502_v17 = vadd.f32 %v1517_v60, %v1516_v46 }
 0x2a3   :  { %v1523_v19 = vsel %vm1039_vm1, %v1509_v31, 0.0 }
 0x2a4   :  { %v1524_v63 = vrot.slane %v1523_v19, 4  ;;  %v5512_v11 = vsel %vm1039_vm1, %v1511_v0, 0.0  ;;  %v6268_v0 = vld [vmem:[#allocation50_spill] sm:$0xff] }
 0x2a6   :  { %v5507_v50 = vadd.f32 %v1524_v63, %v1523_v19  ;;  %v6267_v19 = vld [vmem:[#allocation45_spill] sm:$0xff] }
 0x2ae   :  { %v4040_v27 = vpop.f32.mrf.mxu1 }
 0x2af   :  { %v1144_v6 = vrot.slane %v4040_v27, %v5026_v8  ;;  %v1184_v44 = vrot.slane %v4040_v27, %v5028_v9  ;;  %v1232_v7 = vrot.slane %v4040_v27, %v5038_v14  ;;  %v1280_v15 = vrot.slane %v4040_v27, %v5048_v20 }
 0x2b0   :  { %v5498_v10 = vpop.f32.mrf.mxu1  ;;  %v1328_v33 = vrot.slane %v4040_v27, %v5057_v26  ;;  %v1376_v5 = vrot.slane %v4040_v27, %v5076_v21  ;;  %v1424_v16 = vrot.slane %v4040_v27, %v5087_v29  ;;  %v1472_v35 = vrot.slane %v4040_v27, %v5100_v34 }
 0x2b1   :  { %v1155_v57 = vmul.f32 %v1144_v6, %v4957_v40  ;;  %v1195_v52 = vmul.f32 %v1184_v44, %v5016_v2  ;;  %v1243_v45 = vmul.f32 %v1232_v7, %v6264_v12  ;;  %v1136_v32 = vrot.slane %v5498_v10, %v5026_v8  ;;  %v6269_v7 = vld [vmem:[#allocation51_spill] sm:$0xff] }
 0x2b2   :  { %v1176_v40 = vrot.slane %v5498_v10, %v5028_v9  ;;  %v1224_v2 = vrot.slane %v5498_v10, %v5038_v14  ;;  %v1291_v55 = vmul.f32 %v1280_v15, %v5163_v30  ;;  %v1272_v3 = vrot.slane %v5498_v10, %v5048_v20  ;;  %v5525_v59 = vpop.f32.mrf.mxu1 }
 0x2b3   :  { %v1203_v48 = vadd.f32 %v1195_v52, %v1155_v57  ;;  %v1339_v13 = vmul.f32 %v1328_v33, %v5196_v62  ;;  %v1153_v41 = vmul.f32 %v1136_v32, %v6265_v25  ;;  %v1387_v51 = vmul.f32 %v1376_v5, %v5220_v61 }
 0x2b4   :  { %v1193_v42 = vmul.f32 %v1176_v40, %v6266_v49  ;;  %v1320_v30 = vrot.slane %v5498_v10, %v5057_v26  ;;  %v1368_v31 = vrot.slane %v5498_v10, %v5076_v21  ;;  %v1416_v22 = vrot.slane %v5498_v10, %v5087_v29  ;;  %v5549_v52 = vpop.f32.mrf.mxu1 }
 0x2b5   :  { %v1251_v28 = vadd.f32 %v1243_v45, %v1203_v48  ;;  %v1241_v47 = vmul.f32 %v1224_v2, %v6267_v19  ;;  %v1148_v62 = vrot.slane %v5525_v59, %v5026_v8  ;;  %v1435_v60 = vmul.f32 %v1424_v16, %v5282_v1  ;;  %v6270_v1 = vld [vmem:[#allocation56_spill] sm:$0xff]  ;;  %v6271_v45 = vld [vmem:[#allocation66_spill] sm:$0xff]  ;;  %v6272_v48 = vld [vmem:[#allocation43_spill] sm:$0xff] }
 0x2b6   :  { %v1201_v18 = vadd.f32 %v1193_v42, %v1153_v41  ;;  %v1289_v61 = vmul.f32 %v1272_v3, %v6268_v0  ;;  %v1188_v63 = vrot.slane %v5525_v59, %v5028_v9  ;;  %v1236_v27 = vrot.slane %v5525_v59, %v5038_v14 }
 0x2b7   :  { %v1299_v46 = vadd.f32 %v1291_v55, %v1251_v28  ;;  %v1156_v15 = vmul.f32 %v1148_v62, %v6269_v7  ;;  %v1284_v57 = vrot.slane %v5525_v59, %v5048_v20  ;;  %v1483_v33 = vmul.f32 %v1472_v35, %v5306_v38  ;;  %v6273_v28 = vld [vmem:[#allocation60_spill] sm:$0xff] }
 0x2b8   :  { %v1249_v44 = vadd.f32 %v1241_v47, %v1201_v18  ;;  %v1337_v12 = vmul.f32 %v1320_v30, %v6270_v1  ;;  %v1385_v5 = vmul.f32 %v1368_v31, %v6271_v45  ;;  %v1196_v32 = vmul.f32 %v1188_v63, %v6272_v48  ;;  %v6274_v30 = vld [vmem:[#allocation46_spill] sm:$0xff]  ;;  %v6278_v45 = vld [vmem:[#allocation65_spill] sm:$0xff] }
 0x2b9   :  { %v1347_v6 = vadd.f32 %v1339_v13, %v1299_v46  ;;  %v1433_v55 = vmul.f32 %v1416_v22, %v5218_v53  ;;  %v1332_v16 = vrot.slane %v5525_v59, %v5057_v26  ;;  %v1244_v13 = vmul.f32 %v1236_v27, %v6273_v28  ;;  %v6275_v22 = vld [vmem:[#allocation42_spill] sm:$0xff] }
 0x2ba   :  { %v1297_v2 = vadd.f32 %v1289_v61, %v1249_v44  ;;  %v1204_v3 = vadd.f32 %v1196_v32, %v1156_v15  ;;  %v1140_v25 = vrot.slane %v5549_v52, %v5026_v8  ;;  %v1180_v38 = vrot.slane %v5549_v52, %v5028_v9  ;;  %v6276_v61 = vld [vmem:[#allocation55_spill] sm:$0xff] }
 0x2bb   :  { %v1395_v40 = vadd.f32 %v1387_v51, %v1347_v6  ;;  %v1464_v49 = vrot.slane %v5498_v10, %v5100_v34  ;;  %v1292_v42 = vmul.f32 %v1284_v57, %v5173_v43  ;;  %v1380_v51 = vrot.slane %v5525_v59, %v5076_v21  ;;  %v6277_v15 = vld [vmem:[#allocation63_spill] sm:$0xff] }
 0x2bc   :  { %v1345_v41 = vadd.f32 %v1337_v12, %v1297_v2  ;;  %v1252_v53 = vadd.f32 %v1244_v13, %v1204_v3  ;;  %v1154_v31 = vmul.f32 %v1140_v25, %v6274_v30  ;;  %v1194_v46 = vmul.f32 %v1180_v38, %v6275_v22  ;;  %v6280_v38 = vld [vmem:[#allocation67_spill] sm:$0xff] }
 0x2bd   :  { %v1443_v35 = vadd.f32 %v1435_v60, %v1395_v40  ;;  %v1228_v9 = vrot.slane %v5549_v52, %v5038_v14  ;;  %v1276_v19 = vrot.slane %v5549_v52, %v5048_v20  ;;  %v1340_v10 = vmul.f32 %v1332_v16, %v6242_v54  ;;  %v6279_v40 = vld [vmem:[#allocation59_spill] sm:$0xff] }
 0x2be   :  { %v1393_v8 = vadd.f32 %v1385_v5, %v1345_v41  ;;  %v1300_v47 = vadd.f32 %v1292_v42, %v1252_v53  ;;  %v1428_v43 = vrot.slane %v5525_v59, %v5087_v29  ;;  %v1202_v62 = vadd.f32 %v1194_v46, %v1154_v31 }
 0x2bf   :  { %v1491_v18 = vadd.f32 %v1483_v33, %v1443_v35  ;;  %v1481_v0 = vmul.f32 %v1464_v49, %v5297_v24  ;;  %v1242_v63 = vmul.f32 %v1228_v9, %v6276_v61  ;;  %v1324_v27 = vrot.slane %v5549_v52, %v5057_v26 }
 0x2c0   :  { %v1441_v60 = vadd.f32 %v1433_v55, %v1393_v8  ;;  %v1348_v6 = vadd.f32 %v1340_v10, %v1300_v47  ;;  %v1388_v14 = vmul.f32 %v1380_v51, %v5237_v4  ;;  %v1476_v20 = vrot.slane %v5525_v59, %v5100_v34 }
 0x2c1   :  { %v1372_v54 = vrot.slane %v5549_v52, %v5076_v21  ;;  %v1250_v7 = vadd.f32 %v1242_v63, %v1202_v62  ;;  %v1290_v57 = vmul.f32 %v1276_v19, %v6277_v15  ;;  %v1506_v24 = vadd.f32 %v5465_v39, %v1491_v18 }
 0x2c2   :  { %v1489_v44 = vadd.f32 %v1481_v0, %v1441_v60  ;;  %v1396_v33 = vadd.f32 %v1388_v14, %v1348_v6  ;;  %v1436_v1 = vmul.f32 %v1428_v43, %v5247_v37  ;;  %v1420_v26 = vrot.slane %v5549_v52, %v5087_v29 }
 0x2c3   :  { %v1538_v4 = vrot.slane %v5512_v11, 4  ;;  %v1298_v59 = vadd.f32 %v1290_v57, %v1250_v7  ;;  %v1338_v5 = vmul.f32 %v1324_v27, %v6278_v45  ;;  %v1514_v21 = vmax.f32 %v1506_v24, 0.0 }
 0x2c4   :  { %v1504_v12 = vadd.f32 %v5465_v39, %v1489_v44  ;;  %v1444_v48 = vadd.f32 %v1436_v1, %v1396_v33  ;;  %v1484_v32 = vmul.f32 %v1476_v20, %v5312_v23  ;;  %v1386_v2 = vmul.f32 %v1372_v54, %v6279_v40 }
 0x2c5   :  { %v1526_v55 = vrot.slane %v5507_v50, 2  ;;  %v1346_v37 = vadd.f32 %v1338_v5, %v1298_v59  ;;  %v1468_v29 = vrot.slane %v5549_v52, %v5100_v34  ;;  %v1558_v3 = vsel %vm1039_vm1, %v1514_v21, 0.0 }
 0x2c6   :  { %v1512_v16 = vmax.f32 %v1504_v12, 0.0  ;;  %v1492_v28 = vadd.f32 %v1484_v32, %v1444_v48  ;;  %v1519_v13 = vrot.slane %v5502_v17, 2  ;;  %v1434_v35 = vmul.f32 %v1420_v26, %v6280_v38 }
 0x2c7   :  { %v1394_v25 = vadd.f32 %v1386_v2, %v1346_v37  ;;  %v1559_v23 = vrot.slane %v1558_v3, 4  ;;  %v1527_v42 = vadd.f32 %v1526_v55, %v5507_v50  ;;  %v1539_v53 = vadd.f32 %v1538_v4, %v5512_v11 }
 0x2c8   :  { %v1544_v41 = vsel %vm1039_vm1, %v1512_v16, 0.0  ;;  %v1507_v49 = vadd.f32 %v5465_v39, %v1492_v28  ;;  %v1482_v34 = vmul.f32 %v1468_v29, %v5277_v36  ;;  %v1533_v52 = vrot.slane %v5500_v56, 2 }
 0x2c9   :  { %v1545_v51 = vrot.slane %v1544_v41, 4  ;;  %v1442_v30 = vadd.f32 %v1434_v35, %v1394_v25  ;;  %v1520_v22 = vadd.f32 %v1519_v13, %v5502_v17  ;;  %v1560_v8 = vadd.f32 %v1559_v23, %v1558_v3 }
 0x2ca   :  { %v1515_v31 = vmax.f32 %v1507_v49, 0.0  ;;  %v1528_v9 = vrot.slane %v1527_v42, 1  ;;  %v1540_v19 = vrot.slane %v1539_v53, 2  ;;  %v1534_v11 = vadd.f32 %v1533_v52, %v5500_v56  ;;  %v1763_v49 = vld [vmem:[%s6130_s12 + $0x98] sm:$0xff] }
 0x2cb   :  { %v1546_v46 = vadd.f32 %v1545_v51, %v1544_v41  ;;  %v1490_v18 = vadd.f32 %v1482_v34, %v1442_v30  ;;  %v1521_v62 = vrot.slane %v1520_v22, 1  ;;  %v1561_v0 = vrot.slane %v1560_v8, 2  ;;  %v1770_v41 = vld [vmem:[%s6130_s12 + $0xd0] sm:$0xff]  ;;  %v1747_v30 = vld [vmem:[%s6130_s12 + $0x18] sm:$0xff] }
 0x2cc   :  { %v1565_v10 = vsel %vm1039_vm1, %v1515_v31, 0.0  ;;  %v1529_v63 = vadd.f32 %v1528_v9, %v1527_v42  ;;  %v1541_v17 = vadd.f32 %v1540_v19, %v1539_v53  ;;  %v1535_v27 = vrot.slane %v1534_v11, 1  ;;  %v1762_v42 = vld [vmem:[%s6130_s12 + $0x90] sm:$0xff]  ;;  %v1755_v53 = vld [vmem:[%s6130_s12 + $0x58] sm:$0xff] }
 0x2cd   :  { %v1547_v47 = vrot.slane %v1546_v46, 2  ;;  %v1505_v50 = vadd.f32 %v5465_v39, %v1490_v18  ;;  %v1566_v43 = vrot.slane %v1565_v10, 4  ;;  %v1522_v20 = vadd.f32 %v1521_v62, %v1520_v22  ;;  %v1754_v51 = vld [vmem:[%s6130_s12 + $0x50] sm:$0xff]  ;;  %v1775_v52 = vld [vmem:[%s6130_s12 + $0xf8] sm:$0xff] }
 0x2ce   :  { %v1562_v7 = vadd.f32 %v1561_v0, %v1560_v8  ;;  %v1542_v15 = vrot.slane %v1541_v17, 1  ;;  %v1573_v56 = vmul.f32 0.125, %v1529_v63  ;;  %v1536_v24 = vadd.f32 %v1535_v27, %v1534_v11  ;;  %v1746_v34 = vld [vmem:[%s6130_s12 + $0x10] sm:$0xff]  ;;  %v3796_v31 = vld [vmem:[#allocation8] ss:$0 sm:$0xff] }
 0x2cf   :  { %v1513_v36 = vmax.f32 %v1505_v50, 0.0  ;;  %v1548_v60 = vadd.f32 %v1547_v47, %v1546_v46  ;;  %v1567_v61 = vadd.f32 %v1566_v43, %v1565_v10  ;;  %v1572_v1 = vmul.f32 0.125, %v1522_v20  ;;  %v3797_v22 = vld [vmem:[#allocation10] ss:$0 sm:$0xff]  ;;  %v1772_v10 = vld [vmem:[%s6130_s12 + $0xe0] sm:$0xff]  ;;  %v1774_v50 = vld [vmem:[%s6130_s12 + $0xf0] sm:$0xff] }
 0x2d0   :  { %v1563_v4 = vrot.slane %v1562_v7, 1  ;;  %v1543_v12 = vadd.f32 %v1542_v15, %v1541_v17  ;;  %v1574_v21 = vmul.f32 0.125, %v1536_v24  ;;  %v1765_v43 = vld [vmem:[%s6130_s12 + $0xa8] sm:$0xff]  ;;  %v1767_v62 = vld [vmem:[%s6130_s12 + $0xb8] sm:$0xff]  ;;  %v1766_v0 = vld [vmem:[%s6130_s12 + $0xb0] sm:$0xff] }
 0x2d1   :  { %v1551_v6 = vsel %vm1039_vm1, %v1513_v36, 0.0  ;;  %v1568_v14 = vrot.slane %v1567_v61, 2  ;;  %v1549_v44 = vrot.slane %v1548_v60, 1  ;;  %v1613_v5 = vsel %vm1612_vm4, %v1573_v56, %v1572_v1  ;;  %v1759_v63 = vld [vmem:[%s6130_s12 + $0x78] sm:$0xff]  ;;  %v1756_v17 = vld [vmem:[%s6130_s12 + $0x60] sm:$0xff]  ;;  %v1758_v27 = vld [vmem:[%s6130_s12 + $0x70] sm:$0xff] }
 0x2d2   :  { %v1552_v54 = vrot.slane %v1551_v6, 4  ;;  %v1564_v32 = vadd.f32 %v1563_v4, %v1562_v7  ;;  %v1615_v2 = vsel %vm1614_vm5, %v1574_v21, %v1613_v5  ;;  %v1575_v37 = vmul.f32 0.125, %v1543_v12  ;;  %v1748_v20 = vld [vmem:[%s6130_s12 + $0x20] sm:$0xff]  ;;  %v2117_v7 = vld [vmem:[%s6131_s13 + $0xd8] sm:$0xff]  ;;  %v2099_v1 = vld [vmem:[%s6131_s13 + $0x48] sm:$0xff] }
 0x2d3   :  { %v1569_v57 = vadd.f32 %v1568_v14, %v1567_v61  ;;  %v1550_v26 = vadd.f32 %v1549_v44, %v1548_v60  ;;  %v1764_v60 = vld [vmem:[%s6130_s12 + $0xa0] sm:$0xff]  ;;  %v1757_v61 = vld [vmem:[%s6130_s12 + $0x68] sm:$0xff]  ;;  %v1751_v14 = vld [vmem:[%s6130_s12 + $0x38] sm:$0xff] }
 0x2d4   :  { %v1553_v39 = vadd.f32 %v1552_v54, %v1551_v6  ;;  %v1617_v3 = vsel %vm1616_vm6, %v1575_v37, %v1615_v2  ;;  %v1578_v28 = vmul.f32 0.125, %v1564_v32  ;;  %v1749_v6 = vld [vmem:[%s6130_s12 + $0x28] sm:$0xff]  ;;  %v1750_v54 = vld [vmem:[%s6130_s12 + $0x30] sm:$0xff]  ;;  %v2114_v15 = vld [vmem:[%s6131_s13 + $0xc0] sm:$0xff]  ;;  %s4589_s12 = smov [#allocation23]  }
 0x2d5   :  { %v1570_v45 = vrot.slane %v1569_v57, 1  ;;  %v1576_v40 = vmul.f32 0.125, %v1550_v26  ;;  %v2115_v44 = vld [vmem:[%s6131_s13 + $0xc8] sm:$0xff]  ;;  %v2109_v56 = vld [vmem:[%s6131_s13 + $0x98] sm:$0xff]  ;;  %v2106_v24 = vld [vmem:[%s6131_s13 + $0x80] sm:$0xff] }
 0x2d6   :  { %v1554_v33 = vrot.slane %v1553_v39, 2  ;;  %v2101_v26 = vld [vmem:[%s6131_s13 + $0x58] sm:$0xff]  ;;  %v2098_v4 = vld [vmem:[%s6131_s13 + $0x40] sm:$0xff]  ;;  %v2100_v12 = vld [vmem:[%s6131_s13 + $0x50] sm:$0xff] }
 0x2d7   :  { %v1571_v16 = vadd.f32 %v1570_v45, %v1569_v57  ;;  %v1619_v13 = vsel %vm1618_vm7, %v1576_v40, %v1617_v3  ;;  %v2107_v57 = vld [vmem:[%s6131_s13 + $0x88] sm:$0xff]  ;;  %v2093_v45 = vld [vmem:[%s6131_s13 + $0x18] sm:$0xff]  ;;  %v2090_v5 = vld [vmem:[%s6131_s13] sm:$0xff] }
 0x2d8   :  { %v1555_v59 = vadd.f32 %v1554_v33, %v1553_v39  ;;  %v2116_v39 = vld [vmem:[%s6131_s13 + $0xd0] sm:$0xff]  ;;  %v2121_v32 = vld [vmem:[%s6131_s13 + $0xf8] sm:$0xff]  ;;  %v3793_v40 = vld [vmem:[%s6281_s5] ss:$0 sm:$0xff]  ;;  %s4587_s5 = smov 96  }
 0x2d9   :  { %v1579_v25 = vmul.f32 0.125, %v1571_v16  ;;  %v2108_v33 = vld [vmem:[%s6131_s13 + $0x90] sm:$0xff]  ;;  %v3795_v37 = vld [vmem:[%s6282_s20] ss:$0 sm:$0xff] }
 0x2da   :  { %v1556_v48 = vrot.slane %v1555_v59, 1  ;;  %v2092_v21 = vld [vmem:[%s6131_s13 + $0x10] sm:$0xff] }
 0x2dc   :  { %v1557_v55 = vadd.f32 %v1556_v48, %v1555_v59  ;;  %v2091_v59 = vld [vmem:[%s6131_s13 + $0x8] sm:$0xff] }
 0x2dd   :  { %v2119_v48 = vld [vmem:[%s6131_s13 + $0xe8] sm:$0xff] }
 0x2de   :  { %v1577_v29 = vmul.f32 0.125, %v1557_v55 }
 0x2e0   :  { %v1621_v38 = vsel %vm1620_vm8, %v1577_v29, %v1619_v13 }
 0x2e1   :  { %v1623_v35 = vsel %vm1622_vm9, %v1578_v28, %v1621_v38  ;;  %v2120_v38 = vld [vmem:[%s6131_s13 + $0xf0] sm:$0xff] }
 0x2e2   :  { %v1625_v23 = vsel %vm1624_vm10, %v1579_v25, %v1623_v35  ;;  %v2118_v25 = vld [vmem:[%s6131_s13 + $0xe0] sm:$0xff]  ;;  %v2111_v35 = vld [vmem:[%s6131_s13 + $0xa8] sm:$0xff] }
 0x2e3   :  { %4051 = vmatmul.mubr.msk.f32.vlgmr.msra.gmra.mxu0 %vm1039_vm1, %v1625_v23  ;;  %v2110_v23 = vld [vmem:[%s6131_s13 + $0xa0] sm:$0xff] }
 0x2e4   :  { %1884 = vmatpush1.msra.mxu0 %v1770_v41  ;;  %1923 = vmatprep.mubr.f32.mxu0 %v4584_v58  ;;  %v2113_v41 = vld [vmem:[%s6131_s13 + $0xb8] sm:$0xff] }
 0x2e5   :  { %1885 = vmatprep.subr.mxu0 %v1763_v49  ;;  %v2112_v49 = vld [vmem:[%s6131_s13 + $0xb0] sm:$0xff] }
 0x2e6   :  { %1886 = vmatpush1.msra.mxu0 %v1762_v42  ;;  %v2103_v42 = vld [vmem:[%s6131_s13 + $0x68] sm:$0xff] }
 0x2e7   :  { %1887 = vmatprep.subr.mxu0 %v1755_v53  ;;  %v2105_v53 = vld [vmem:[%s6131_s13 + $0x78] sm:$0xff] }
 0x2e8   :  { %1888 = vmatpush1.msra.mxu0 %v1754_v51  ;;  %v2102_v51 = vld [vmem:[%s6131_s13 + $0x60] sm:$0xff] }
 0x2e9   :  { %1889 = vmatprep.subr.mxu0 %v1747_v30  ;;  %v2104_v30 = vld [vmem:[%s6131_s13 + $0x70] sm:$0xff] }
 0x2ea   :  { %1890 = vmatpush1.msra.mxu0 %v1746_v34  ;;  %v2095_v34 = vld [vmem:[%s6131_s13 + $0x28] sm:$0xff] }
 0x2eb   :  { %2037 = vmatprep.subr.mxu0 %v1775_v52  ;;  %v2097_v52 = vld [vmem:[%s6131_s13 + $0x38] sm:$0xff] }
 0x311   :  { %v1719_v46 = vpop.permute.xlu0 %1718 }
 0x312   :  { %v1731_v18 = vmul.f32 %v3796_v31, %v1719_v46  ;;  %v1723_v9 = vpop.permute.xlu1 %1722  ;;  %v4191_v46 = vld [vmem:[%s6132_s14 + $0x78] sm:$0xff]  }
 0x313   :  { %v1732_v19 = vmul.f32 %v3796_v31, %v1723_v9  ;;  %v2094_v31 = vld [vmem:[%s6131_s13 + $0x20] sm:$0xff]  ;;  %v4195_v9 = vld [vmem:[%s6132_s14 + $0x70] sm:$0xff]  }
 0x314   :  { %v1740_v8 = vadd.f32 %v3797_v22, %v1731_v18  ;;  %v2671_v18 = vld [vmem:[#allocation11 + $0x18] sm:$0xff] }
 0x315   :  { %v1741_v11 = vadd.f32 %v3797_v22, %v1732_v19  ;;  %v2096_v22 = vld [vmem:[%s6131_s13 + $0x30] sm:$0xff]  ;;  %s3765_s13 = sshll.u32 %s4589_s12, 4  ;;  %s3766_s13 = int_to_ptr.vmem [resolvable:$true] %s3765_s13 }
 0x316   :  { %v1742_v47 = vmax.f32 %v1740_v8, 0.0  ;;  %v4193_v8 = vld [vmem:[%s6132_s14 + $0x38] sm:$0xff]   ;;  %v2670_v19 = vld [vmem:[#allocation11 + $0x10] sm:$0xff]  ;;  %p4526_p10 = scmp.lt.s32.totalorder %s3766_s13, %s3766_s13 }
 0x317   :  { %v1743_v36 = vmax.f32 %v1741_v11, 0.0  ;;  %v1595_v2 = vpop.permute.xlu1 %1594  ;;  %v4199_v11 = vld [vmem:[%s6132_s14 + $0x68] sm:$0xff]  }
 0x318   :  { %3798 = vmatmul.mubr.msk.f32.vlgmr.msra.gmra.mxu1 %vm1039_vm1, %v1742_v47  ;;  %3800 = vmatmul.mubr.msk.f32.vlgmr.msra.gmra.mxu0 %vm1039_vm1, %v1742_v47  ;;  %v1603_v55 = vmul.f32 %v3793_v40, %v1595_v2 }
 0x319   :  { %1961 = vmatpush1.msra.mxu1 %v1772_v10  ;;  %2038 = vmatpush1.msra.mxu0 %v1774_v50  ;;  %v4197_v50 = vld [vmem:[%s6132_s14 + $0x30] sm:$0xff]  }
 0x31a   :  { %1962 = vmatprep.subr.mxu1 %v1765_v43  ;;  %2039 = vmatprep.subr.mxu0 %v1767_v62  ;;  %v2668_v43 = vld [vmem:[#allocation11] sm:$0xff]  ;;  %v4192_v62 = vld [vmem:[%s6132_s14 + $0xf8] sm:$0xff]  }
 0x31b   :  { %1852 = vmatprep.mubr.f32.mxu1 %v4584_v58  ;;  %1929 = vmatprep.mubr.f32.mxu0 %v4584_v58 }
 0x31c   :  { %1963 = vmatpush1.msra.mxu1 %v1764_v60  ;;  %2040 = vmatpush1.msra.mxu0 %v1766_v0  ;;  %v4196_v0 = vld [vmem:[%s6132_s14 + $0xf0] sm:$0xff]  }
 0x31d   :  { %3799 = vmatmul.mubr.msk.f32.gmra.mxu1 %vm1039_vm1, %v1743_v36  ;;  %3801 = vmatmul.mubr.msk.f32.gmra.mxu0 %vm1039_vm1, %v1743_v36 }
 0x31e   :  { %1964 = vmatprep.subr.mxu1 %v1757_v61  ;;  %2041 = vmatprep.subr.mxu0 %v1759_v63  ;;  %v4201_v61 = vld [vmem:[%s6132_s14 + $0x28] sm:$0xff]   ;;  %v4203_v63 = vld [vmem:[%s6132_s14 + $0x60] sm:$0xff]  }
 0x31f   :  { %1965 = vmatpush1.msra.mxu1 %v1756_v17  ;;  %2042 = vmatpush1.msra.mxu0 %v1758_v27  ;;  %v4198_v17 = vld [vmem:[%s6132_s14 + $0xb0] sm:$0xff]   ;;  %v4200_v27 = vld [vmem:[%s6132_s14 + $0xe8] sm:$0xff]  }
 0x320   :  { %1966 = vmatprep.subr.mxu1 %v1749_v6  ;;  %2043 = vmatprep.subr.mxu0 %v1751_v14  ;;  %v4205_v6 = vld [vmem:[%s6132_s14 + $0x20] sm:$0xff]   ;;  %v4207_v14 = vld [vmem:[%s6132_s14 + $0x58] sm:$0xff]  }
 0x321   :  { %1967 = vmatpush1.msra.mxu1 %v1748_v20  ;;  %2000 = vmatprep.mubr.f32.mxu1 %v4584_v58  ;;  %v4202_v20 = vld [vmem:[%s6132_s14 + $0xa8] sm:$0xff]  }
 0x322   :  { %2044 = vmatpush1.msra.mxu0 %v1750_v54  ;;  %2077 = vmatprep.mubr.f32.mxu0 %v4584_v58  ;;  %v4204_v54 = vld [vmem:[%s6132_s14 + $0xe0] sm:$0xff]  }
 0x323   :  { %3802 = vmatmul.mubr.msk.f32.vlgmr.msra.gmra.mxu1 %vm1039_vm1, %v1742_v47  ;;  %3804 = vmatmul.mubr.msk.f32.vlgmr.msra.gmra.mxu0 %vm1039_vm1, %v1742_v47  ;;  %v2669_v47 = vld [vmem:[#allocation11 + $0x8] sm:$0xff] }
 0x324   :  { %2006 = vmatprep.mubr.f32.mxu1 %v4584_v58  ;;  %2083 = vmatprep.mubr.f32.mxu0 %v4584_v58 }
 0x325   :  { %2149 = vmatprep.subr.mxu1 %v2115_v44  ;;  %2220 = vmatprep.subr.mxu0 %v2117_v7  ;;  %v4209_v44 = vld [vmem:[%s6132_s14 + $0x18] sm:$0xff]   ;;  %v4206_v7 = vld [vmem:[%s6132_s14 + $0xa0] sm:$0xff]  }
 0x326   :  { %2150 = vmatpush1.msra.mxu1 %v2114_v15  ;;  %2221 = vmatpush1.msra.mxu0 %v2116_v39  ;;  %v4208_v15 = vld [vmem:[%s6132_s14 + $0xd8] sm:$0xff]  }
 0x327   :  { %3803 = vmatmul.mubr.msk.f32.gmra.mxu1 %vm1039_vm1, %v1743_v36  ;;  %3805 = vmatmul.mubr.msk.f32.gmra.mxu0 %vm1039_vm1, %v1743_v36  ;;  %v4194_v36 = vld [vmem:[%s6132_s14 + $0xb8] sm:$0xff]  }
 0x328   :  { %2151 = vmatprep.subr.mxu1 %v2107_v57  ;;  %2222 = vmatprep.subr.mxu0 %v2109_v56  ;;  %v4210_v39 = vld [vmem:[%s6132_s14 + $0x98] sm:$0xff]   ;;  %v4211_v57 = vld [vmem:[%s6132_s14 + $0x50] sm:$0xff]  }
 0x329   :  { %2152 = vmatpush1.msra.mxu1 %v2106_v24  ;;  %2223 = vmatpush1.msra.mxu0 %v2108_v33  ;;  %v4212_v56 = vld [vmem:[%s6132_s14 + $0xd0] sm:$0xff]  }
 0x32a   :  { %2153 = vmatprep.subr.mxu1 %v2099_v1  ;;  %2224 = vmatprep.subr.mxu0 %v2101_v26  ;;  %v4213_v24 = vld [vmem:[%s6132_s14 + $0x10] sm:$0xff]   ;;  %v4215_v1 = vld [vmem:[%s6132_s14 + $0x48] sm:$0xff]  }
 0x32b   :  { %2154 = vmatpush1.msra.mxu1 %v2098_v4  ;;  %2225 = vmatpush1.msra.mxu0 %v2100_v12  ;;  %v4214_v33 = vld [vmem:[%s6132_s14 + $0x90] sm:$0xff]   ;;  %v4216_v26 = vld [vmem:[%s6132_s14 + $0xc8] sm:$0xff]  }
 0x32c   :  { %2155 = vmatprep.subr.mxu1 %v2091_v59  ;;  %2226 = vmatprep.subr.mxu0 %v2093_v45  ;;  %v4217_v4 = vld [vmem:[%s6132_s14 + $0x8] sm:$0xff]   ;;  %v4219_v59 = vld [vmem:[%s6132_s14 + $0x40] sm:$0xff]  }
 0x32d   :  { %2156 = vmatpush1.msra.mxu1 %v2090_v5  ;;  %2227 = vmatpush1.msra.mxu0 %v2092_v21  ;;  %v4218_v12 = vld [vmem:[%s6132_s14 + $0x88] sm:$0xff]   ;;  %v4220_v45 = vld [vmem:[%s6132_s14 + $0xc0] sm:$0xff]  }
 0x32e   :  { %2189 = vmatprep.mubr.f32.mxu1 %v4584_v58  ;;  %2260 = vmatprep.mubr.f32.mxu0 %v4584_v58  ;;  %v4221_v5 = vld [vmem:[%s6132_s14] sm:$0xff]  }
 0x32f   :  { %2291 = vmatprep.subr.mxu1 %v2119_v48  ;;  %2362 = vmatprep.subr.mxu0 %v2121_v32  ;;  %v4222_v21 = vld [vmem:[%s6132_s14 + $0x80] sm:$0xff]   ;;  %v4223_v48 = vld [vmem:[%s6132_s14 + $0x178] sm:$0xff]  }
 0x330   :  { %v4224_v32 = vld [vmem:[%s6132_s14 + $0x1f8] sm:$0xff]  }
 0x3a3   :  { %v1694_v16 = vpop.f32.mrf.mxu0 }
 0x3a4   :  { %v1695_v29 = vadd.f32 %v1694_v16, %v1603_v55 }
 0x3a5   :  { %v4052_v3 = vpop.f32.mrf.mxu0 }
 0x3a6   :  { %v1705_v28 = vadd.f32 %v3795_v37, %v1695_v29 }
 0x3a8   :  { %v5757_v13 = vmax.f32 %v1705_v28, 0.0 }
 0x3aa   :  { %3806 = vmatmul.mubr.msk.f32.vlgmr.msra.gmra.mxu1 %vm1039_vm1, %v5757_v13  ;;  %3807 = vmatmul.mubr.msk.f32.vlgmr.msra.gmra.mxu0 %vm1039_vm1, %v5757_v13  ;;  %v2665_v10 = vrot.slane %v5757_v13, 4 }
 0x3ab   :  { %2292 = vmatpush1.msra.mxu1 %v2118_v25  ;;  %2363 = vmatpush1.msra.mxu0 %v2120_v38 }
 0x3ac   :  { %2293 = vmatprep.subr.mxu1 %v2111_v35  ;;  %2364 = vmatprep.subr.mxu0 %v2113_v41  ;;  %v2667_v60 = vadd.f32 %v2665_v10, %v5757_v13 }
 0x3ad   :  { %2294 = vmatpush1.msra.mxu1 %v2110_v23  ;;  %2365 = vmatpush1.msra.mxu0 %v2112_v49 }
 0x3ae   :  { %2295 = vmatprep.subr.mxu1 %v2103_v42  ;;  %2366 = vmatprep.subr.mxu0 %v2105_v53 }
 0x3af   :  { %2296 = vmatpush1.msra.mxu1 %v2102_v51  ;;  %2367 = vmatpush1.msra.mxu0 %v2104_v30 }
 0x3b0   :  { %2297 = vmatprep.subr.mxu1 %v2095_v34  ;;  %2368 = vmatprep.subr.mxu0 %v2097_v52 }
 0x3b1   :  { %2298 = vmatpush1.msra.mxu1 %v2094_v31  ;;  %2331 = vmatprep.mubr.f32.mxu1 %v4584_v58 }
 0x3b2   :  { %2369 = vmatpush1.msra.mxu0 %v2096_v22  ;;  %2402 = vmatprep.mubr.f32.mxu0 %v4584_v58 }
 0x3b3   :  { %3808 = vmatmul.mubr.msk.f32.vlgmr.msra.gmra.mxu1 %vm1039_vm1, %v5757_v13  ;;  %3809 = vmatmul.mubr.msk.f32.vlgmr.msra.gmra.mxu0 %vm1039_vm1, %v5757_v13 }
 0x3b4   :  { %4053 = vmatprep.subr.mxu1 %v4584_v58  ;;  %4061 = vmatprep.mubr.msk.f32.mxu1 %vm4585_vm2, %v4584_v58 }
 0x3b5   :  { %4054 = vmatpush3.msra.mxu1 %v2671_v18  ;;  %3907 = vmatprep.subr.bf16.mxu0 %v4191_v46 }
 0x3b6   :  { %4055 = vmatprep.subr.mxu1 %v4584_v58  ;;  %3908 = vmatpush3.bf16.msra.mxu0 %v4193_v8 }
 0x3b7   :  { %4056 = vmatpush3.msra.mxu1 %v2670_v19  ;;  %3909 = vmatprep.subr.bf16.mxu0 %v4195_v9 }
 0x3b8   :  { %4057 = vmatprep.subr.mxu1 %v4584_v58 }
 0x3b9   :  { %4058 = vmatpush3.msra.mxu1 %v2669_v47 }
 0x3ba   :  { %4059 = vmatprep.subr.mxu1 %v4584_v58  ;;  %3910 = vmatpush3.bf16.msra.mxu0 %v4197_v50 }
 0x3bb   :  { %4060 = vmatpush3.msra.mxu1 %v2668_v43  ;;  %3911 = vmatprep.subr.bf16.mxu0 %v4199_v11 }
 0x3bc   :  { %4062 = vmatmul.mubr.msk.f32.vlgmr.msra.gmra.mxu1 %vm1039_vm1, %v2667_v60  ;;  %3929 = vmatprep.subr.bf16.mxu1 %v4192_v62 }
 0x3bd   :  { %3930 = vmatpush3.bf16.msra.mxu1 %v4194_v36 }
 0x3be   :  { %3931 = vmatprep.subr.bf16.mxu1 %v4196_v0  ;;  %3912 = vmatpush3.bf16.msra.mxu0 %v4201_v61 }
 0x3bf   :  { %3913 = vmatprep.subr.bf16.mxu0 %v4203_v63 }
 0x3c1   :  { %3932 = vmatpush3.bf16.msra.mxu1 %v4198_v17 }
 0x3c2   :  { %3933 = vmatprep.subr.bf16.mxu1 %v4200_v27  ;;  %3914 = vmatpush3.bf16.msra.mxu0 %v4205_v6 }
 0x3c3   :  { %3915 = vmatprep.subr.bf16.mxu0 %v4207_v14 }
 0x3c5   :  { %3934 = vmatpush3.bf16.msra.mxu1 %v4202_v20 }
 0x3c6   :  { %3935 = vmatprep.subr.bf16.mxu1 %v4204_v54  ;;  %3916 = vmatpush3.bf16.msra.mxu0 %v4209_v44 }
 0x3c7   :  { %3917 = vmatprep.subr.bf16.mxu0 %v4211_v57 }
 0x3c9   :  { %3936 = vmatpush3.bf16.msra.mxu1 %v4206_v7 }
 0x3ca   :  { %3937 = vmatprep.subr.bf16.mxu1 %v4208_v15  ;;  %3918 = vmatpush3.bf16.msra.mxu0 %v4213_v24 }
 0x3cb   :  { %3919 = vmatprep.subr.bf16.mxu0 %v4215_v1 }
 0x3cd   :  { %3938 = vmatpush3.bf16.msra.mxu1 %v4210_v39 }
 0x3ce   :  { %3939 = vmatprep.subr.bf16.mxu1 %v4212_v56  ;;  %3920 = vmatpush3.bf16.msra.mxu0 %v4217_v4 }
 0x3cf   :  { %3921 = vmatprep.subr.bf16.mxu0 %v4219_v59 }
 0x3d1   :  { %3940 = vmatpush3.bf16.msra.mxu1 %v4214_v33 }
 0x3d2   :  { %3941 = vmatprep.subr.bf16.mxu1 %v4216_v26  ;;  %3922 = vmatpush3.bf16.msra.mxu0 %v4221_v5 }
 0x3d3   :  { %3951 = vmatprep.subr.bf16.mxu0 %v4223_v48 }
 0x3d5   :  { %3942 = vmatpush3.bf16.msra.mxu1 %v4218_v12 }
 0x3d6   :  { %3943 = vmatprep.subr.bf16.mxu1 %v4220_v45 }
 0x3d8   :  { %v1848_v40 = vpop.f32.mrf.mxu1  ;;  %v1925_v2 = vpop.f32.mrf.mxu0 }
 0x3d9   :  { %3944 = vmatpush3.bf16.msra.mxu1 %v4222_v21 }
 0x3da   :  { %3973 = vmatprep.subr.bf16.mxu1 %v4224_v32  ;;  %v1850_v55 = vpop.f32.mrf.mxu1  ;;  %v1927_v16 = vpop.f32.mrf.mxu0 }
 0x3dd   :  { %v1854_v37 = vpop.f32.mrf.mxu1  ;;  %v1931_v29 = vpop.f32.mrf.mxu0 }
 0x3df   :  { %v1856_v3 = vpop.f32.mrf.mxu1  ;;  %v1933_v28 = vpop.f32.mrf.mxu0 }
 0x3e3   :  { %v5922_v25 = vpop.f32.mrf.mxu1  ;;  %v5924_v38 = vpop.f32.mrf.mxu0 }
 0x3e5   :  { %v2004_v35 = vpop.f32.mrf.mxu1  ;;  %v2081_v41 = vpop.f32.mrf.mxu0 }
 0x3e7   :  { %v5926_v23 = vpop.f32.mrf.mxu1  ;;  %v5928_v49 = vpop.f32.mrf.mxu0 }
 0x3e9   :  { %v2010_v42 = vpop.f32.mrf.mxu1  ;;  %v2087_v53 = vpop.f32.mrf.mxu0 }
 0x46a   :  { %v2191_v51 = vpop.f32.mrf.mxu1  ;;  %v2262_v30 = vpop.f32.mrf.mxu0 }
 0x46b   :  { %v2417_v34 = vrot.slane %v2191_v51, 4  ;;  %v2419_v52 = vrot.slane %v2262_v30, 4  ;;  %v2473_v10 = vmul.f32 %v2191_v51, %v1848_v40  ;;  %v2475_v50 = vmul.f32 %v2262_v30, %v1925_v2 }
 0x46c   :  { %v2193_v31 = vpop.f32.mrf.mxu1  ;;  %v2264_v22 = vpop.f32.mrf.mxu0 }
 0x46d   :  { %v2433_v46 = vmul.f32 %v2417_v34, %v1848_v40  ;;  %v2481_v18 = vmul.f32 %v2417_v34, %v1854_v37  ;;  %v2418_v8 = vrot.slane %v2193_v31, 4  ;;  %v2420_v9 = vrot.slane %v2264_v22, 4 }
 0x46e   :  { %v2435_v19 = vmul.f32 %v2419_v52, %v1925_v2  ;;  %v2483_v47 = vmul.f32 %v2419_v52, %v1931_v29  ;;  %v2474_v17 = vmul.f32 %v2193_v31, %v1850_v55  ;;  %v2476_v27 = vmul.f32 %v2264_v22, %v1927_v16  ;;  %v4225_v22 = vld [vmem:[%s6132_s14 + $0x138] sm:$0xff]  }
 0x46f   :  { %v2434_v11 = vmul.f32 %v2418_v8, %v1850_v55  ;;  %v2482_v43 = vmul.f32 %v2418_v8, %v1856_v3  ;;  %v2436_v62 = vmul.f32 %v2420_v9, %v1927_v16  ;;  %v2484_v36 = vmul.f32 %v2420_v9, %v1933_v28 }
 0x470   :  { %v2449_v60 = vrot.slane %v2433_v46, 4  ;;  %v2489_v0 = vadd.f32 %v2481_v18, %v2473_v10  ;;  %v2451_v61 = vrot.slane %v2435_v19, 4  ;;  %v2491_v63 = vadd.f32 %v2483_v47, %v2475_v50  ;;  %v4227_v47 = vld [vmem:[%s6132_s14 + $0x170] sm:$0xff]  }
 0x471   :  { %v2450_v20 = vrot.slane %v2434_v11, 4  ;;  %v2490_v54 = vadd.f32 %v2482_v43, %v2474_v17  ;;  %v2452_v44 = vrot.slane %v2436_v62, 4  ;;  %v2492_v7 = vadd.f32 %v2484_v36, %v2476_v27  ;;  %v4228_v10 = vld [vmem:[%s6132_s14 + $0x1f0] sm:$0xff]   ;;  %v4235_v17 = vld [vmem:[%s6132_s14 + $0x160] sm:$0xff]  }
 0x472   :  { %v2465_v57 = vadd.f32 %v2449_v60, %v2433_v46  ;;  %v2505_v56 = vrot.slane %v2489_v0, 4  ;;  %v2467_v1 = vadd.f32 %v2451_v61, %v2435_v19  ;;  %v2507_v26 = vrot.slane %v2491_v63, 4  ;;  %v4226_v46 = vld [vmem:[%s6132_s14 + $0x1b8] sm:$0xff]   ;;  %v4230_v36 = vld [vmem:[%s6132_s14 + $0x1b0] sm:$0xff]   ;;  %v4231_v60 = vld [vmem:[%s6132_s14 + $0x168] sm:$0xff]  }
 0x473   :  { %v5930_v6 = vpop.f32.mrf.mxu1  ;;  %v5932_v14 = vpop.f32.mrf.mxu0  ;;  %v2466_v48 = vadd.f32 %v2450_v20, %v2434_v11  ;;  %v2506_v32 = vrot.slane %v2490_v54, 4  ;;  %v2468_v40 = vadd.f32 %v2452_v44, %v2436_v62  ;;  %v2508_v2 = vrot.slane %v2492_v7, 4  ;;  %v4229_v62 = vld [vmem:[%s6132_s14 + $0x130] sm:$0xff]   ;;  %v4232_v0 = vld [vmem:[%s6132_s14 + $0x1e8] sm:$0xff]   ;;  %v4236_v27 = vld [vmem:[%s6132_s14 + $0x1e0] sm:$0xff]  }
 0x474   :  { %v2521_v3 = vsel %vm1585_vm3, %v2465_v57, %v2505_v56  ;;  %v2523_v28 = vsel %vm1585_vm3, %v2467_v1, %v2507_v26  ;;  %v4233_v61 = vld [vmem:[%s6132_s14 + $0x128] sm:$0xff]   ;;  %v4237_v20 = vld [vmem:[%s6132_s14 + $0x120] sm:$0xff]   ;;  %v4239_v44 = vld [vmem:[%s6132_s14 + $0x158] sm:$0xff]  }
 0x475   :  { %v2335_v15 = vpop.f32.mrf.mxu1  ;;  %v2406_v39 = vpop.f32.mrf.mxu0  ;;  %v2529_v9 = vpack.c.bf16 %v2521_v3, %v2521_v3  ;;  %v2531_v19 = vpack.c.bf16 %v2523_v28, %v2523_v28  ;;  %v4234_v63 = vld [vmem:[%s6132_s14 + $0x1a8] sm:$0xff]   ;;  %v4238_v54 = vld [vmem:[%s6132_s14 + $0x1a0] sm:$0xff]   ;;  %v4240_v7 = vld [vmem:[%s6132_s14 + $0x1d8] sm:$0xff]  }
 0x476   :  { %v2422_v24 = vrot.slane %v2335_v15, 4  ;;  %v2424_v33 = vrot.slane %v2406_v39, 4  ;;  %v2478_v4 = vmul.f32 %v2335_v15, %v2004_v35  ;;  %v2480_v12 = vmul.f32 %v2406_v39, %v2081_v41  ;;  %v4241_v57 = vld [vmem:[%s6132_s14 + $0x118] sm:$0xff]   ;;  %v4253_v3 = vld [vmem:[%s6132_s14 + $0x100] sm:$0xff]  }
 0x477   :  { %v2421_v15 = vrot.slane %v5930_v6, 4  ;;  %v2423_v39 = vrot.slane %v5932_v14, 4  ;;  %v4242_v56 = vld [vmem:[%s6132_s14 + $0x198] sm:$0xff]   ;;  %v4254_v28 = vld [vmem:[%s6132_s14 + $0x180] sm:$0xff]  }
 0x478   :  { %v2438_v59 = vmul.f32 %v2422_v24, %v2004_v35  ;;  %v2486_v45 = vmul.f32 %v2422_v24, %v2010_v42  ;;  %v2440_v5 = vmul.f32 %v2424_v33, %v2081_v41  ;;  %v2488_v21 = vmul.f32 %v2424_v33, %v2087_v53  ;;  %v4243_v24 = vld [vmem:[%s6132_s14 + $0x150] sm:$0xff]  }
 0x479   :  { %v2522_v41 = vsel %vm1585_vm3, %v2466_v48, %v2506_v32  ;;  %v2524_v42 = vsel %vm1585_vm3, %v2468_v40, %v2508_v2  ;;  %v4244_v33 = vld [vmem:[%s6132_s14 + $0x1d0] sm:$0xff]   ;;  %v2437_v1 = vmul.f32 %v2421_v15, %v5922_v25  ;;  %v2485_v26 = vmul.f32 %v2421_v15, %v5926_v23  ;;  %v4249_v48 = vld [vmem:[%s6132_s14 + $0x108] sm:$0xff]   ;;  %v4251_v40 = vld [vmem:[%s6132_s14 + $0x140] sm:$0xff]  }
 0x47a   :  { %v2454_v55 = vrot.slane %v2438_v59, 4  ;;  %v2494_v16 = vadd.f32 %v2486_v45, %v2478_v4  ;;  %v2456_v37 = vrot.slane %v2440_v5, 4  ;;  %v2496_v29 = vadd.f32 %v2488_v21, %v2480_v12  ;;  %v4246_v23 = vld [vmem:[%s6132_s14 + $0x190] sm:$0xff]   ;;  %v4250_v32 = vld [vmem:[%s6132_s14 + $0x188] sm:$0xff]   ;;  %v4252_v2 = vld [vmem:[%s6132_s14 + $0x1c0] sm:$0xff]  }
 0x47b   :  { %v2530_v53 = vpack.c.bf16 %v2522_v41, %v2522_v41  ;;  %v2532_v31 = vpack.c.bf16 %v2524_v42, %v2524_v42  ;;  %v2439_v4 = vmul.f32 %v2423_v39, %v5924_v38  ;;  %v2487_v12 = vmul.f32 %v2423_v39, %v5928_v49  ;;  %v4247_v49 = vld [vmem:[%s6132_s14 + $0x148] sm:$0xff]   ;;  %v3388_v41 = vld [vmem:[#allocation16 + $0x18] sm:$0xff]  ;;  %v3387_v42 = vld [vmem:[#allocation16 + $0x10] sm:$0xff] }
 0x47c   :  { %v2470_v51 = vadd.f32 %v2454_v55, %v2438_v59  ;;  %v2510_v30 = vrot.slane %v2494_v16, 4  ;;  %v2472_v34 = vadd.f32 %v2456_v37, %v2440_v5  ;;  %v2512_v52 = vrot.slane %v2496_v29, 4  ;;  %v5936_v35 = vpop.f32.mrf.mxu1  ;;  %v4245_v5 = vld [vmem:[%s6132_s14 + $0x110] sm:$0xff]  }
 0x47d   :  { %3172 = vmatprep.mubr.bf16.mxu0 %v2530_v53  ;;  %3212 = vmatprep.mubr.bf16.mxu1 %v2532_v31  ;;  %v2477_v59 = vmul.f32 %v5930_v6, %v5922_v25  ;;  %v2479_v45 = vmul.f32 %v5932_v14, %v5924_v38  ;;  %v4248_v25 = vld [vmem:[%s6132_s14 + $0x1c8] sm:$0xff]   ;;  %v2453_v38 = vrot.slane %v2437_v1, 4  ;;  %v2455_v14 = vrot.slane %v2439_v4, 4  ;;  %s4586_s14 = smov 32  }
 0x47e   :  { %v4063_v18 = vpop.f32.mrf.mxu1  ;;  %v2526_v8 = vsel %vm1585_vm3, %v2470_v51, %v2510_v30  ;;  %v2528_v50 = vsel %vm1585_vm3, %v2472_v34, %v2512_v52  ;;  %3173 = vmatmul.mubr.bf16.vlgmr.msra.gmra.mxu0 %v2529_v9  ;;  %3213 = vmatmul.mubr.bf16.vlgmr.msra.gmra.mxu1 %v2531_v19  ;;  %v3386_v53 = vld [vmem:[#allocation16 + $0x8] sm:$0xff]  ;;  %v3385_v31 = vld [vmem:[#allocation16] sm:$0xff] }
 0x47f   :  { %v2534_v11 = vpack.c.bf16 %v2526_v8, %v2526_v8  ;;  %v2536_v43 = vpack.c.bf16 %v2528_v50, %v2528_v50  ;;  %3952 = vmatpush3.bf16.msra.mxu0 %v4225_v22  ;;  %3974 = vmatpush3.bf16.msra.mxu1 %v4226_v46  ;;  %v2493_v6 = vadd.f32 %v2485_v26, %v2477_v59  ;;  %v3304_v22 = vld [vmem:[#allocation14 + $0x18] sm:$0xff]  ;;  %v3303_v46 = vld [vmem:[#allocation14 + $0x10] sm:$0xff]  ;;  %v3302_v18 = vld [vmem:[#allocation14 + $0x8] sm:$0xff] }
 0x480   :  { %3953 = vmatprep.subr.bf16.mxu0 %v4227_v47  ;;  %3975 = vmatprep.subr.bf16.mxu1 %v4228_v10  ;;  %v2495_v21 = vadd.f32 %v2487_v12, %v2479_v45  ;;  %v2469_v55 = vadd.f32 %v2453_v38, %v2437_v1  ;;  %v2471_v37 = vadd.f32 %v2455_v14, %v2439_v4  ;;  %v3301_v8 = vld [vmem:[#allocation14] sm:$0xff] }
 0x481   :  { %3252 = vmatprep.mubr.bf16.mxu0 %v2534_v11  ;;  %3292 = vmatprep.mubr.bf16.mxu1 %v2536_v43  ;;  %v2509_v16 = vrot.slane %v2493_v6, 4  ;;  %v3878_v4 = vld [vmem:[#allocation19] ss:$0 sm:$0xff] }
 0x482   :  { %v2511_v29 = vrot.slane %v2495_v21, 4 }
 0x483   :  { %3954 = vmatpush3.bf16.msra.mxu0 %v4229_v62  ;;  %3976 = vmatpush3.bf16.msra.mxu1 %v4230_v36  ;;  %v2525_v51 = vsel %vm1585_vm3, %v2469_v55, %v2509_v16  ;;  %v3810_v36 = vld [vmem:[#allocation13] ss:$0 sm:$0xff] }
 0x484   :  { %3955 = vmatprep.subr.bf16.mxu0 %v4231_v60  ;;  %3977 = vmatprep.subr.bf16.mxu1 %v4232_v0  ;;  %v2527_v30 = vsel %vm1585_vm3, %v2471_v37, %v2511_v29  ;;  %v2533_v34 = vpack.c.bf16 %v2525_v51, %v2525_v51  ;;  %v2749_v60 = vadd.f32 %v3810_v36, %v5936_v35  ;;  %v3497_v29 = vld [vmem:[%s6139_s21 + $0x18] sm:$0xff]  ;;  %v3666_v36 = vld [vmem:[%s6143_s25] sm:$0xff] }
 0x485   :  { %v2535_v52 = vpack.c.bf16 %v2527_v30, %v2527_v30  ;;  %v3584_v30 = vld [vmem:[#allocation22 + $0x18] sm:$0xff] }
 0x486   :  { %v2753_v0 = vrot.slane %v2749_v60, 4 }
 0x487   :  { %3956 = vmatpush3.bf16.msra.mxu0 %v4233_v61  ;;  %3978 = vmatpush3.bf16.msra.mxu1 %v4234_v63 }
 0x488   :  { %3957 = vmatprep.subr.bf16.mxu0 %v4235_v17  ;;  %3979 = vmatprep.subr.bf16.mxu1 %v4236_v27  ;;  %v2755_v63 = vsel %vm1585_vm3, %v2749_v60, %v2753_v0  ;;  %v3882_v60 = vld [vmem:[%s6142_s24] ss:$0 sm:$0xff]  ;;  %s4521_s24 = scalar_lea.vmem %s3766_s13, 64 }
 0x489   :  { %p4522_p9 = scmp.ne.s32.totalorder %s3766_s13, %s4521_s24  ;;  %p4527_p11 = scmp.lt.s32.totalorder %s4521_s24, %s4521_s24 }
 0x48b   :  { %3958 = vmatpush3.bf16.msra.mxu0 %v4237_v20  ;;  %3980 = vmatpush3.bf16.msra.mxu1 %v4238_v54  ;;  %p4528_p12 = por %p4527_p11, %p4526_p10 }
 0x48c   :  { %3959 = vmatprep.subr.bf16.mxu0 %v4239_v44  ;;  %3981 = vmatprep.subr.bf16.mxu1 %v4240_v7 }
 0x48d   :  { %p4529_p13 = pnand %p4528_p12, %p4522_p9 }
 0x48f   :  { %3960 = vmatpush3.bf16.msra.mxu0 %v4241_v57  ;;  %3982 = vmatpush3.bf16.msra.mxu1 %v4242_v56 }
 0x490   :  { %3961 = vmatprep.subr.bf16.mxu0 %v4243_v24  ;;  %3983 = vmatprep.subr.bf16.mxu1 %v4244_v33 }
 0x493   :  { %3962 = vmatpush3.bf16.msra.mxu0 %v4245_v5  ;;  %3984 = vmatpush3.bf16.msra.mxu1 %v4246_v23  ;;  %v3876_v23 = vld [vmem:[#allocation17] ss:$0 sm:$0xff] }
 0x494   :  { %3963 = vmatprep.subr.bf16.mxu0 %v4247_v49  ;;  %3985 = vmatprep.subr.bf16.mxu1 %v4248_v25 }
 0x497   :  { %3964 = vmatpush3.bf16.msra.mxu0 %v4249_v48  ;;  %3986 = vmatpush3.bf16.msra.mxu1 %v4250_v32 }
 0x498   :  { %3965 = vmatprep.subr.bf16.mxu0 %v4251_v40  ;;  %3987 = vmatprep.subr.bf16.mxu1 %v4252_v2 }
 0x49b   :  { %3966 = vmatpush3.bf16.msra.mxu0 %v4253_v3  ;;  %3988 = vmatpush3.bf16.msra.mxu1 %v4254_v28  ;;  %v3496_v3 = vld [vmem:[%s6139_s21 + $0x10] sm:$0xff]  ;;  %v3495_v28 = vld [vmem:[%s6139_s21 + $0x8] sm:$0xff] }
 0x49c   :  { %4075 = vmatprep.subr.mxu1 %v4584_v58  ;;  %4064 = vmatprep.subr.mxu0 %v4584_v58 }
 0x49e   :  { %3253 = vmatmul.mubr.bf16.vlgmr.msra.gmra.mxu0 %v2533_v34  ;;  %3293 = vmatmul.mubr.bf16.vlgmr.msra.gmra.mxu1 %v2535_v52 }
 0x49f   :  { %4076 = vmatpush3.msra.mxu1 %v3388_v41  ;;  %4083 = vmatprep.mubr.msk.f32.mxu1 %vm4585_vm2, %v4584_v58 }
 0x4a0   :  { %4077 = vmatprep.subr.mxu1 %v4584_v58  ;;  %4072 = vmatprep.mubr.msk.f32.mxu0 %vm4585_vm2, %v4584_v58 }
 0x4a1   :  { %4078 = vmatpush3.msra.mxu1 %v3387_v42  ;;  %4065 = vmatpush3.msra.mxu0 %v3304_v22 }
 0x4a2   :  { %4079 = vmatprep.subr.mxu1 %v4584_v58  ;;  %4066 = vmatprep.subr.mxu0 %v4584_v58 }
 0x4a3   :  { %4080 = vmatpush3.msra.mxu1 %v3386_v53  ;;  %4067 = vmatpush3.msra.mxu0 %v3303_v46  ;;  %v3583_v46 = vld [vmem:[#allocation22 + $0x10] sm:$0xff] }
 0x4a4   :  { %4081 = vmatprep.subr.mxu1 %v4584_v58  ;;  %4068 = vmatprep.subr.mxu0 %v4584_v58 }
 0x4a5   :  { %4082 = vmatpush3.msra.mxu1 %v3385_v31  ;;  %4069 = vmatpush3.msra.mxu0 %v3302_v18  ;;  %v3582_v18 = vld [vmem:[#allocation22 + $0x8] sm:$0xff] }
 0x4a6   :  { %4084 = vmatmul.mubr.msk.f32.vlgmr.msra.gmra.mxu1 %vm1039_vm1, %v5757_v13  ;;  %4097 = vmatprep.subr.mxu1 %v4584_v58 }
 0x4a7   :  { %4105 = vmatprep.mubr.msk.f32.mxu1 %vm4585_vm2, %v4584_v58  ;;  %4070 = vmatprep.subr.mxu0 %v4584_v58 }
 0x4a8   :  { %4071 = vmatpush3.msra.mxu0 %v3301_v8  ;;  %4098 = vmatpush3.msra.mxu1 %v3584_v30  ;;  %v3581_v8 = vld [vmem:[#allocation22] sm:$0xff] }
 0x4a9   :  { %4086 = vmatprep.subr.mxu0 %v4584_v58  ;;  %4099 = vmatprep.subr.mxu1 %v4584_v58 }
 0x4aa   :  { %4100 = vmatpush3.msra.mxu1 %v3583_v46 }
 0x4ab   :  { %4101 = vmatprep.subr.mxu1 %v4584_v58 }
 0x4ac   :  { %4102 = vmatpush3.msra.mxu1 %v3582_v18 }
 0x4ad   :  { %4103 = vmatprep.subr.mxu1 %v4584_v58 }
 0x4ae   :  { %4104 = vmatpush3.msra.mxu1 %v3581_v8 }
 0x53e   :  { %v3923_v9 = vpop.f32.mrf.mxu0  ;;  %v3945_v19 = vpop.f32.mrf.mxu1 }
 0x540   :  { %v3924_v47 = vpop.f32.mrf.mxu0  ;;  %v3946_v10 = vpop.f32.mrf.mxu1 }
 0x541   :  { %v3925_v61 = vadd.f32 %v3924_v47, %v3923_v9  ;;  %v3947_v54 = vadd.f32 %v3946_v10, %v3945_v19  ;;  %v3669_v9 = vld [vmem:[%s6143_s25 + $0x18] sm:$0xff]  ;;  %v3880_v19 = vld [vmem:[#allocation20] ss:$0 sm:$0xff] }
 0x542   :  { %v3926_v50 = vpop.f32.mrf.mxu0  ;;  %v3948_v11 = vpop.f32.mrf.mxu1 }
 0x543   :  { %v3175_v17 = vadd.f32 %v3925_v61, %v2755_v63 }
 0x544   :  { %v3927_v43 = vpop.f32.mrf.mxu0  ;;  %v3949_v62 = vpop.f32.mrf.mxu1 }
 0x545   :  { %v3215_v15 = vadd.f32 %v3947_v54, %v3175_v17  ;;  %v3668_v43 = vld [vmem:[%s6143_s25 + $0x10] sm:$0xff]  ;;  %v3667_v62 = vld [vmem:[%s6143_s25 + $0x8] sm:$0xff]  ;;  %s4588_s25 = smov 2  }
 0x55e   :  { %v3967_v27 = vpop.f32.mrf.mxu0  ;;  %v3989_v20 = vpop.f32.mrf.mxu1 }
 0x560   :  { %v3968_v44 = vpop.f32.mrf.mxu0  ;;  %v3990_v7 = vpop.f32.mrf.mxu1 }
 0x561   :  { %v3969_v39 = vadd.f32 %v3968_v44, %v3967_v27  ;;  %v3991_v33 = vadd.f32 %v3990_v7, %v3989_v20  ;;  %v3884_v27 = vld [vmem:[%s6144_s26] ss:$0 sm:$0xff] }
 0x562   :  { %v3970_v57 = vpop.f32.mrf.mxu0  ;;  %v3992_v56 = vpop.f32.mrf.mxu1 }
 0x563   :  { %v3255_v24 = vadd.f32 %v3969_v39, %v3215_v15 }
 0x564   :  { %v3971_v1 = vpop.f32.mrf.mxu0  ;;  %v3993_v26 = vpop.f32.mrf.mxu1 }
 0x565   :  { %v3295_v35 = vadd.f32 %v3991_v33, %v3255_v24 }
 0x566   :  { %v3462_v12 = vpop.f32.mrf.mxu1 }
 0x567   :  { %v3300_v59 = vmax.f32 %v3295_v35, 0.0  ;;  %v3463_v45 = vadd.f32 %v3878_v4, %v3462_v12 }
 0x568   :  { %v4085_v5 = vpop.f32.mrf.mxu1 }
 0x569   :  { %3473 = vrot.lane.b32.xlu0 %v3463_v45, %s4558_s30  ;;  %4073 = vmatmul.mubr.msk.f32.vlgmr.msra.gmra.mxu0 %vm1039_vm1, %v3300_v59 }
 0x56a   :  { %4094 = vmatprep.mubr.msk.f32.mxu0 %vm4585_vm2, %v4584_v58  ;;  %4087 = vmatpush3.msra.mxu0 %v3497_v29 }
 0x56b   :  { %4088 = vmatprep.subr.mxu0 %v4584_v58 }
 0x56c   :  { %4089 = vmatpush3.msra.mxu0 %v3496_v3 }
 0x56d   :  { %4090 = vmatprep.subr.mxu0 %v4584_v58 }
 0x56e   :  { %4091 = vmatpush3.msra.mxu0 %v3495_v28 }
 0x56f   :  { %4092 = vmatprep.subr.mxu0 %v4584_v58 }
 0x5db   :  { %v3474_v2 = vpop.permute.xlu0 %3473 }
 0x629   :  { %v3381_v49 = vpop.f32.mrf.mxu0 }
 0x62a   :  { %v3382_v25 = vadd.f32 %v3876_v23, %v3381_v49 }
 0x62b   :  { %v4074_v38 = vpop.f32.mrf.mxu0 }
 0x62c   :  { %v3466_v6 = vadd.f32 %v3463_v45, %v3382_v25 }
 0x62e   :  { %v3467_v14 = vsub.f32 0.0, %v3466_v6 }
 0x630   :  { %v3468_v21 = vmul.f32 1.442695, %v3467_v14 }
 0x632   :  { %4255 = vpow2.f32 %v3468_v21 }
 0x63f   :  { %v4256_v48 = vpop.eup %4255 }
 0x640   :  { %v3470_v32 = vadd.f32 1.0, %v4256_v48 }
 0x642   :  { %4257 = vrcp.f32 %v3470_v32 }
 0x64f   :  { %v4258_v40 = vpop.eup %4257 }
 0x650   :  { %v3476_v55 = vmul.f32 %v4258_v40, %v3474_v2  ;;  %v3483_v52 = vsub.f32 1.0, %v4258_v40 }
 0x652   :  { %3478 = vrot.lane.b32.xlu1 %v3476_v55, %s4558_s30 }
 0x656   :  { %3489 = vrot.lane.b32.xlu1 %v5757_v13, %s4586_s14  ;;  %v3494_v13 = vld [vmem:[%s6139_s21] sm:$0xff] }
 0x657   :  { %4093 = vmatpush3.msra.mxu0 %v3494_v13 }
 0x658   :  { %4108 = vmatprep.subr.mxu0 %v4584_v58 }
 0x6c4   :  { %v3479_v16 = vpop.permute.xlu1 %3478 }
 0x6c5   :  { %v3481_v37 = vadd.f32 %v3479_v16, %v3382_v25 }
 0x6c7   :  { %4259 = vtanh.f32 %v3481_v37 }
 0x6c8   :  { %v3490_v34 = vpop.permute.xlu1 %3489 }
 0x6c9   :  { %v3492_v42 = vmul.f32 %v4258_v40, %v3490_v34 }
 0x6d4   :  { %v4260_v51 = vpop.eup %4259 }
 0x6d5   :  { %3485 = vrot.lane.b32.xlu0 %v4260_v51, %s4587_s5 }
 0x747   :  { %v3486_v41 = vpop.permute.xlu0 %3485 }
 0x748   :  { %v3488_v53 = vmul.f32 %v3486_v41, %v3483_v52 }
 0x74a   :  { %v3493_v31 = vadd.f32 %v3492_v42, %v3488_v53 }
 0x74c   :  { %3506 = vrot.lane.b32.xlu0 %v3493_v31, %s4587_s5 }
 0x7be   :  { %v3507_v22 = vpop.permute.xlu0 %3506 }
 0x7bf   :  { %4095 = vmatmul.mubr.msk.f32.vlgmr.msra.gmra.mxu0 %vm1039_vm1, %v3507_v22 }
 0x7c0   :  { %4116 = vmatprep.mubr.msk.f32.mxu0 %vm4585_vm2, %v4584_v58  ;;  %4109 = vmatpush3.msra.mxu0 %v3669_v9 }
 0x7c1   :  { %4110 = vmatprep.subr.mxu0 %v4584_v58 }
 0x7c2   :  { %4111 = vmatpush3.msra.mxu0 %v3668_v43 }
 0x7c3   :  { %4112 = vmatprep.subr.mxu0 %v4584_v58 }
 0x7c4   :  { %4113 = vmatpush3.msra.mxu0 %v3667_v62 }
 0x7c5   :  { %4114 = vmatprep.subr.mxu0 %v4584_v58 }
 0x7c6   :  { %4115 = vmatpush3.msra.mxu0 %v3666_v36 }
 0x87f   :  { %v3576_v47 = vpop.f32.mrf.mxu0 }
 0x880   :  { %v3577_v10 = vadd.f32 %v3880_v19, %v3576_v47 }
 0x881   :  { %v4096_v50 = vpop.f32.mrf.mxu0 }
 0x882   :  { %v3580_v11 = vmax.f32 %v3577_v10, 0.0 }
 0x884   :  { %4106 = vmatmul.mubr.msk.f32.vlgmr.msra.gmra.mxu1 %vm1039_vm1, %v3580_v11 }
 0x944   :  { %v3661_v0 = vpop.f32.mrf.mxu1 }
 0x945   :  { %v3662_v61 = vadd.f32 %v3882_v60, %v3661_v0 }
 0x946   :  { %v4107_v63 = vpop.f32.mrf.mxu1 }
 0x947   :  { %v3665_v17 = vmax.f32 %v3662_v61, 0.0 }
 0x949   :  { %4117 = vmatmul.mubr.msk.f32.vlgmr.msra.gmra.mxu0 %vm1039_vm1, %v3665_v17 }
 0xa09   :  { %v3746_v20 = vpop.f32.mrf.mxu0 }
 0xa0a   :  { %v3747_v54 = vadd.f32 %v3884_v27, %v3746_v20 }
 0xa0b   :  { %v4118_v44 = vpop.f32.mrf.mxu0 }
 0xa0c   :  { %v3751_v7 = vrot.slane %v3747_v54, 4 }
 0xa0e   :  { %3752 = vrot.lane.b32.xlu1 %v3751_v7, %s4588_s25 }
 0xa80   :  { %v3753_v58 = vpop.permute.xlu1 %3752 }
 0xa81   :  { %v3756_v15 = vsel %vm3755_vm11, %v3747_v54, %v3753_v58 }
 0xa82   :  { %3758 = vst.msk [vmem:[#allocation23] sm:$0xf] %vm3757_vm12, %v3756_v15 }
 0xa83   :  { %4532 = shalt.err (!%p4529_p13)
}
 0xa84   :  { %3768 = dma.vmem_to_hbm [thread:$0]  %s3766_s13, 64, %s6145_s27, [#allocation4]  }
 0xa85   :  { %4555 = dma.done.wait [#allocation4], 64  }
 0xa86   :  { %4556 = vsyncadd [#allocation4], 4294967232 }
 0xa87   :  { %3772 = vsyncpa [#allocation3], 1 }
 0xa88   :  { %3773 = vsyncpa [#allocation6], 1 }
 0xa89   :  { %3774 = vsyncpa [#allocation9], 1 }
 0xa8a   :  { %3775 = vsyncpa [#allocation12], 1 }
 0xa8b   :  { %3776 = vsyncpa [#allocation15], 1 }
 0xa8c   :  { %3777 = vsyncpa [#allocation18], 1 }
 0xa8d   :  { %3778 = vsyncpa [#allocation21], 1 }
 0xa8e   :  { %3779 = vsyncpa [#allocation4], 1 }

</bundles_post_ra>
